<compile_context>
chip_gen: v6e
topology: v6e:2x2x1
jax: 0.10.0
libtpu: 0.0.40
codegen_flags: <defaults>
</compile_context>

<pallas_src>
import functools

import jax
import jax.numpy as jnp
from jax.experimental import pallas as pl
from jax.experimental.pallas import tpu as pltpu

AUGMENT_DIM = 10
INPUT_DIM = 4                           # data.shape[1] + 1
HIDDEN_DIM = 1024
STATE_DIM = INPUT_DIM + AUGMENT_DIM     # 14
IN_YV = 2 * STATE_DIM                   # 28 (fc1 input minus the t column)
OUT_PAD = 128                           # lane-dense fc3 output width (sliced to 14 outside)
TM_MAX = 256                            # row tile


def _round_up(x, m):
    return ((x + m - 1) // m) * m


def _pick_tanh_dtype():
    """bf16 tanh on v6e/v7x (bf16 EUP path), f32 elsewhere."""
    try:
        kind = jax.devices()[0].device_kind.lower()
    except Exception:
        kind = ""
    if any(tag in kind for tag in ("v6", "v7", "7x")):
        return jnp.bfloat16
    return jnp.float32


# ----------------------------- Pallas kernel -------------------------------
def _mlp_kernel(t_ref, yv_ref, w1_ref, w1t_ref, b1_ref,
                w2_ref, b2_ref, w3_ref, b3_ref, out_ref, *, tanh_dtype):
    """One (stage s, row tile i) block of fc1 -> tanh -> fc2 -> tanh -> fc3.

    yv_ref:  (TM, 28)  f32  (y | v concatenated along features)
    out_ref: (TM, 128) f32  (fc3 output zero-padded to a lane-dense width)
    """
    s = pl.program_id(0)
    t = t_ref[s, 0]                                    # per-stage SMEM scalar

    yv = yv_ref[...].astype(jnp.bfloat16)              # (TM, 28)

    # fc1: [y|v] @ W1yv + t * w1_t + b1   (bf16 operands, f32 accumulate)
    acc1 = (
        jnp.dot(yv, w1_ref[...], preferred_element_type=jnp.float32)
        + t * w1t_ref[...].astype(jnp.float32)
        + b1_ref[...]
    )
    h1 = jnp.tanh(acc1.astype(tanh_dtype))             # bf16 on v6e/v7x, f32 on v5e

    acc2 = jnp.dot(h1.astype(jnp.bfloat16), w2_ref[...],
                   preferred_element_type=jnp.float32) + b2_ref[...]
    h2 = jnp.tanh(acc2.astype(tanh_dtype))

    out_ref[...] = jnp.dot(h2.astype(jnp.bfloat16), w3_ref[...],
                           preferred_element_type=jnp.float32) + b3_ref[...]


# ----------------------------- wrapper --------------------------------------
def mlp_pallas(ts, yv, params, tanh_dtype=jnp.float32):
    """Batched MLP evaluation.

    ts: (S,) f32 times, yv: (S, N, 28) f32.
    Returns (S, n_pad, OUT_PAD) f32 fc3 outputs (rows >= N and lanes >= 14 are padding).
    Weights stay VMEM-resident (constant index_map) across all S*row_tiles grid steps,
    amortizing the weight DMA over every evaluation in the call.
    """
    w1yv, w1t, b1, w2, b2, w3, b3 = params
    S, n, k_in = yv.shape
    assert k_in == IN_YV

    n_pad = _round_up(max(n, 8), 8)
    tm = min(TM_MAX, n_pad)
    n_pad = _round_up(n_pad, tm)
    if n_pad != n:
        yv = jnp.pad(yv, ((0, 0), (0, n_pad - n), (0, 0)))

    ts = jnp.asarray(ts, jnp.float32).reshape(S, 1)
    grid = (S, n_pad // tm)

    def resident(arr):
        # Full-array block, same block index every grid step -> stays VMEM-resident.
        nd = arr.ndim
        return pl.BlockSpec(arr.shape, lambda s, i, _nd=nd: (0,) * _nd)
        # NOTE: pipeline_mode=pl.Buffered(1) would drop the (unneeded) second buffer;
        # left at the default since VMEM headroom is ample at these sizes.

    weight_bytes = 2 * (w1yv.size + w1t.size + w2.size + w3.size)
    bias_bytes = 4 * (b1.size + b2.size + b3.size)
    act_bytes = 4 * (yv.size + S * n_pad * OUT_PAD)
    flops = 2 * S * n_pad * HIDDEN_DIM * (IN_YV + 1 + HIDDEN_DIM + OUT_PAD)
    cost = pl.CostEstimate(
        flops=flops,
        transcendentals=2 * S * n_pad * HIDDEN_DIM,
        bytes_accessed=weight_bytes + bias_bytes + act_bytes,
    )

    kernel = functools.partial(_mlp_kernel, tanh_dtype=tanh_dtype)

    return pl.pallas_call(
        kernel,
        out_shape=jax.ShapeDtypeStruct((S, n_pad, OUT_PAD), jnp.float32),
        grid_spec=pltpu.PrefetchScalarGridSpec(
            num_scalar_prefetch=0,
            grid=grid,
            in_specs=[
                pl.BlockSpec(memory_space=pltpu.MemorySpace.SMEM),        # ts (S,1)
                pl.BlockSpec((None, tm, IN_YV), lambda s, i: (s, i, 0)),  # yv row tile
                resident(w1yv), resident(w1t), resident(b1),
                resident(w2), resident(b2),
                resident(w3), resident(b3),
            ],
            out_specs=pl.BlockSpec((None, tm, OUT_PAD), lambda s, i: (s, i, 0)),
        ),
        compiler_params=pltpu.CompilerParams(
            dimension_semantics=("parallel", "parallel"),   # v7x: shard over both TCs
            vmem_limit_bytes=32 << 20,
        ),
        cost_estimate=cost,
    )(ts, yv, w1yv, w1t, b1, w2, b2, w3, b3)


# ----------------------------- parameters ----------------------------------
def init_params(key):
    """nn.Linear-style U(-1/sqrt(fan_in), +) init, then split fc1 / pad fc3 / cast bf16."""
    ks = jax.random.split(key, 6)

    def linear(kw, kb, fan_in, fan_out):
        bound = fan_in ** -0.5
        w = jax.random.uniform(kw, (fan_in, fan_out), jnp.float32, -bound, bound)
        b = jax.random.uniform(kb, (1, fan_out), jnp.float32, -bound, bound)
        return w, b

    w1, b1 = linear(ks[0], ks[1], 2 * STATE_DIM + 1, HIDDEN_DIM)
    w2, b2 = linear(ks[2], ks[3], HIDDEN_DIM, HIDDEN_DIM)
    w3, b3 = linear(ks[4], ks[5], HIDDEN_DIM, STATE_DIM)

    # fc1 split along its input dim: rows [0:28) -> [y|v] (one fused K=28 dot), [28] -> t.
    w1yv = w1[:IN_YV].astype(jnp.bfloat16)        # (28, 1024)
    w1t = w1[IN_YV:].astype(jnp.bfloat16)         # (1, 1024)

    # Zero-pad fc3 to a lane-dense 128-wide output.
    w3p = jnp.zeros((HIDDEN_DIM, OUT_PAD), jnp.float32).at[:, :STATE_DIM].set(w3)
    b3p = jnp.zeros((1, OUT_PAD), jnp.float32).at[:, :STATE_DIM].set(b3)

    return (w1yv, w1t, b1,
            w2.astype(jnp.bfloat16), b2,
            w3p.astype(jnp.bfloat16), b3p)


# ----------------------------- forward --------------------------------------
def second_order_augmented_ode_func_batched(ts, zs, params, tanh_dtype=jnp.float32):
    """Batched RHS: ts (S,), zs (S, 2N, STATE_DIM) -> (S, 2N, STATE_DIM).

    All S evaluations share one pallas_call so the weight DMA is amortized
    (the dominant cost for small N).
    """
    S, two_n, _ = zs.shape
    cutoff = two_n // 2
    y = zs[:, :cutoff]
    v = zs[:, cutoff:]
    yv = jnp.concatenate([y, v], axis=-1)                 # (S, N, 28)
    out = mlp_pallas(ts, yv, params, tanh_dtype)          # (S, n_pad, 128)
    out = out[:, :cutoff, :STATE_DIM]                     # (S, N, 14)
    # TODO(synk): the PyTorch reference returns cat((v, out[:, :input_dim-1]), dim=0),
    # which is shape-inconsistent (14 vs 3 cols) and raises as written; we keep the
    # consistent second-order form cat((v, out), dim=0).
    return jnp.concatenate([v, out], axis=1)


def second_order_augmented_ode_func(t, z, params, tanh_dtype=jnp.float32):
    """z: (2N, STATE_DIM) f32, t: scalar. Returns (2N, STATE_DIM) f32."""
    t_arr = jnp.asarray(t, jnp.float32).reshape(1)
    return second_order_augmented_ode_func_batched(t_arr, z[None], params, tanh_dtype)[0]


# ----------------------------- reference (same numerics) --------------------
def _reference(t, z, params, tanh_dtype=jnp.float32):
    w1yv, w1t, b1, w2, b2, w3, b3 = params
    cutoff = z.shape[0] // 2
    y = z[:cutoff]
    v = z[cutoff:]
    yv = jnp.concatenate([y, v], axis=1).astype(jnp.bfloat16)
    acc1 = (jnp.dot(yv, w1yv, preferred_element_type=jnp.float32)
            + jnp.float32(t) * w1t.astype(jnp.float32) + b1)
    h1 = jnp.tanh(acc1.astype(tanh_dtype))
    acc2 = jnp.dot(h1.astype(jnp.bfloat16), w2,
                   preferred_element_type=jnp.float32) + b2
    h2 = jnp.tanh(acc2.astype(tanh_dtype))
    out = jnp.dot(h2.astype(jnp.bfloat16), w3,
                  preferred_element_type=jnp.float32) + b3
    return jnp.concatenate([v, out[:, :STATE_DIM]], axis=0)


# ----------------------------- demo ------------------------------------------
if __name__ == "__main__":
    key = jax.random.PRNGKey(0)
    k_params, k_z, k_zs = jax.random.split(key, 3)

    params = init_params(k_params)

    N = 8                                            # batch of state rows (small demo)
    z = jax.random.normal(k_z, (2 * N, STATE_DIM), jnp.float32)
    t = jnp.float32(0.5)

    S = 4                                            # fused RHS evaluations per call
    ts = jnp.linspace(0.0, 1.0, S, dtype=jnp.float32)
    zs = jax.random.normal(k_zs, (S, 2 * N, STATE_DIM), jnp.float32)

    def run_all(tanh_dtype):
        tol = 2e-2 if tanh_dtype is jnp.float32 else 5e-2

        # Single-evaluation path (matches the PyTorch forward signature).
        fwd = jax.jit(lambda t_, z_: second_order_augmented_ode_func(t_, z_, params, tanh_dtype))
        result = fwd(t, z)
        jax.block_until_ready(result)
        assert result.shape == (2 * N, STATE_DIM)
        assert result.dtype == jnp.float32
        expected = _reference(t, z, params, tanh_dtype)
        max_err = float(jnp.max(jnp.abs(result - expected)))
        assert jnp.allclose(result, expected, atol=tol, rtol=tol), max_err

        # Batched path: S evaluations share one weight stream.
        fwd_b = jax.jit(lambda ts_, zs_: second_order_augmented_ode_func_batched(
            ts_, zs_, params, tanh_dtype))
        result_b = fwd_b(ts, zs)
        jax.block_until_ready(result_b)
        assert result_b.shape == (S, 2 * N, STATE_DIM)
        expected_b = jnp.stack([_reference(ts[s], zs[s], params, tanh_dtype)
                                for s in range(S)])
        max_err_b = float(jnp.max(jnp.abs(result_b - expected_b)))
        assert jnp.allclose(result_b, expected_b, atol=tol, rtol=tol), max_err_b

    tanh_dtype = _pick_tanh_dtype()
    try:
        run_all(tanh_dtype)
    except Exception:
        if tanh_dtype is jnp.float32:
            raise
        run_all(jnp.float32)             # safe fallback: f32 tanh path

    print("KERNEL_OK")
</pallas_src>

<mosaic_0001>
module attributes {stable_mosaic.version = 11 : i64} {
  func.func @_mlp_kernel(%arg0: i32, %arg1: i32, %arg2: memref<1x1xf32, #tpu.memory_space<smem>>, %arg3: memref<1x8x28xf32, #tpu.memory_space<vmem>>, %arg4: memref<28x1024xbf16, #tpu.memory_space<vmem>>, %arg5: memref<1x1024xbf16, #tpu.memory_space<vmem>>, %arg6: memref<1x1024xf32, #tpu.memory_space<vmem>>, %arg7: memref<1024x1024xbf16, #tpu.memory_space<vmem>>, %arg8: memref<1x1024xf32, #tpu.memory_space<vmem>>, %arg9: memref<1024x128xbf16, #tpu.memory_space<vmem>>, %arg10: memref<1x128xf32, #tpu.memory_space<vmem>>, %arg11: memref<1x8x128xf32, #tpu.memory_space<vmem>>) attributes {dimension_semantics = [#tpu.dimension_semantics<parallel>, #tpu.dimension_semantics<parallel>], iteration_bounds = array<i64: 1, 1>, scalar_prefetch = 0 : i64, scratch_operands = 0 : i64, tpu.core_type = #tpu.core_type<tc>, window_params = [{transform_indices = @transform_0, window_bounds = array<i64: 1, 1>}, {transform_indices = @transform_1, window_bounds = array<i64: 1, 8, 28>}, {pipeline_mode = #tpu.pipeline_mode<synchronous>, transform_indices = @transform_2, window_bounds = array<i64: 28, 1024>}, {pipeline_mode = #tpu.pipeline_mode<synchronous>, transform_indices = @transform_3, window_bounds = array<i64: 1, 1024>}, {pipeline_mode = #tpu.pipeline_mode<synchronous>, transform_indices = @transform_4, window_bounds = array<i64: 1, 1024>}, {pipeline_mode = #tpu.pipeline_mode<synchronous>, transform_indices = @transform_5, window_bounds = array<i64: 1024, 1024>}, {pipeline_mode = #tpu.pipeline_mode<synchronous>, transform_indices = @transform_6, window_bounds = array<i64: 1, 1024>}, {pipeline_mode = #tpu.pipeline_mode<synchronous>, transform_indices = @transform_7, window_bounds = array<i64: 1024, 128>}, {pipeline_mode = #tpu.pipeline_mode<synchronous>, transform_indices = @transform_8, window_bounds = array<i64: 1, 128>}, {transform_indices = @transform_9, window_bounds = array<i64: 1, 8, 128>}]} {
    %0 = arith.index_cast %arg0 : i32 to index
    %c0 = arith.constant 0 : index
    %1 = memref.load %arg2[%0, %c0] : memref<1x1xf32, #tpu.memory_space<smem>>
    %c0_0 = arith.constant 0 : index
    %c0_1 = arith.constant 0 : index
    %c0_2 = arith.constant 0 : index
    %2 = vector.load %arg3[%c0_0, %c0_1, %c0_2] : memref<1x8x28xf32, #tpu.memory_space<vmem>>, vector<1x8x28xf32>
    %3 = vector.shape_cast %2 : vector<1x8x28xf32> to vector<8x28xf32>
    %4 = arith.truncf %3 : vector<8x28xf32> to vector<8x28xbf16>
    %c0_3 = arith.constant 0 : index
    %c0_4 = arith.constant 0 : index
    %5 = vector.load %arg4[%c0_3, %c0_4] : memref<28x1024xbf16, #tpu.memory_space<vmem>>, vector<28x1024xbf16>
    %cst = arith.constant dense<0.000000e+00> : vector<8x1024xf32>
    %6 = tpu.matmul %4, %5, %cst {dimension_numbers = #tpu.dot_dimension_numbers<[1], [0], [0], [1], [0, 0, 1, 1], [], []>} : vector<8x28xbf16>, vector<28x1024xbf16>, vector<8x1024xf32> -> vector<8x1024xf32>
    %c0_5 = arith.constant 0 : index
    %c0_6 = arith.constant 0 : index
    %7 = vector.load %arg5[%c0_5, %c0_6] : memref<1x1024xbf16, #tpu.memory_space<vmem>>, vector<1x1024xbf16>
    %8 = arith.extf %7 : vector<1x1024xbf16> to vector<1x1024xf32>
    %9 = vector.broadcast %1 : f32 to vector<1x1024xf32>
    %10 = arith.mulf %9, %8 : vector<1x1024xf32>
    %11 = vector.broadcast %10 : vector<1x1024xf32> to vector<8x1024xf32>
    %12 = arith.addf %6, %11 : vector<8x1024xf32>
    %c0_7 = arith.constant 0 : index
    %c0_8 = arith.constant 0 : index
    %13 = vector.load %arg6[%c0_7, %c0_8] : memref<1x1024xf32, #tpu.memory_space<vmem>>, vector<1x1024xf32>
    %14 = vector.broadcast %13 : vector<1x1024xf32> to vector<8x1024xf32>
    %15 = arith.addf %12, %14 : vector<8x1024xf32>
    %16 = math.tanh %15 : vector<8x1024xf32>
    %17 = arith.truncf %16 : vector<8x1024xf32> to vector<8x1024xbf16>
    %c0_9 = arith.constant 0 : index
    %c0_10 = arith.constant 0 : index
    %18 = vector.load %arg7[%c0_9, %c0_10] : memref<1024x1024xbf16, #tpu.memory_space<vmem>>, vector<1024x1024xbf16>
    %cst_11 = arith.constant dense<0.000000e+00> : vector<8x1024xf32>
    %19 = tpu.matmul %17, %18, %cst_11 {dimension_numbers = #tpu.dot_dimension_numbers<[1], [0], [0], [1], [0, 0, 1, 1], [], []>} : vector<8x1024xbf16>, vector<1024x1024xbf16>, vector<8x1024xf32> -> vector<8x1024xf32>
    %c0_12 = arith.constant 0 : index
    %c0_13 = arith.constant 0 : index
    %20 = vector.load %arg8[%c0_12, %c0_13] : memref<1x1024xf32, #tpu.memory_space<vmem>>, vector<1x1024xf32>
    %21 = vector.broadcast %20 : vector<1x1024xf32> to vector<8x1024xf32>
    %22 = arith.addf %19, %21 : vector<8x1024xf32>
    %23 = math.tanh %22 : vector<8x1024xf32>
    %24 = arith.truncf %23 : vector<8x1024xf32> to vector<8x1024xbf16>
    %c0_14 = arith.constant 0 : index
    %c0_15 = arith.constant 0 : index
    %25 = vector.load %arg9[%c0_14, %c0_15] : memref<1024x128xbf16, #tpu.memory_space<vmem>>, vector<1024x128xbf16>
    %cst_16 = arith.constant dense<0.000000e+00> : vector<8x128xf32>
    %26 = tpu.matmul %24, %25, %cst_16 {dimension_numbers = #tpu.dot_dimension_numbers<[1], [0], [0], [1], [0, 0, 1, 1], [], []>} : vector<8x1024xbf16>, vector<1024x128xbf16>, vector<8x128xf32> -> vector<8x128xf32>
    %c0_17 = arith.constant 0 : index
    %c0_18 = arith.constant 0 : index
    %27 = vector.load %arg10[%c0_17, %c0_18] : memref<1x128xf32, #tpu.memory_space<vmem>>, vector<1x128xf32>
    %28 = vector.broadcast %27 : vector<1x128xf32> to vector<8x128xf32>
    %29 = arith.addf %26, %28 : vector<8x128xf32>
    %c0_19 = arith.constant 0 : index
    %c0_20 = arith.constant 0 : index
    %c0_21 = arith.constant 0 : index
    %30 = vector.load %arg11[%c0_19, %c0_20, %c0_21] : memref<1x8x128xf32, #tpu.memory_space<vmem>>, vector<1x8x128xf32>
    %31 = vector.shape_cast %30 : vector<1x8x128xf32> to vector<8x128xf32>
    %32 = vector.shape_cast %29 : vector<8x128xf32> to vector<1x8x128xf32>
    tpu.vector_store %arg11[%c0_19, %c0_20, %c0_21], %32 {strides = array<i32>} : memref<1x8x128xf32, #tpu.memory_space<vmem>>, vector<1x8x128xf32>,
    return
  }
  func.func @transform_0(%arg0: i32, %arg1: i32) -> (i32, i32) {
    %c0_i32 = arith.constant 0 : i32
    %c0_i32_0 = arith.constant 0 : i32
    %c0_i32_1 = arith.constant 0 : i32
    return %c0_i32, %c0_i32_0 : i32, i32
  }
  func.func @transform_1(%arg0: i32, %arg1: i32) -> (i32, i32, i32) {
    %c0_i32 = arith.constant 0 : i32
    %c0_i32_0 = arith.constant 0 : i32
    return %arg0, %arg1, %c0_i32 : i32, i32, i32
  }
  func.func @transform_2(%arg0: i32, %arg1: i32) -> (i32, i32) {
    %c0_i32 = arith.constant 0 : i32
    %c0_i32_0 = arith.constant 0 : i32
    %c0_i32_1 = arith.constant 0 : i32
    return %c0_i32, %c0_i32_0 : i32, i32
  }
  func.func @transform_3(%arg0: i32, %arg1: i32) -> (i32, i32) {
    %c0_i32 = arith.constant 0 : i32
    %c0_i32_0 = arith.constant 0 : i32
    %c0_i32_1 = arith.constant 0 : i32
    return %c0_i32, %c0_i32_0 : i32, i32
  }
  func.func @transform_4(%arg0: i32, %arg1: i32) -> (i32, i32) {
    %c0_i32 = arith.constant 0 : i32
    %c0_i32_0 = arith.constant 0 : i32
    %c0_i32_1 = arith.constant 0 : i32
    return %c0_i32, %c0_i32_0 : i32, i32
  }
  func.func @transform_5(%arg0: i32, %arg1: i32) -> (i32, i32) {
    %c0_i32 = arith.constant 0 : i32
    %c0_i32_0 = arith.constant 0 : i32
    %c0_i32_1 = arith.constant 0 : i32
    return %c0_i32, %c0_i32_0 : i32, i32
  }
  func.func @transform_6(%arg0: i32, %arg1: i32) -> (i32, i32) {
    %c0_i32 = arith.constant 0 : i32
    %c0_i32_0 = arith.constant 0 : i32
    %c0_i32_1 = arith.constant 0 : i32
    return %c0_i32, %c0_i32_0 : i32, i32
  }
  func.func @transform_7(%arg0: i32, %arg1: i32) -> (i32, i32) {
    %c0_i32 = arith.constant 0 : i32
    %c0_i32_0 = arith.constant 0 : i32
    %c0_i32_1 = arith.constant 0 : i32
    return %c0_i32, %c0_i32_0 : i32, i32
  }
  func.func @transform_8(%arg0: i32, %arg1: i32) -> (i32, i32) {
    %c0_i32 = arith.constant 0 : i32
    %c0_i32_0 = arith.constant 0 : i32
    %c0_i32_1 = arith.constant 0 : i32
    return %c0_i32, %c0_i32_0 : i32, i32
  }
  func.func @transform_9(%arg0: i32, %arg1: i32) -> (i32, i32, i32) {
    %c0_i32 = arith.constant 0 : i32
    %c0_i32_0 = arith.constant 0 : i32
    return %arg0, %arg1, %c0_i32 : i32, i32, i32
  }
}

</mosaic_0001>

<bundles_post_ra>
// kernel: _lambda_.1
= control target key start
LH: loop header
LB: loop body
LE: loop exit
PB: predicated region body
PF: predicated region fallthrough
CT: control target
= control target key end

     0   :  { %15 = vsyncpa [#allocation4], 0  ;;  %s6281_s0 = inlined_call_operand.<no memory space> [shape: f32[1,1], index: 0, kind: input, shape index: {}]   ;;  %s6282_s1 = inlined_call_operand.vmem [shape: f32[1,8,28], index: 1, kind: input, shape index: {}]   ;;  %s6283_s2 = inlined_call_operand.hbm [shape: bf16[28,1024], index: 2, kind: input, shape index: {}]   ;;  %s6284_s3 = inlined_call_operand.hbm [shape: bf16[1,1024], index: 3, kind: input, shape index: {}]   ;;  %s6285_s4 = inlined_call_operand.hbm [shape: f32[1,1024], index: 4, kind: input, shape index: {}]   ;;  %s6286_s5 = inlined_call_operand.hbm [shape: bf16[1024,1024], index: 5, kind: input, shape index: {}]   ;;  %s6287_s6 = inlined_call_operand.hbm [shape: f32[1,1024], index: 6, kind: input, shape index: {}]   ;;  %s6288_s7 = inlined_call_operand.hbm [shape: bf16[1024,128], index: 7, kind: input, shape index: {}]   ;;  %s6289_s8 = inlined_call_operand.hbm [shape: f32[1,128], index: 8, kind: input, shape index: {}]   ;;  %s6290_s9 = inlined_call_operand.vmem [shape: f32[1,8,128], index: 9, kind: output, shape index: {}]  }
   0x1   :  { %16 = vsyncpa [#allocation6], 0 }
   0x2   :  { %17 = vsyncpa [#allocation9], 0 }
   0x3   :  { %18 = vsyncpa [#allocation12], 0  ;;  %s5972_s30 = smov [#allocation5]  }
   0x4   :  { %s41_s10 = sshll.u32 %s5972_s30, 4  ;;  %s42_s10 = int_to_ptr.vmem [resolvable:$true] %s41_s10 }
   0x5   :  { %s5832_s11 = scalar_lea.vmem %s42_s10, 128  ;;  %p5837_p1 = scmp.lt.s32.totalorder %s42_s10, %s42_s10 }
   0x6   :  { %p5833_p0 = scmp.ne.s32.totalorder %s42_s10, %s5832_s11  ;;  %p5838_p2 = scmp.lt.s32.totalorder %s5832_s11, %s5832_s11 }
   0x8   :  { %p5839_p3 = por %p5838_p2, %p5837_p1 }
   0xa   :  { %p5840_p4 = pnand %p5839_p3, %p5833_p0 }
   0xc   :  { %5843 = shalt.err (!%p5840_p4)
}
   0xd   :  { %44 = dma.hbm_to_vmem [thread:$0]  %s6284_s3, 128, %s42_s10, [#allocation6]  }
   0xe   :  { %s5973_s14 = smov [#allocation8]   ;;  %s5974_s16 = smov [#allocation11]  }
   0xf   :  { %s60_s15 = sshll.u32 %s5973_s14, 4  ;;  %s82_s17 = sshll.u32 %s5974_s16, 4  ;;  %s61_s15 = int_to_ptr.vmem [resolvable:$true] %s60_s15  ;;  %s83_s17 = int_to_ptr.vmem [resolvable:$true] %s82_s17 }
  0x10   :  { %s5852_s18 = scalar_lea.vmem %s61_s15, 65536  ;;  %p5857_p6 = scmp.lt.s32.totalorder %s61_s15, %s61_s15 }
  0x11   :  { %p5853_p5 = scmp.ne.s32.totalorder %s61_s15, %s5852_s18  ;;  %p5858_p7 = scmp.lt.s32.totalorder %s5852_s18, %s5852_s18 }
  0x13   :  { %p5859_p8 = por %p5858_p7, %p5857_p6 }
  0x15   :  { %p5860_p9 = pnand %p5859_p8, %p5853_p5 }
  0x17   :  { %5863 = shalt.err (!%p5860_p9)
}
  0x18   :  { %s5975_s19 = smov 512   ;;  %s5976_s20 = smov 32  }
  0x19   :  { %66 = dma.hbm_to_vmem [thread:$0]  %s6286_s5, 65536, %s61_s15, [#allocation9], %s5975_s19, %s5975_s19, %s5976_s20  }
  0x1a   :  { %s5872_s3 = scalar_lea.vmem %s83_s17, 8192  ;;  %p5877_p11 = scmp.lt.s32.totalorder %s83_s17, %s83_s17 }
  0x1b   :  { %p5873_p10 = scmp.ne.s32.totalorder %s83_s17, %s5872_s3  ;;  %p5878_p12 = scmp.lt.s32.totalorder %s5872_s3, %s5872_s3 }
  0x1d   :  { %p5879_p13 = por %p5878_p12, %p5877_p11 }
  0x1f   :  { %p5880_p0 = pnand %p5879_p13, %p5873_p10 }
  0x21   :  { %5883 = shalt.err (!%p5880_p0)
}
  0x22   :  { %s5977_s23 = smov 64   ;;  %s5978_s24 = smov 4  }
  0x23   :  { %88 = dma.hbm_to_vmem [thread:$0]  %s6288_s7, 8192, %s83_s17, [#allocation12], %s5977_s23, %s5977_s23, %s5978_s24  }
  0x24   :  { %s5979_s27 = smov [#allocation3]   ;;  %s5980_s29 = smov [#allocation7]  }
  0x25   :  { %s28_s28 = sshll.u32 %s5979_s27, 4  ;;  %s51_s30 = sshll.u32 %s5980_s29, 4  ;;  %s29_s28 = int_to_ptr.vmem [resolvable:$true] %s28_s28  ;;  %s52_s30 = int_to_ptr.vmem [resolvable:$true] %s51_s30 }
  0x26   :  { %s5892_s5 = scalar_lea.vmem %s29_s28, 2048  ;;  %p5897_p2 = scmp.lt.s32.totalorder %s29_s28, %s29_s28 }
  0x27   :  { %p5893_p1 = scmp.ne.s32.totalorder %s29_s28, %s5892_s5  ;;  %p5898_p3 = scmp.lt.s32.totalorder %s5892_s5, %s5892_s5 }
  0x29   :  { %p5899_p4 = por %p5898_p3, %p5897_p2 }
  0x2b   :  { %p5900_p5 = pnand %p5899_p4, %p5893_p1 }
  0x2d   :  { %5903 = shalt.err (!%p5900_p5)
}
  0x2e   :  { %34 = dma.hbm_to_vmem [thread:$0]  %s6283_s2, 2048, %s29_s28, [#allocation4], %s5975_s19, %s5975_s19, %s5976_s20  }
  0x2f   :  { %s5912_s12 = scalar_lea.vmem %s52_s30, 128  ;;  %p5917_p7 = scmp.lt.s32.totalorder %s52_s30, %s52_s30 }
  0x30   :  { %p5913_p6 = scmp.ne.s32.totalorder %s52_s30, %s5912_s12  ;;  %p5918_p8 = scmp.lt.s32.totalorder %s5912_s12, %s5912_s12 }
  0x32   :  { %p5919_p9 = por %p5918_p8, %p5917_p7 }
  0x34   :  { %p5920_p10 = pnand %p5919_p9, %p5913_p6 }
  0x36   :  { %5923 = shalt.err (!%p5920_p10)
}
  0x37   :  { %54 = dma.hbm_to_vmem [thread:$0]  %s6285_s4, 128, %s52_s30, [#allocation6]  }
  0x38   :  { %s5981_s14 = smov [#allocation10]   ;;  %s5982_s16 = smov [#allocation13]  }
  0x39   :  { %s73_s15 = sshll.u32 %s5981_s14, 4  ;;  %s95_s17 = sshll.u32 %s5982_s16, 4  ;;  %s74_s15 = int_to_ptr.vmem [resolvable:$true] %s73_s15  ;;  %s96_s17 = int_to_ptr.vmem [resolvable:$true] %s95_s17 }
  0x3a   :  { %s5932_s18 = scalar_lea.vmem %s74_s15, 128  ;;  %p5937_p12 = scmp.lt.s32.totalorder %s74_s15, %s74_s15 }
  0x3b   :  { %p5933_p11 = scmp.ne.s32.totalorder %s74_s15, %s5932_s18  ;;  %p5938_p13 = scmp.lt.s32.totalorder %s5932_s18, %s5932_s18 }
  0x3d   :  { %p5939_p0 = por %p5938_p13, %p5937_p12 }
  0x3f   :  { %p5940_p1 = pnand %p5939_p0, %p5933_p11 }
  0x41   :  { %5943 = shalt.err (!%p5940_p1)
}
  0x42   :  { %76 = dma.hbm_to_vmem [thread:$0]  %s6287_s6, 128, %s74_s15, [#allocation9]  }
  0x43   :  { %s5952_s20 = scalar_lea.vmem %s96_s17, 16  ;;  %s5956_s4 = scalar_lea.vmem %s96_s17, 32 }
  0x44   :  { %p5953_p2 = scmp.ne.s32.totalorder %s96_s17, %s5952_s20  ;;  %p5957_p3 = scmp.lt.s32.totalorder %s96_s17, %s96_s17 }
  0x45   :  { %p5958_p4 = scmp.lt.s32.totalorder %s5956_s4, %s5952_s20 }
  0x47   :  { %p5959_p5 = por %p5958_p4, %p5957_p3 }
  0x49   :  { %p5960_p6 = pnand %p5959_p5, %p5953_p2 }
  0x4b   :  { %5963 = shalt.err (!%p5960_p6)
}
  0x4c   :  { %98 = dma.hbm_to_vmem [thread:$0]  %s6289_s8, 16, %s96_s17, [#allocation12]  }
  0x4d   :  { %5964 = dma.done.wait [#allocation4], 2048  }
  0x4e   :  { %5965 = vsyncadd [#allocation4], 4294965248 }
  0x4f   :  { %5966 = dma.done.wait [#allocation6], 256  }
  0x50   :  { %5967 = vsyncadd [#allocation6], 4294967040 }
  0x51   :  { %5968 = dma.done.wait [#allocation9], 65664  }
  0x52   :  { %5969 = vsyncadd [#allocation9], 4294901632 }
  0x53   :  { %5970 = dma.done.wait [#allocation12], 8208  }
  0x54   :  { %5971 = vsyncadd [#allocation12], 4294959088  ;;  %v5983_v0 = vmov 0   ;;  %v133_v1 = vld [vmem:[#allocation3 + $0x40] sm:$0xff]  ;;  %vm297_vm0 = vcmask 1045504   ;;  %v134_v3 = vld [vmem:[#allocation3 + $0x48] sm:$0xff] }
  0x55   :  { %354 = vmatprep.mubr.bf16.mxu0 %v5983_v0  ;;  %395 = vmatprep.mubr.bf16.mxu1 %v5983_v0  ;;  %v137_v2 = vld [vmem:[#allocation3 + $0x60] sm:$0x33]  ;;  %v138_v5 = vld [vmem:[#allocation3 + $0x68] sm:$0x33]  ;;  %v135_v16 = vld [vmem:[#allocation3 + $0x50] sm:$0xff]  ;;  %vm293_vm1 = vcmask 228352  }
  0x56   :  { %v5035_v4 = vcombine.high %v133_v1, %v137_v2  ;;  %v5034_v6 = vcombine.low %v133_v1, %v137_v2  ;;  %v125_v7 = vld [vmem:[#allocation3] sm:$0xff]  ;;  %v5037_v9 = vcombine.high %v134_v3, %v138_v5  ;;  %v5036_v10 = vcombine.low %v134_v3, %v138_v5  ;;  %v126_v12 = vld [vmem:[#allocation3 + $0x8] sm:$0xff]  ;;  %v139_v17 = vld [vmem:[#allocation3 + $0x70] sm:$0x33] }
  0x57   :  { %v129_v8 = vld [vmem:[#allocation3 + $0x20] sm:$0xff]  ;;  %v130_v13 = vld [vmem:[#allocation3 + $0x28] sm:$0xff]  ;;  %v136_v18 = vld [vmem:[#allocation3 + $0x58] sm:$0xff]  ;;  %v5039_v24 = vcombine.high %v135_v16, %v139_v17  ;;  %v5038_v25 = vcombine.low %v135_v16, %v139_v17 }
  0x58   :  { %v5027_v11 = vcombine.high %v125_v7, %v129_v8  ;;  %5042 = vmatprep.subr.msk.bf16.mxu0 %vm297_vm0, %v5035_v4  ;;  %v299_v14 = vsel %vm297_vm0, %v5034_v6, 0  ;;  %v5029_v15 = vcombine.high %v126_v12, %v130_v13  ;;  %5044 = vmatprep.subr.msk.bf16.mxu1 %vm297_vm0, %v5037_v9  ;;  %v305_v19 = vsel %vm297_vm0, %v5036_v10, 0  ;;  %v123_v21 = vld [vmem:[%s6282_s1] sm:$0xff]  ;;  %v140_v22 = vld [vmem:[#allocation3 + $0x78] sm:$0x33]  ;;  %v127_v28 = vld [vmem:[#allocation3 + $0x10] sm:$0xff] }
  0x59   :  { %335 = vmatpush1.bf16.msra.mxu0 %v299_v14  ;;  %v5026_v20 = vcombine.low %v125_v7, %v129_v8  ;;  %376 = vmatpush1.bf16.msra.mxu1 %v305_v19  ;;  %v5028_v23 = vcombine.low %v126_v12, %v130_v13  ;;  %v5041_v26 = vcombine.high %v136_v18, %v140_v22  ;;  %v131_v29 = vld [vmem:[#allocation3 + $0x30] sm:$0xff]  ;;  %v128_v31 = vld [vmem:[#allocation3 + $0x18] sm:$0xff]  ;;  %v311_v33 = vsel %vm297_vm0, %v5038_v25, 0 }
  0x5a   :  { %336 = vmatprep.subr.bf16.mxu0 %v5027_v11  ;;  %377 = vmatprep.subr.bf16.mxu1 %v5029_v15  ;;  %v5040_v27 = vcombine.low %v136_v18, %v140_v22  ;;  %v124_v30 = vpack.c.bf16 %v123_v21, %v123_v21  ;;  %v132_v32 = vld [vmem:[#allocation3 + $0x38] sm:$0xff]  ;;  %v5031_v34 = vcombine.high %v127_v28, %v131_v29  ;;  %v608_v37 = vld [vmem:[#allocation8 + $0x1c0] sm:$0xff] }
  0x5b   :  { %v5033_v36 = vcombine.high %v128_v31, %v132_v32  ;;  %v612_v38 = vld [vmem:[#allocation8 + $0x1e0] sm:$0xff]  ;;  %v5030_v41 = vcombine.low %v127_v28, %v131_v29  ;;  %v5032_v42 = vcombine.low %v128_v31, %v132_v32 }
  0x5c   :  { %v317_v35 = vsel %vm297_vm0, %v5040_v27, 0  ;;  %v736_v39 = vld [vmem:[#allocation8 + $0x5c0] sm:$0xff]  ;;  %v5107_v43 = vcombine.high %v608_v37, %v612_v38  ;;  %v5106_v49 = vcombine.low %v608_v37, %v612_v38 }
  0x5d   :  { %337 = vmatpush1.bf16.msra.mxu0 %v5026_v20  ;;  %378 = vmatpush1.bf16.msra.mxu1 %v5028_v23  ;;  %v740_v40 = vld [vmem:[#allocation8 + $0x5e0] sm:$0xff] }
  0x5e   :  { %5046 = vmatprep.subr.msk.bf16.mxu0 %vm297_vm0, %v5039_v24  ;;  %5048 = vmatprep.subr.msk.bf16.mxu1 %vm297_vm0, %v5041_v26  ;;  %v5235_v44 = vcombine.high %v736_v39, %v740_v40  ;;  %v600_v45 = vld [vmem:[#allocation8 + $0x180] sm:$0xff]  ;;  %v5234_v50 = vcombine.low %v736_v39, %v740_v40 }
  0x5f   :  { %v604_v46 = vld [vmem:[#allocation8 + $0x1a0] sm:$0xff] }
  0x60   :  { %5043 = vmatmul.mubr.msk.bf16.vlgmr.msra.gmra.mxu0 %vm293_vm1, %v124_v30  ;;  %5045 = vmatmul.mubr.msk.bf16.vlgmr.msra.gmra.mxu1 %vm293_vm1, %v124_v30  ;;  %v728_v47 = vld [vmem:[#allocation8 + $0x580] sm:$0xff]  ;;  %v5099_v51 = vcombine.high %v600_v45, %v604_v46  ;;  %v5098_v57 = vcombine.low %v600_v45, %v604_v46 }
  0x61   :  { %417 = vmatpush1.bf16.msra.mxu0 %v311_v33  ;;  %458 = vmatpush1.bf16.msra.mxu1 %v317_v35  ;;  %v732_v48 = vld [vmem:[#allocation8 + $0x5a0] sm:$0xff] }
  0x62   :  { %418 = vmatprep.subr.bf16.mxu0 %v5031_v34  ;;  %459 = vmatprep.subr.bf16.mxu1 %v5033_v36  ;;  %v5227_v52 = vcombine.high %v728_v47, %v732_v48  ;;  %v592_v53 = vld [vmem:[#allocation8 + $0x140] sm:$0xff]  ;;  %v5226_v60 = vcombine.low %v728_v47, %v732_v48 }
  0x63   :  { %436 = vmatprep.mubr.bf16.mxu0 %v5983_v0  ;;  %477 = vmatprep.mubr.bf16.mxu1 %v5983_v0  ;;  %v596_v54 = vld [vmem:[#allocation8 + $0x160] sm:$0xff] }
  0x64   :  { %v720_v55 = vld [vmem:[#allocation8 + $0x540] sm:$0xff]  ;;  %v5091_v61 = vcombine.high %v592_v53, %v596_v54  ;;  %v5090_v1 = vcombine.low %v592_v53, %v596_v54 }
  0x65   :  { %419 = vmatpush1.bf16.msra.mxu0 %v5030_v41  ;;  %460 = vmatpush1.bf16.msra.mxu1 %v5032_v42  ;;  %v724_v56 = vld [vmem:[#allocation8 + $0x560] sm:$0xff] }
  0x66   :  { %3666 = vmatprep.subr.bf16.mxu0 %v5107_v43  ;;  %3707 = vmatprep.subr.bf16.mxu1 %v5235_v44  ;;  %v584_v58 = vld [vmem:[#allocation8 + $0x100] sm:$0xff]  ;;  %v5219_v0 = vcombine.high %v720_v55, %v724_v56  ;;  %v5218_v4 = vcombine.low %v720_v55, %v724_v56 }
  0x67   :  { %v588_v59 = vld [vmem:[#allocation8 + $0x120] sm:$0xff] }
  0x68   :  { %5047 = vmatmul.mubr.msk.bf16.vlgmr.msra.gmra.mxu0 %vm293_vm1, %v124_v30  ;;  %5049 = vmatmul.mubr.msk.bf16.vlgmr.msra.gmra.mxu1 %vm293_vm1, %v124_v30  ;;  %v712_v62 = vld [vmem:[#allocation8 + $0x500] sm:$0xff]  ;;  %v5083_v5 = vcombine.high %v584_v58, %v588_v59  ;;  %v5082_v9 = vcombine.low %v584_v58, %v588_v59 }
  0x69   :  { %3667 = vmatpush1.bf16.msra.mxu0 %v5106_v49  ;;  %3708 = vmatpush1.bf16.msra.mxu1 %v5234_v50  ;;  %v716_v63 = vld [vmem:[#allocation8 + $0x520] sm:$0xff] }
  0x6a   :  { %3668 = vmatprep.subr.bf16.mxu0 %v5099_v51  ;;  %3709 = vmatprep.subr.bf16.mxu1 %v5227_v52  ;;  %v576_v2 = vld [vmem:[#allocation8 + $0xc0] sm:$0xff]  ;;  %v5211_v8 = vcombine.high %v712_v62, %v716_v63  ;;  %v5210_v12 = vcombine.low %v712_v62, %v716_v63 }
  0x6b   :  { %v580_v3 = vld [vmem:[#allocation8 + $0xe0] sm:$0xff] }
  0x6c   :  { %v704_v6 = vld [vmem:[#allocation8 + $0x4c0] sm:$0xff]  ;;  %v5075_v13 = vcombine.high %v576_v2, %v580_v3  ;;  %v5074_v17 = vcombine.low %v576_v2, %v580_v3 }
  0x6d   :  { %3669 = vmatpush1.bf16.msra.mxu0 %v5098_v57  ;;  %3710 = vmatpush1.bf16.msra.mxu1 %v5226_v60  ;;  %v708_v7 = vld [vmem:[#allocation8 + $0x4e0] sm:$0xff] }
  0x6e   :  { %3670 = vmatprep.subr.bf16.mxu0 %v5091_v61  ;;  %3711 = vmatprep.subr.bf16.mxu1 %v5219_v0  ;;  %v568_v10 = vld [vmem:[#allocation8 + $0x80] sm:$0xff]  ;;  %v5203_v16 = vcombine.high %v704_v6, %v708_v7  ;;  %v5202_v20 = vcombine.low %v704_v6, %v708_v7 }
  0x6f   :  { %v572_v11 = vld [vmem:[#allocation8 + $0xa0] sm:$0xff] }
  0x70   :  { %v696_v14 = vld [vmem:[#allocation8 + $0x480] sm:$0xff]  ;;  %v5067_v21 = vcombine.high %v568_v10, %v572_v11  ;;  %v5066_v25 = vcombine.low %v568_v10, %v572_v11 }
  0x71   :  { %3671 = vmatpush1.bf16.msra.mxu0 %v5090_v1  ;;  %3712 = vmatpush1.bf16.msra.mxu1 %v5218_v4  ;;  %v700_v15 = vld [vmem:[#allocation8 + $0x4a0] sm:$0xff] }
  0x72   :  { %3672 = vmatprep.subr.bf16.mxu0 %v5083_v5  ;;  %3713 = vmatprep.subr.bf16.mxu1 %v5211_v8  ;;  %v560_v18 = vld [vmem:[#allocation8 + $0x40] sm:$0xff]  ;;  %v5195_v24 = vcombine.high %v696_v14, %v700_v15  ;;  %v5194_v28 = vcombine.low %v696_v14, %v700_v15 }
  0x73   :  { %v564_v19 = vld [vmem:[#allocation8 + $0x60] sm:$0xff] }
  0x74   :  { %v688_v22 = vld [vmem:[#allocation8 + $0x440] sm:$0xff]  ;;  %v5059_v29 = vcombine.high %v560_v18, %v564_v19  ;;  %v5058_v33 = vcombine.low %v560_v18, %v564_v19 }
  0x75   :  { %3673 = vmatpush1.bf16.msra.mxu0 %v5082_v9  ;;  %3714 = vmatpush1.bf16.msra.mxu1 %v5210_v12  ;;  %v692_v23 = vld [vmem:[#allocation8 + $0x460] sm:$0xff] }
  0x76   :  { %3674 = vmatprep.subr.bf16.mxu0 %v5075_v13  ;;  %3715 = vmatprep.subr.bf16.mxu1 %v5203_v16  ;;  %v552_v26 = vld [vmem:[#allocation8] sm:$0xff]  ;;  %v5187_v32 = vcombine.high %v688_v22, %v692_v23  ;;  %v5186_v36 = vcombine.low %v688_v22, %v692_v23 }
  0x77   :  { %v556_v27 = vld [vmem:[#allocation8 + $0x20] sm:$0xff] }
  0x78   :  { %v680_v30 = vld [vmem:[#allocation8 + $0x400] sm:$0xff]  ;;  %v5051_v37 = vcombine.high %v552_v26, %v556_v27  ;;  %v5050_v41 = vcombine.low %v552_v26, %v556_v27 }
  0x79   :  { %3675 = vmatpush1.bf16.msra.mxu0 %v5074_v17  ;;  %3716 = vmatpush1.bf16.msra.mxu1 %v5202_v20  ;;  %v684_v31 = vld [vmem:[#allocation8 + $0x420] sm:$0xff] }
  0x7a   :  { %3676 = vmatprep.subr.bf16.mxu0 %v5067_v21  ;;  %3717 = vmatprep.subr.bf16.mxu1 %v5195_v24  ;;  %v672_v34 = vld [vmem:[#allocation8 + $0x3c0] sm:$0xff]  ;;  %v5179_v40 = vcombine.high %v680_v30, %v684_v31  ;;  %v5178_v44 = vcombine.low %v680_v30, %v684_v31 }
  0x7b   :  { %v676_v35 = vld [vmem:[#allocation8 + $0x3e0] sm:$0xff] }
  0x7c   :  { %v800_v38 = vld [vmem:[#allocation8 + $0x7c0] sm:$0xff]  ;;  %v5171_v45 = vcombine.high %v672_v34, %v676_v35  ;;  %v5170_v49 = vcombine.low %v672_v34, %v676_v35 }
  0x7d   :  { %3677 = vmatpush1.bf16.msra.mxu0 %v5066_v25  ;;  %3718 = vmatpush1.bf16.msra.mxu1 %v5194_v28  ;;  %v804_v39 = vld [vmem:[#allocation8 + $0x7e0] sm:$0xff] }
  0x7e   :  { %3678 = vmatprep.subr.bf16.mxu0 %v5059_v29  ;;  %3719 = vmatprep.subr.bf16.mxu1 %v5187_v32  ;;  %v664_v42 = vld [vmem:[#allocation8 + $0x380] sm:$0xff]  ;;  %v5299_v48 = vcombine.high %v800_v38, %v804_v39  ;;  %v5298_v52 = vcombine.low %v800_v38, %v804_v39 }
  0x7f   :  { %v668_v43 = vld [vmem:[#allocation8 + $0x3a0] sm:$0xff] }
  0x80   :  { %v792_v46 = vld [vmem:[#allocation8 + $0x780] sm:$0xff]  ;;  %v5163_v53 = vcombine.high %v664_v42, %v668_v43  ;;  %v5162_v57 = vcombine.low %v664_v42, %v668_v43 }
  0x81   :  { %3679 = vmatpush1.bf16.msra.mxu0 %v5058_v33  ;;  %3720 = vmatpush1.bf16.msra.mxu1 %v5186_v36  ;;  %v796_v47 = vld [vmem:[#allocation8 + $0x7a0] sm:$0xff] }
  0x82   :  { %3680 = vmatprep.subr.bf16.mxu0 %v5051_v37  ;;  %3721 = vmatprep.subr.bf16.mxu1 %v5179_v40  ;;  %v656_v50 = vld [vmem:[#allocation8 + $0x340] sm:$0xff]  ;;  %v5291_v56 = vcombine.high %v792_v46, %v796_v47  ;;  %v5290_v58 = vcombine.low %v792_v46, %v796_v47  ;;  %v149_v47 = vlaneseq }
  0x83   :  { %v660_v51 = vld [vmem:[#allocation8 + $0x360] sm:$0xff] }
  0x84   :  { %v784_v54 = vld [vmem:[#allocation8 + $0x740] sm:$0xff]  ;;  %v5155_v59 = vcombine.high %v656_v50, %v660_v51  ;;  %v5154_v61 = vcombine.low %v656_v50, %v660_v51  ;;  %v6090_v50 = vshrl.u32 %v149_v47, 7  ;;  %v144_v51 = vstv %s6281_s0 }
  0x85   :  { %3681 = vmatpush1.bf16.msra.mxu0 %v5050_v41  ;;  %3722 = vmatpush1.bf16.msra.mxu1 %v5178_v44  ;;  %v788_v55 = vld [vmem:[#allocation8 + $0x760] sm:$0xff] }
  0x86   :  { %3682 = vmatprep.subr.bf16.mxu0 %v5171_v45  ;;  %3723 = vmatprep.subr.bf16.mxu1 %v5299_v48  ;;  %v5283_v60 = vcombine.high %v784_v54, %v788_v55  ;;  %v5282_v62 = vcombine.low %v784_v54, %v788_v55  ;;  %v648_v63 = vld [vmem:[#allocation8 + $0x300] sm:$0xff]  ;;  %v141_v48 = vld [vmem:[#allocation5] sm:$0xff]  ;;  %v6099_v54 = vsub.s32 4, %v6090_v50  ;;  %v6102_v55 = vsub.s32 2, %v6090_v50 }
  0x87   :  { %v652_v0 = vld [vmem:[#allocation8 + $0x320] sm:$0xff] }
  0x88   :  { %v776_v1 = vld [vmem:[#allocation8 + $0x700] sm:$0xff]  ;;  %v5146_v3 = vcombine.low %v648_v63, %v652_v0  ;;  %v5147_v4 = vcombine.high %v648_v63, %v652_v0  ;;  %v494_v0 = vsub.s32 1, %v6090_v50 }
  0x89   :  { %3683 = vmatpush2.bf16.msra.mxu0 %v5170_v49  ;;  %3724 = vmatpush2.bf16.msra.mxu1 %v5298_v52  ;;  %v780_v2 = vld [vmem:[#allocation8 + $0x720] sm:$0xff]  ;;  %v142_v49 = vunpack.c.l.bf16 %v141_v48 }
  0x8a   :  { %3684 = vmatprep.subr.bf16.mxu0 %v5163_v53  ;;  %3725 = vmatprep.subr.bf16.mxu1 %v5291_v56  ;;  %v5274_v5 = vcombine.low %v776_v1, %v780_v2  ;;  %v5275_v6 = vcombine.high %v776_v1, %v780_v2  ;;  %v640_v7 = vld [vmem:[#allocation8 + $0x2c0] sm:$0xff]  ;;  %v6096_v53 = vsub.s32 0, %v6090_v50  ;;  %v6105_v56 = vsub.s32 6, %v6090_v50 }
  0x8b   :  { %v644_v8 = vld [vmem:[#allocation8 + $0x2e0] sm:$0xff]  ;;  %v145_v52 = vmul.f32 %v144_v51, %v142_v49  ;;  %v502_v2 = vsub.s32 3, %v6090_v50 }
  0x8c   :  { %v768_v9 = vld [vmem:[#allocation8 + $0x6c0] sm:$0xff]  ;;  %v5139_v10 = vcombine.high %v640_v7, %v644_v8  ;;  %v5138_v12 = vcombine.low %v640_v7, %v644_v8 }
  0x8d   :  { %3685 = vmatpush2.bf16.msra.mxu0 %v5162_v57  ;;  %3726 = vmatpush2.bf16.msra.mxu1 %v5290_v58  ;;  %v772_v11 = vld [vmem:[#allocation8 + $0x6e0] sm:$0xff]  ;;  %v152_v57 = vrot.slane %v145_v52, %v6096_v53  ;;  %v160_v58 = vrot.slane %v145_v52, %v6099_v54 }
  0x8e   :  { %3686 = vmatprep.subr.bf16.mxu0 %v5155_v59  ;;  %3727 = vmatprep.subr.bf16.mxu1 %v5283_v60  ;;  %v5266_v13 = vcombine.low %v768_v9, %v772_v11  ;;  %v5267_v14 = vcombine.high %v768_v9, %v772_v11  ;;  %v632_v15 = vld [vmem:[#allocation8 + $0x280] sm:$0xff]  ;;  %v156_v59 = vrot.slane %v145_v52, %v6102_v55  ;;  %v143_v60 = vunpack.c.h.bf16 %v141_v48 }
  0x8f   :  { %v636_v16 = vld [vmem:[#allocation8 + $0x2a0] sm:$0xff]  ;;  %v192_v63 = vrot.slane %v152_v57, %v6096_v53  ;;  %v200_v1 = vrot.slane %v160_v58, %v6096_v53 }
  0x90   :  { %v760_v17 = vld [vmem:[#allocation8 + $0x680] sm:$0xff]  ;;  %v5131_v18 = vcombine.high %v632_v15, %v636_v16  ;;  %v5130_v20 = vcombine.low %v632_v15, %v636_v16 }
  0x91   :  { %3687 = vmatpush2.bf16.msra.mxu0 %v5154_v61  ;;  %3728 = vmatpush2.bf16.msra.mxu1 %v5282_v62  ;;  %v764_v19 = vld [vmem:[#allocation8 + $0x6a0] sm:$0xff]  ;;  %v6110_v61 = vld [vmem:[#allocation7] sm:$0xff]  ;;  %v164_v62 = vrot.slane %v145_v52, %v6105_v56 }
  0x92   :  { %3688 = vmatprep.subr.bf16.mxu0 %v5147_v4  ;;  %3729 = vmatprep.subr.bf16.mxu1 %v5275_v6  ;;  %v5258_v21 = vcombine.low %v760_v17, %v764_v19  ;;  %v5259_v22 = vcombine.high %v760_v17, %v764_v19  ;;  %v624_v23 = vld [vmem:[#allocation8 + $0x240] sm:$0xff]  ;;  %v196_v4 = vrot.slane %v156_v59, %v6096_v53 }
  0x93   :  { %v628_v24 = vld [vmem:[#allocation8 + $0x260] sm:$0xff]  ;;  %v499_v7 = vrot.slane %v6110_v61, %v6102_v55  ;;  %v204_v8 = vrot.slane %v164_v62, %v6096_v53  ;;  %v495_v11 = vrot.slane %v6110_v61, %v494_v0 }
  0x94   :  { %v752_v25 = vld [vmem:[#allocation8 + $0x640] sm:$0xff]  ;;  %v5123_v26 = vcombine.high %v624_v23, %v628_v24  ;;  %v5122_v28 = vcombine.low %v624_v23, %v628_v24 }
  0x95   :  { %3689 = vmatpush2.bf16.msra.mxu0 %v5146_v3  ;;  %3730 = vmatpush2.bf16.msra.mxu1 %v5274_v5  ;;  %v756_v27 = vld [vmem:[#allocation8 + $0x660] sm:$0xff]  ;;  %v491_v3 = vrot.slane %v6110_v61, %v6096_v53  ;;  %v6120_v5 = vmul.f32 %v144_v51, %v143_v60 }
  0x96   :  { %3690 = vmatprep.subr.bf16.mxu0 %v5139_v10  ;;  %3731 = vmatprep.subr.bf16.mxu1 %v5267_v14  ;;  %v5250_v29 = vcombine.low %v752_v25, %v756_v27  ;;  %v5251_v30 = vcombine.high %v752_v25, %v756_v27  ;;  %v616_v31 = vld [vmem:[#allocation8 + $0x200] sm:$0xff]  ;;  %v503_v14 = vrot.slane %v6110_v61, %v502_v2  ;;  %v510_v25 = vsub.s32 5, %v6090_v50 }
  0x97   :  { %v620_v32 = vld [vmem:[#allocation8 + $0x220] sm:$0xff] }
  0x98   :  { %v744_v33 = vld [vmem:[#allocation8 + $0x600] sm:$0xff]  ;;  %v5115_v34 = vcombine.high %v616_v31, %v620_v32  ;;  %v5114_v36 = vcombine.low %v616_v31, %v620_v32 }
  0x99   :  { %3691 = vmatpush2.bf16.msra.mxu0 %v5138_v12  ;;  %3732 = vmatpush2.bf16.msra.mxu1 %v5266_v13  ;;  %v748_v35 = vld [vmem:[#allocation8 + $0x620] sm:$0xff] }
  0x9a   :  { %3692 = vmatprep.subr.bf16.mxu0 %v5131_v18  ;;  %3733 = vmatprep.subr.bf16.mxu1 %v5259_v22  ;;  %v5242_v37 = vcombine.low %v744_v33, %v748_v35  ;;  %v5243_v38 = vcombine.high %v744_v33, %v748_v35  ;;  %v6074_v39 = vld [vmem:[#allocation8 + $0x9c0] sm:$0xff]  ;;  %v172_v18 = vrot.slane %v6120_v5, %v6102_v55 }
  0x9b   :  { %v6076_v40 = vld [vmem:[#allocation8 + $0x9e0] sm:$0xff]  ;;  %v180_v22 = vrot.slane %v6120_v5, %v6105_v56  ;;  %v511_v33 = vrot.slane %v6110_v61, %v510_v25 }
  0x9c   :  { %v6078_v41 = vld [vmem:[#allocation8 + $0xdc0] sm:$0xff]  ;;  %v5363_v42 = vcombine.high %v6074_v39, %v6076_v40  ;;  %v5362_v44 = vcombine.low %v6074_v39, %v6076_v40 }
  0x9d   :  { %3693 = vmatpush2.bf16.msra.mxu0 %v5130_v20  ;;  %3734 = vmatpush2.bf16.msra.mxu1 %v5258_v21  ;;  %v6082_v43 = vld [vmem:[#allocation8 + $0xde0] sm:$0xff]  ;;  %v220_v32 = vrot.slane %v180_v22, %v6096_v53 }
  0x9e   :  { %3694 = vmatprep.subr.bf16.mxu0 %v5123_v26  ;;  %3735 = vmatprep.subr.bf16.mxu1 %v5251_v30  ;;  %v5490_v45 = vcombine.low %v6078_v41, %v6082_v43  ;;  %v5491_v46 = vcombine.high %v6078_v41, %v6082_v43  ;;  %v212_v30 = vrot.slane %v172_v18, %v6096_v53  ;;  %v856_v59 = vld [vmem:[#allocation8 + $0x980] sm:$0xff] }
  0x9f   :  { %v860_v60 = vld [vmem:[#allocation8 + $0x9a0] sm:$0xff] }
  0xa0   :  { %v968_v22 = vld [vmem:[#allocation8 + $0xd00] sm:$0xff] }
  0xa1   :  { %3695 = vmatpush2.bf16.msra.mxu0 %v5122_v28  ;;  %3736 = vmatpush2.bf16.msra.mxu1 %v5250_v29  ;;  %v518_v28 = vsub.s32 7, %v6090_v50 }
  0xa2   :  { %3696 = vmatprep.subr.bf16.mxu0 %v5115_v34  ;;  %3737 = vmatprep.subr.bf16.mxu1 %v5243_v38 }
  0xa5   :  { %3697 = vmatpush2.bf16.msra.mxu0 %v5114_v36  ;;  %3738 = vmatpush2.bf16.msra.mxu1 %v5242_v37  ;;  %v519_v36 = vrot.slane %v6110_v61, %v518_v28 }
  0xa6   :  { %3748 = vmatprep.subr.bf16.mxu0 %v5363_v42  ;;  %3789 = vmatprep.subr.bf16.mxu1 %v5491_v46 }
 0x120   :  { %v356_v6 = vpop.f32.mrf.mxu0  ;;  %v397_v10 = vpop.f32.mrf.mxu1 }
 0x121   :  { %v357_v9 = vadd.f32 %v356_v6, %v192_v63  ;;  %v398_v12 = vadd.f32 %v397_v10, %v200_v1  ;;  %v984_v63 = vld [vmem:[#allocation8 + $0xd80] sm:$0xff] }
 0x122   :  { %v358_v13 = vpop.f32.mrf.mxu0  ;;  %v399_v17 = vpop.f32.mrf.mxu1  ;;  %v988_v1 = vld [vmem:[#allocation8 + $0xda0] sm:$0xff] }
 0x123   :  { %v528_v15 = vadd.f32 %v491_v3, %v357_v9  ;;  %v359_v16 = vadd.f32 %v358_v13, %v196_v4  ;;  %v530_v19 = vadd.f32 %v499_v7, %v398_v12  ;;  %v400_v20 = vadd.f32 %v399_v17, %v204_v8  ;;  %v852_v12 = vld [vmem:[#allocation8 + $0x960] sm:$0xff] }
 0x124   :  { %v360_v21 = vpop.f32.mrf.mxu0  ;;  %v401_v24 = vpop.f32.mrf.mxu1  ;;  %v5355_v9 = vcombine.high %v856_v59, %v860_v60  ;;  %v5483_v10 = vcombine.high %v984_v63, %v988_v1  ;;  %v976_v13 = vld [vmem:[#allocation8 + $0xd40] sm:$0xff] }
 0x125   :  { %5791 = vtanh.f32 %v528_v15  ;;  %v529_v23 = vadd.f32 %v495_v11, %v359_v16  ;;  %v531_v26 = vadd.f32 %v503_v14, %v400_v20  ;;  %v848_v11 = vld [vmem:[#allocation8 + $0x940] sm:$0xff]  ;;  %v5354_v15 = vcombine.low %v856_v59, %v860_v60 }
 0x126   :  { %5793 = vtanh.f32 %v530_v19  ;;  %v361_v27 = vpop.f32.mrf.mxu0  ;;  %v402_v29 = vpop.f32.mrf.mxu1  ;;  %v980_v14 = vld [vmem:[#allocation8 + $0xd60] sm:$0xff]  ;;  %v5482_v16 = vcombine.low %v984_v63, %v988_v1  ;;  %v5347_v17 = vcombine.high %v848_v11, %v852_v12 }
 0x127   :  { %5795 = vtanh.f32 %v529_v23  ;;  %v5475_v18 = vcombine.high %v976_v13, %v980_v14  ;;  %v840_v19 = vld [vmem:[#allocation8 + $0x900] sm:$0xff]  ;;  %v5474_v40 = vcombine.low %v976_v13, %v980_v14 }
 0x128   :  { %5797 = vtanh.f32 %v531_v26  ;;  %v6138_v31 = vpop.f32.mrf.mxu0  ;;  %v6144_v34 = vpop.f32.mrf.mxu1  ;;  %v844_v20 = vld [vmem:[#allocation8 + $0x920] sm:$0xff]  ;;  %v5346_v26 = vcombine.low %v848_v11, %v852_v12 }
 0x129   :  { %v972_v23 = vld [vmem:[#allocation8 + $0xd20] sm:$0xff]  ;;  %v5339_v41 = vcombine.high %v840_v19, %v844_v20 }
 0x12a   :  { %v440_v35 = vpop.f32.mrf.mxu0  ;;  %v481_v38 = vpop.f32.mrf.mxu1  ;;  %v836_v27 = vld [vmem:[#allocation8 + $0x8e0] sm:$0xff] }
 0x12b   :  { %v441_v37 = vadd.f32 %v440_v35, %v212_v30  ;;  %v482_v46 = vadd.f32 %v481_v38, %v220_v32  ;;  %v960_v29 = vld [vmem:[#allocation8 + $0xcc0] sm:$0xff]  ;;  %v5338_v32 = vcombine.low %v840_v19, %v844_v20 }
 0x12c   :  { %v442_v42 = vpop.f32.mrf.mxu0  ;;  %v483_v48 = vpop.f32.mrf.mxu1  ;;  %v964_v30 = vld [vmem:[#allocation8 + $0xce0] sm:$0xff] }
 0x12d   :  { %v533_v47 = vadd.f32 %v511_v33, %v441_v37  ;;  %v535_v49 = vadd.f32 %v519_v36, %v482_v46  ;;  %v5466_v33 = vcombine.low %v968_v22, %v972_v23  ;;  %v5459_v36 = vcombine.high %v960_v29, %v964_v30  ;;  %v824_v37 = vld [vmem:[#allocation8 + $0x880] sm:$0xff] }
 0x12e   :  { %v443_v51 = vpop.f32.mrf.mxu0  ;;  %v484_v52 = vpop.f32.mrf.mxu1  ;;  %v828_v38 = vld [vmem:[#allocation8 + $0x8a0] sm:$0xff]  ;;  %v5458_v48 = vcombine.low %v960_v29, %v964_v30  ;;  %v168_v29 = vrot.slane %v6120_v5, %v6096_v53 }
 0x12f   :  { %5799 = vtanh.f32 %v533_v47  ;;  %v952_v42 = vld [vmem:[#allocation8 + $0xc80] sm:$0xff]  ;;  %v5322_v60 = vcombine.low %v824_v37, %v828_v38 }
 0x130   :  { %5801 = vtanh.f32 %v535_v49  ;;  %v956_v46 = vld [vmem:[#allocation8 + $0xca0] sm:$0xff]  ;;  %v5323_v49 = vcombine.high %v824_v37, %v828_v38 }
 0x131   :  { %v5451_v51 = vcombine.high %v952_v42, %v956_v46  ;;  %v816_v52 = vld [vmem:[#allocation8 + $0x840] sm:$0xff] }
 0x132   :  { %v5792_v57 = vpop.eup %5791  ;;  %v948_v59 = vld [vmem:[#allocation8 + $0xc60] sm:$0xff] }
 0x133   :  { %v5794_v58 = vpop.eup %5793  ;;  %v6153_v7 = vpack.c.bf16 %v5792_v57, %v5792_v57  ;;  %v820_v57 = vld [vmem:[#allocation8 + $0x860] sm:$0xff] }
 0x134   :  { %v5796_v62 = vpop.eup %5795  ;;  %v6149_v4 = vpack.c.bf16 %v5794_v58, %v5794_v58  ;;  %v944_v58 = vld [vmem:[#allocation8 + $0xc40] sm:$0xff]  ;;  %v5315_v63 = vcombine.high %v816_v52, %v820_v57  ;;  %v5314_v12 = vcombine.low %v816_v52, %v820_v57 }
 0x135   :  { %v5798_v3 = vpop.eup %5797  ;;  %v6151_v6 = vpack.c.bf16 %v5796_v62, %v5796_v62  ;;  %v5450_v62 = vcombine.low %v952_v42, %v956_v46  ;;  %v5443_v1 = vcombine.high %v944_v58, %v948_v59  ;;  %v940_v11 = vld [vmem:[#allocation8 + $0xc20] sm:$0xff]  ;;  %v5442_v13 = vcombine.low %v944_v58, %v948_v59 }
 0x136   :  { %v6155_v8 = vpack.c.bf16 %v5798_v3, %v5798_v3  ;;  %v808_v3 = vld [vmem:[#allocation8 + $0x800] sm:$0xff]  ;;  %v208_v46 = vrot.slane %v168_v29, %v6096_v53  ;;  %v507_v58 = vrot.slane %v6110_v61, %v6099_v54 }
 0x137   :  { %3698 = vmatprep.mubr.bf16.mxu0 %v6151_v6  ;;  %v1060_v19 = vld [vmem:[#allocation8 + $0xfe0] sm:$0xff] }
 0x138   :  { %3739 = vmatprep.mubr.bf16.mxu1 %v6155_v8  ;;  %3699 = vmatmul.mubr.bf16.vlgmr.msra.gmra.mxu0 %v6153_v7  ;;  %v1044_v37 = vld [vmem:[#allocation8 + $0xf60] sm:$0xff] }
 0x139   :  { %3740 = vmatmul.mubr.bf16.vlgmr.msra.gmra.mxu1 %v6149_v4  ;;  %3749 = vmatpush1.bf16.msra.mxu0 %v5362_v44  ;;  %v5467_v44 = vcombine.high %v968_v22, %v972_v23  ;;  %v1032_v52 = vld [vmem:[#allocation8 + $0xf00] sm:$0xff] }
 0x13a   :  { %3790 = vmatpush1.bf16.msra.mxu1 %v5490_v45  ;;  %3750 = vmatprep.subr.bf16.mxu0 %v5355_v9  ;;  %v832_v45 = vld [vmem:[#allocation8 + $0x8c0] sm:$0xff] }
 0x13b   :  { %3791 = vmatprep.subr.bf16.mxu1 %v5483_v10  ;;  %v5331_v35 = vcombine.high %v832_v45, %v836_v27  ;;  %v5330_v47 = vcombine.low %v832_v45, %v836_v27  ;;  %v812_v9 = vld [vmem:[#allocation8 + $0x820] sm:$0xff]  ;;  %v176_v45 = vrot.slane %v6120_v5, %v6099_v54 }
 0x13c   :  { %v5800_v21 = vpop.eup %5799  ;;  %v936_v10 = vld [vmem:[#allocation8 + $0xc00] sm:$0xff]  ;;  %v5307_v14 = vcombine.high %v808_v3, %v812_v9  ;;  %v5306_v20 = vcombine.low %v808_v3, %v812_v9 }
 0x13d   :  { %v5802_v24 = vpop.eup %5801  ;;  %3751 = vmatpush1.bf16.msra.mxu0 %v5354_v15  ;;  %v6167_v39 = vpack.c.bf16 %v5800_v21, %v5800_v21  ;;  %v5435_v15 = vcombine.high %v936_v10, %v940_v11  ;;  %v5434_v21 = vcombine.low %v936_v10, %v940_v11  ;;  %v216_v42 = vrot.slane %v176_v45, %v6096_v53  ;;  %v904_v5 = vld [vmem:[#allocation8 + $0xb00] sm:$0xff] }
 0x13e   :  { %3792 = vmatpush1.bf16.msra.mxu1 %v5482_v16  ;;  %3752 = vmatprep.subr.bf16.mxu0 %v5347_v17  ;;  %v6169_v43 = vpack.c.bf16 %v5802_v24, %v5802_v24  ;;  %v928_v16 = vld [vmem:[#allocation8 + $0xbc0] sm:$0xff] }
 0x13f   :  { %3793 = vmatprep.subr.bf16.mxu1 %v5475_v18  ;;  %3780 = vmatprep.mubr.bf16.mxu0 %v6167_v39  ;;  %v932_v17 = vld [vmem:[#allocation8 + $0xbe0] sm:$0xff]  ;;  %v480_v59 = vadd.f32 %v6144_v34, %v216_v42 }
 0x140   :  { %3821 = vmatprep.mubr.bf16.mxu1 %v6169_v43  ;;  %v1056_v18 = vld [vmem:[#allocation8 + $0xfc0] sm:$0xff]  ;;  %v5427_v22 = vcombine.high %v928_v16, %v932_v17 }
 0x141   :  { %3753 = vmatpush1.bf16.msra.mxu0 %v5346_v26  ;;  %v5555_v23 = vcombine.high %v1056_v18, %v1060_v19  ;;  %v920_v24 = vld [vmem:[#allocation8 + $0xb80] sm:$0xff]  ;;  %v5554_v27 = vcombine.low %v1056_v18, %v1060_v19 }
 0x142   :  { %3794 = vmatpush1.bf16.msra.mxu1 %v5474_v40  ;;  %3754 = vmatprep.subr.bf16.mxu0 %v5339_v41  ;;  %v924_v26 = vld [vmem:[#allocation8 + $0xba0] sm:$0xff] }
 0x143   :  { %3795 = vmatprep.subr.bf16.mxu1 %v5467_v44  ;;  %v1048_v40 = vld [vmem:[#allocation8 + $0xf80] sm:$0xff]  ;;  %v5426_v44 = vcombine.low %v928_v16, %v932_v17  ;;  %v5419_v30 = vcombine.high %v920_v24, %v924_v26  ;;  %v5418_v38 = vcombine.low %v920_v24, %v924_v26 }
 0x144   :  { %v1052_v41 = vld [vmem:[#allocation8 + $0xfa0] sm:$0xff] }
 0x145   :  { %3755 = vmatpush1.bf16.msra.mxu0 %v5338_v32  ;;  %v5547_v32 = vcombine.high %v1048_v40, %v1052_v41  ;;  %v1036_v57 = vld [vmem:[#allocation8 + $0xf20] sm:$0xff] }
 0x146   :  { %3796 = vmatpush1.bf16.msra.mxu1 %v5466_v33  ;;  %3756 = vmatprep.subr.bf16.mxu0 %v5331_v35  ;;  %v912_v33 = vld [vmem:[#allocation8 + $0xb40] sm:$0xff]  ;;  %v5531_v9 = vcombine.high %v1032_v52, %v1036_v57 }
 0x147   :  { %3797 = vmatprep.subr.bf16.mxu1 %v5459_v36  ;;  %v916_v35 = vld [vmem:[#allocation8 + $0xb60] sm:$0xff] }
 0x148   :  { %v1040_v36 = vld [vmem:[#allocation8 + $0xf40] sm:$0xff] }
 0x149   :  { %3757 = vmatpush1.bf16.msra.mxu0 %v5330_v47  ;;  %v5546_v47 = vcombine.low %v1048_v40, %v1052_v41  ;;  %v896_v10 = vld [vmem:[#allocation8 + $0xac0] sm:$0xff] }
 0x14a   :  { %3798 = vmatpush1.bf16.msra.mxu1 %v5458_v48  ;;  %3758 = vmatprep.subr.bf16.mxu0 %v5323_v49  ;;  %v5411_v48 = vcombine.high %v912_v33, %v916_v35  ;;  %v5539_v49 = vcombine.high %v1040_v36, %v1044_v37  ;;  %v900_v11 = vld [vmem:[#allocation8 + $0xae0] sm:$0xff] }
 0x14b   :  { %3799 = vmatprep.subr.bf16.mxu1 %v5451_v51  ;;  %v908_v51 = vld [vmem:[#allocation8 + $0xb20] sm:$0xff]  ;;  %v5395_v16 = vcombine.high %v896_v10, %v900_v11 }
 0x14c   :  { %v5403_v3 = vcombine.high %v904_v5, %v908_v51  ;;  %v5402_v34 = vcombine.low %v904_v5, %v908_v51  ;;  %v888_v17 = vld [vmem:[#allocation8 + $0xa80] sm:$0xff]  ;;  %v741_v5 = vld [vmem:[#allocation8 + $0x5e8] sm:$0xff] }
 0x14d   :  { %3759 = vmatpush1.bf16.msra.mxu0 %v5322_v60  ;;  %v515_v60 = vrot.slane %v6110_v61, %v6105_v56  ;;  %v5530_v61 = vcombine.low %v1032_v52, %v1036_v57  ;;  %v892_v18 = vld [vmem:[#allocation8 + $0xaa0] sm:$0xff] }
 0x14e   :  { %3800 = vmatpush1.bf16.msra.mxu1 %v5450_v62  ;;  %3760 = vmatprep.subr.bf16.mxu0 %v5315_v63  ;;  %v5410_v62 = vcombine.low %v912_v33, %v916_v35  ;;  %v439_v63 = vadd.f32 %v6138_v31, %v208_v46  ;;  %v1016_v19 = vld [vmem:[#allocation8 + $0xe80] sm:$0xff]  ;;  %v5386_v45 = vcombine.low %v888_v17, %v892_v18 }
 0x14f   :  { %3801 = vmatprep.subr.bf16.mxu1 %v5443_v1  ;;  %v5538_v1 = vcombine.low %v1040_v36, %v1044_v37  ;;  %v880_v26 = vld [vmem:[#allocation8 + $0xa40] sm:$0xff] }
 0x150   :  { %v884_v40 = vld [vmem:[#allocation8 + $0xa60] sm:$0xff] }
 0x151   :  { %3761 = vmatpush1.bf16.msra.mxu0 %v5314_v12  ;;  %v1024_v12 = vld [vmem:[#allocation8 + $0xec0] sm:$0xff]  ;;  %v5379_v29 = vcombine.high %v880_v26, %v884_v40  ;;  %v5378_v37 = vcombine.low %v880_v26, %v884_v40 }
 0x152   :  { %3802 = vmatpush1.bf16.msra.mxu1 %v5442_v13  ;;  %3762 = vmatprep.subr.bf16.mxu0 %v5307_v14  ;;  %v1028_v13 = vld [vmem:[#allocation8 + $0xee0] sm:$0xff]  ;;  %v534_v14 = vadd.f32 %v515_v60, %v480_v59 }
 0x153   :  { %3803 = vmatprep.subr.bf16.mxu1 %v5435_v15  ;;  %v532_v15 = vadd.f32 %v507_v58, %v439_v63  ;;  %v5523_v31 = vcombine.high %v1024_v12, %v1028_v13  ;;  %v1008_v41 = vld [vmem:[#allocation8 + $0xe40] sm:$0xff]  ;;  %v605_v63 = vld [vmem:[#allocation8 + $0x1a8] sm:$0xff] }
 0x154   :  { %5803 = vtanh.f32 %v534_v14  ;;  %v876_v33 = vld [vmem:[#allocation8 + $0xa20] sm:$0xff]  ;;  %v593_v14 = vld [vmem:[#allocation8 + $0x148] sm:$0xff] }
 0x155   :  { %3763 = vmatpush1.bf16.msra.mxu0 %v5306_v20  ;;  %v1020_v20 = vld [vmem:[#allocation8 + $0xea0] sm:$0xff]  ;;  %5805 = vtanh.f32 %v532_v15 }
 0x156   :  { %3804 = vmatpush1.bf16.msra.mxu1 %v5434_v21  ;;  %3764 = vmatprep.subr.bf16.mxu0 %v5427_v22  ;;  %v5394_v21 = vcombine.low %v896_v10, %v900_v11  ;;  %v5522_v22 = vcombine.low %v1024_v12, %v1028_v13  ;;  %v5515_v24 = vcombine.high %v1016_v19, %v1020_v20  ;;  %v1000_v35 = vld [vmem:[#allocation8 + $0xe00] sm:$0xff]  ;;  %v733_v10 = vld [vmem:[#allocation8 + $0x5a8] sm:$0xff] }
 0x157   :  { %3805 = vmatprep.subr.bf16.mxu1 %v5555_v23  ;;  %v5387_v23 = vcombine.high %v888_v17, %v892_v18  ;;  %v1004_v36 = vld [vmem:[#allocation8 + $0xe20] sm:$0xff] }
 0x158   :  { %v5499_v46 = vcombine.high %v1000_v35, %v1004_v36  ;;  %v5498_v57 = vcombine.low %v1000_v35, %v1004_v36  ;;  %v569_v36 = vld [vmem:[#allocation8 + $0x88] sm:$0xff] }
 0x159   :  { %3765 = vmatpush2.bf16.msra.mxu0 %v5426_v44  ;;  %v1012_v44 = vld [vmem:[#allocation8 + $0xe60] sm:$0xff] }
 0x15a   :  { %3806 = vmatpush2.bf16.msra.mxu1 %v5554_v27  ;;  %3766 = vmatprep.subr.bf16.mxu0 %v5419_v30  ;;  %v5514_v27 = vcombine.low %v1016_v19, %v1020_v20  ;;  %v5507_v30 = vcombine.high %v1008_v41, %v1012_v44  ;;  %v585_v20 = vld [vmem:[#allocation8 + $0x108] sm:$0xff] }
 0x15b   :  { %3807 = vmatprep.subr.bf16.mxu1 %v5547_v32  ;;  %v872_v32 = vld [vmem:[#allocation8 + $0xa00] sm:$0xff] }
 0x15c   :  { %v5371_v42 = vcombine.high %v872_v32, %v876_v33  ;;  %v5370_v51 = vcombine.low %v872_v32, %v876_v33 }
 0x15d   :  { %3767 = vmatpush2.bf16.msra.mxu0 %v5418_v38  ;;  %v5506_v38 = vcombine.low %v1008_v41, %v1012_v44  ;;  %v577_v44 = vld [vmem:[#allocation8 + $0xc8] sm:$0xff] }
 0x15e   :  { %3808 = vmatpush2.bf16.msra.mxu1 %v5546_v47  ;;  %3768 = vmatprep.subr.bf16.mxu0 %v5411_v48  ;;  %v609_v47 = vld [vmem:[#allocation8 + $0x1c8] sm:$0xff] }
 0x15f   :  { %3809 = vmatprep.subr.bf16.mxu1 %v5539_v49  ;;  %v613_v48 = vld [vmem:[#allocation8 + $0x1e8] sm:$0xff] }
 0x160   :  { %v737_v49 = vld [vmem:[#allocation8 + $0x5c8] sm:$0xff]  ;;  %v5109_v58 = vcombine.high %v609_v47, %v613_v48 }
 0x161   :  { %3769 = vmatpush2.bf16.msra.mxu0 %v5410_v62  ;;  %v5804_v52 = vpop.eup %5803  ;;  %v5237_v60 = vcombine.high %v737_v49, %v741_v5  ;;  %v601_v62 = vld [vmem:[#allocation8 + $0x188] sm:$0xff]  ;;  %v5236_v12 = vcombine.low %v737_v49, %v741_v5 }
 0x162   :  { %3810 = vmatpush2.bf16.msra.mxu1 %v5538_v1  ;;  %3770 = vmatprep.subr.bf16.mxu0 %v5403_v3  ;;  %v5806_v59 = vpop.eup %5805  ;;  %v6185_v1 = vpack.c.bf16 %v5804_v52, %v5804_v52  ;;  %v5108_v3 = vcombine.low %v609_v47, %v613_v48  ;;  %v5101_v13 = vcombine.high %v601_v62, %v605_v63  ;;  %v561_v5 = vld [vmem:[#allocation8 + $0x48] sm:$0xff] }
 0x163   :  { %3811 = vmatprep.subr.bf16.mxu1 %v5531_v9  ;;  %v729_v9 = vld [vmem:[#allocation8 + $0x588] sm:$0xff]  ;;  %v6187_v11 = vpack.c.bf16 %v5806_v59, %v5806_v59 }
 0x164   :  { %v5229_v15 = vcombine.high %v729_v9, %v733_v10  ;;  %v5228_v17 = vcombine.low %v729_v9, %v733_v10  ;;  %v689_v52 = vld [vmem:[#allocation8 + $0x448] sm:$0xff] }
 0x165   :  { %3771 = vmatpush2.bf16.msra.mxu0 %v5402_v34  ;;  %v597_v34 = vld [vmem:[#allocation8 + $0x168] sm:$0xff] }
 0x166   :  { %3812 = vmatpush2.bf16.msra.mxu1 %v5530_v61  ;;  %3772 = vmatprep.subr.bf16.mxu0 %v5395_v16  ;;  %v721_v61 = vld [vmem:[#allocation8 + $0x548] sm:$0xff]  ;;  %v5093_v18 = vcombine.high %v593_v14, %v597_v34 }
 0x167   :  { %3813 = vmatprep.subr.bf16.mxu1 %v5523_v31  ;;  %v725_v16 = vld [vmem:[#allocation8 + $0x568] sm:$0xff]  ;;  %v5100_v31 = vcombine.low %v601_v62, %v605_v63 }
 0x168   :  { %v5221_v19 = vcombine.high %v721_v61, %v725_v16  ;;  %v5220_v26 = vcombine.low %v721_v61, %v725_v16  ;;  %v553_v63 = vld [vmem:[#allocation8 + $0x8] sm:$0xff] }
 0x169   :  { %3773 = vmatpush2.bf16.msra.mxu0 %v5394_v21  ;;  %v589_v21 = vld [vmem:[#allocation8 + $0x128] sm:$0xff] }
 0x16a   :  { %3814 = vmatpush2.bf16.msra.mxu1 %v5522_v22  ;;  %3774 = vmatprep.subr.bf16.mxu0 %v5387_v23  ;;  %v713_v22 = vld [vmem:[#allocation8 + $0x508] sm:$0xff]  ;;  %v5085_v40 = vcombine.high %v585_v20, %v589_v21 }
 0x16b   :  { %3815 = vmatprep.subr.bf16.mxu1 %v5515_v24  ;;  %v717_v23 = vld [vmem:[#allocation8 + $0x528] sm:$0xff]  ;;  %v5092_v24 = vcombine.low %v593_v14, %v597_v34 }
 0x16c   :  { %v5213_v41 = vcombine.high %v713_v22, %v717_v23  ;;  %v5212_v32 = vcombine.low %v713_v22, %v717_v23  ;;  %v681_v9 = vld [vmem:[#allocation8 + $0x408] sm:$0xff] }
 0x16d   :  { %3775 = vmatpush2.bf16.msra.mxu0 %v5386_v45  ;;  %v581_v45 = vld [vmem:[#allocation8 + $0xe8] sm:$0xff] }
 0x16e   :  { %3816 = vmatpush2.bf16.msra.mxu1 %v5514_v27  ;;  %3776 = vmatprep.subr.bf16.mxu0 %v5379_v29  ;;  %v705_v27 = vld [vmem:[#allocation8 + $0x4c8] sm:$0xff]  ;;  %v5077_v33 = vcombine.high %v577_v44, %v581_v45 }
 0x16f   :  { %3817 = vmatprep.subr.bf16.mxu1 %v5507_v30  ;;  %v709_v29 = vld [vmem:[#allocation8 + $0x4e8] sm:$0xff]  ;;  %v5084_v30 = vcombine.low %v585_v20, %v589_v21 }
 0x170   :  { %v5205_v35 = vcombine.high %v705_v27, %v709_v29  ;;  %v5204_v47 = vcombine.low %v705_v27, %v709_v29  ;;  %v685_v10 = vld [vmem:[#allocation8 + $0x428] sm:$0xff] }
 0x171   :  { %3777 = vmatpush2.bf16.msra.mxu0 %v5378_v37  ;;  %v573_v37 = vld [vmem:[#allocation8 + $0xa8] sm:$0xff]  ;;  %v5181_v34 = vcombine.high %v681_v9, %v685_v10 }
 0x172   :  { %3818 = vmatpush2.bf16.msra.mxu1 %v5506_v38  ;;  %3778 = vmatprep.subr.bf16.mxu0 %v5371_v42  ;;  %v697_v38 = vld [vmem:[#allocation8 + $0x488] sm:$0xff]  ;;  %v5069_v48 = vcombine.high %v569_v36, %v573_v37 }
 0x173   :  { %3819 = vmatprep.subr.bf16.mxu1 %v5499_v46  ;;  %v701_v42 = vld [vmem:[#allocation8 + $0x4a8] sm:$0xff]  ;;  %v5076_v46 = vcombine.low %v577_v44, %v581_v45 }
 0x174   :  { %v5197_v49 = vcombine.high %v697_v38, %v701_v42  ;;  %v5196_v59 = vcombine.low %v697_v38, %v701_v42  ;;  %v677_v61 = vld [vmem:[#allocation8 + $0x3e8] sm:$0xff] }
 0x175   :  { %3779 = vmatpush2.bf16.msra.mxu0 %v5370_v51  ;;  %v565_v51 = vld [vmem:[#allocation8 + $0x68] sm:$0xff] }
 0x176   :  { %3820 = vmatpush2.bf16.msra.mxu1 %v5498_v57  ;;  %3830 = vmatprep.subr.bf16.mxu0 %v5109_v58  ;;  %v693_v57 = vld [vmem:[#allocation8 + $0x468] sm:$0xff]  ;;  %v5068_v58 = vcombine.low %v569_v36, %v573_v37 }
 0x177   :  { %3871 = vmatprep.subr.bf16.mxu1 %v5237_v60  ;;  %v5061_v60 = vcombine.high %v561_v5, %v565_v51  ;;  %v5189_v62 = vcombine.high %v689_v52, %v693_v57  ;;  %v801_v16 = vld [vmem:[#allocation8 + $0x7c8] sm:$0xff] }
 0x178   :  { %3781 = vmatmul.mubr.bf16.vlgmr.msra.gmra.mxu0 %v6187_v11  ;;  %v665_v21 = vld [vmem:[#allocation8 + $0x388] sm:$0xff] }
 0x179   :  { %3822 = vmatmul.mubr.bf16.vlgmr.msra.gmra.mxu1 %v6185_v1  ;;  %3831 = vmatpush1.bf16.msra.mxu0 %v5108_v3  ;;  %v557_v3 = vld [vmem:[#allocation8 + $0x28] sm:$0xff] }
 0x17a   :  { %3862 = vmatprep.mubr.bf16.mxu0 %v6151_v6  ;;  %3872 = vmatpush1.bf16.msra.mxu1 %v5236_v12  ;;  %v5060_v12 = vcombine.low %v561_v5, %v565_v51  ;;  %v5053_v14 = vcombine.high %v553_v63, %v557_v3  ;;  %v669_v22 = vld [vmem:[#allocation8 + $0x3a8] sm:$0xff] }
 0x17b   :  { %3903 = vmatprep.mubr.bf16.mxu1 %v6155_v8  ;;  %3832 = vmatprep.subr.bf16.mxu0 %v5101_v13  ;;  %v5188_v13 = vcombine.low %v689_v52, %v693_v57  ;;  %v793_v23 = vld [vmem:[#allocation8 + $0x788] sm:$0xff] }
 0x17c   :  { %3873 = vmatprep.subr.bf16.mxu1 %v5229_v15  ;;  %v673_v15 = vld [vmem:[#allocation8 + $0x3c8] sm:$0xff] }
 0x17d   :  { %3833 = vmatpush1.bf16.msra.mxu0 %v5100_v31  ;;  %v805_v31 = vld [vmem:[#allocation8 + $0x7e8] sm:$0xff] }
 0x17e   :  { %3874 = vmatpush1.bf16.msra.mxu1 %v5228_v17  ;;  %3834 = vmatprep.subr.bf16.mxu0 %v5093_v18  ;;  %v5052_v17 = vcombine.low %v553_v63, %v557_v3  ;;  %v5180_v18 = vcombine.low %v681_v9, %v685_v10  ;;  %v5301_v20 = vcombine.high %v801_v16, %v805_v31  ;;  %v657_v45 = vld [vmem:[#allocation8 + $0x348] sm:$0xff] }
 0x17f   :  { %3875 = vmatprep.subr.bf16.mxu1 %v5221_v19  ;;  %v5173_v19 = vcombine.high %v673_v15, %v677_v61  ;;  %v661_v27 = vld [vmem:[#allocation8 + $0x368] sm:$0xff] }
 0x180   :  { %v785_v29 = vld [vmem:[#allocation8 + $0x748] sm:$0xff] }
 0x181   :  { %3835 = vmatpush1.bf16.msra.mxu0 %v5092_v24  ;;  %v797_v24 = vld [vmem:[#allocation8 + $0x7a8] sm:$0xff] }
 0x182   :  { %3876 = vmatpush1.bf16.msra.mxu1 %v5220_v26  ;;  %3836 = vmatprep.subr.bf16.mxu0 %v5085_v40  ;;  %v5172_v26 = vcombine.low %v673_v15, %v677_v61  ;;  %v5300_v40 = vcombine.low %v801_v16, %v805_v31  ;;  %v5293_v44 = vcombine.high %v793_v23, %v797_v24  ;;  %v649_v37 = vld [vmem:[#allocation8 + $0x308] sm:$0xff] }
 0x183   :  { %3877 = vmatprep.subr.bf16.mxu1 %v5213_v41  ;;  %v5165_v41 = vcombine.high %v665_v21, %v669_v22  ;;  %v653_v38 = vld [vmem:[#allocation8 + $0x328] sm:$0xff] }
 0x184   :  { %v777_v42 = vld [vmem:[#allocation8 + $0x708] sm:$0xff] }
 0x185   :  { %3837 = vmatpush1.bf16.msra.mxu0 %v5084_v30  ;;  %v789_v30 = vld [vmem:[#allocation8 + $0x768] sm:$0xff] }
 0x186   :  { %3878 = vmatpush1.bf16.msra.mxu1 %v5212_v32  ;;  %3838 = vmatprep.subr.bf16.mxu0 %v5077_v33  ;;  %v5164_v32 = vcombine.low %v665_v21, %v669_v22  ;;  %v5292_v33 = vcombine.low %v793_v23, %v797_v24  ;;  %v5285_v36 = vcombine.high %v785_v29, %v789_v30  ;;  %v641_v51 = vld [vmem:[#allocation8 + $0x2c8] sm:$0xff] }
 0x187   :  { %3879 = vmatprep.subr.bf16.mxu1 %v5205_v35  ;;  %v5157_v35 = vcombine.high %v657_v45, %v661_v27  ;;  %v645_v52 = vld [vmem:[#allocation8 + $0x2e8] sm:$0xff] }
 0x188   :  { %v769_v57 = vld [vmem:[#allocation8 + $0x6c8] sm:$0xff] }
 0x189   :  { %3839 = vmatpush1.bf16.msra.mxu0 %v5076_v46  ;;  %v781_v46 = vld [vmem:[#allocation8 + $0x728] sm:$0xff] }
 0x18a   :  { %3880 = vmatpush1.bf16.msra.mxu1 %v5204_v47  ;;  %3840 = vmatprep.subr.bf16.mxu0 %v5069_v48  ;;  %v5156_v47 = vcombine.low %v657_v45, %v661_v27  ;;  %v5284_v48 = vcombine.low %v785_v29, %v789_v30  ;;  %v5277_v5 = vcombine.high %v777_v42, %v781_v46  ;;  %v633_v3 = vld [vmem:[#allocation8 + $0x288] sm:$0xff] }
 0x18b   :  { %3881 = vmatprep.subr.bf16.mxu1 %v5197_v49  ;;  %v5149_v49 = vcombine.high %v649_v37, %v653_v38  ;;  %v637_v9 = vld [vmem:[#allocation8 + $0x2a8] sm:$0xff] }
 0x18c   :  { %v761_v10 = vld [vmem:[#allocation8 + $0x688] sm:$0xff] }
 0x18d   :  { %3841 = vmatpush1.bf16.msra.mxu0 %v5068_v58  ;;  %v773_v58 = vld [vmem:[#allocation8 + $0x6e8] sm:$0xff] }
 0x18e   :  { %3882 = vmatpush1.bf16.msra.mxu1 %v5196_v59  ;;  %3842 = vmatprep.subr.bf16.mxu0 %v5061_v60  ;;  %v5148_v59 = vcombine.low %v649_v37, %v653_v38  ;;  %v5276_v60 = vcombine.low %v777_v42, %v781_v46  ;;  %v5269_v63 = vcombine.high %v769_v57, %v773_v58  ;;  %v625_v61 = vld [vmem:[#allocation8 + $0x248] sm:$0xff] }
 0x18f   :  { %3883 = vmatprep.subr.bf16.mxu1 %v5189_v62  ;;  %v5141_v62 = vcombine.high %v641_v51, %v645_v52  ;;  %v629_v16 = vld [vmem:[#allocation8 + $0x268] sm:$0xff] }
 0x190   :  { %v753_v31 = vld [vmem:[#allocation8 + $0x648] sm:$0xff] }
 0x191   :  { %3843 = vmatpush1.bf16.msra.mxu0 %v5060_v12  ;;  %v765_v12 = vld [vmem:[#allocation8 + $0x6a8] sm:$0xff] }
 0x192   :  { %3884 = vmatpush1.bf16.msra.mxu1 %v5188_v13  ;;  %3844 = vmatprep.subr.bf16.mxu0 %v5053_v14  ;;  %v5140_v13 = vcombine.low %v641_v51, %v645_v52  ;;  %v5268_v14 = vcombine.low %v769_v57, %v773_v58  ;;  %v5261_v15 = vcombine.high %v761_v10, %v765_v12  ;;  %v617_v22 = vld [vmem:[#allocation8 + $0x208] sm:$0xff] }
 0x193   :  { %3885 = vmatprep.subr.bf16.mxu1 %v5181_v34  ;;  %v5133_v34 = vcombine.high %v633_v3, %v637_v9  ;;  %v621_v23 = vld [vmem:[#allocation8 + $0x228] sm:$0xff] }
 0x194   :  { %v745_v24 = vld [vmem:[#allocation8 + $0x608] sm:$0xff] }
 0x195   :  { %3845 = vmatpush1.bf16.msra.mxu0 %v5052_v17  ;;  %v757_v17 = vld [vmem:[#allocation8 + $0x668] sm:$0xff] }
 0x196   :  { %3886 = vmatpush1.bf16.msra.mxu1 %v5180_v18  ;;  %3846 = vmatprep.subr.bf16.mxu0 %v5173_v19  ;;  %v5132_v18 = vcombine.low %v633_v3, %v637_v9  ;;  %v5260_v19 = vcombine.low %v761_v10, %v765_v12  ;;  %v5253_v21 = vcombine.high %v753_v31, %v757_v17  ;;  %v865_v27 = vld [vmem:[#allocation8 + $0x9c8] sm:$0xff] }
 0x197   :  { %3887 = vmatprep.subr.bf16.mxu1 %v5301_v20  ;;  %v5125_v20 = vcombine.high %v625_v61, %v629_v16  ;;  %v869_v29 = vld [vmem:[#allocation8 + $0x9e8] sm:$0xff] }
 0x198   :  { %v993_v30 = vld [vmem:[#allocation8 + $0xdc8] sm:$0xff]  ;;  %v5364_v46 = vcombine.low %v865_v27, %v869_v29 }
 0x199   :  { %3847 = vmatpush2.bf16.msra.mxu0 %v5172_v26  ;;  %v749_v26 = vld [vmem:[#allocation8 + $0x628] sm:$0xff] }
 0x19a   :  { %3888 = vmatpush2.bf16.msra.mxu1 %v5300_v40  ;;  %3848 = vmatprep.subr.bf16.mxu0 %v5165_v41  ;;  %v5124_v40 = vcombine.low %v625_v61, %v629_v16  ;;  %v5252_v41 = vcombine.low %v753_v31, %v757_v17  ;;  %v5245_v45 = vcombine.high %v745_v24, %v749_v26  ;;  %v857_v38 = vld [vmem:[#allocation8 + $0x988] sm:$0xff] }
 0x19b   :  { %3889 = vmatprep.subr.bf16.mxu1 %v5293_v44  ;;  %v5117_v44 = vcombine.high %v617_v22, %v621_v23  ;;  %v861_v42 = vld [vmem:[#allocation8 + $0x9a8] sm:$0xff] }
 0x19c   :  { %v849_v51 = vld [vmem:[#allocation8 + $0x948] sm:$0xff] }
 0x19d   :  { %3849 = vmatpush2.bf16.msra.mxu0 %v5164_v32  ;;  %v997_v32 = vld [vmem:[#allocation8 + $0xde8] sm:$0xff] }
 0x19e   :  { %3890 = vmatpush2.bf16.msra.mxu1 %v5292_v33  ;;  %3850 = vmatprep.subr.bf16.mxu0 %v5157_v35  ;;  %v5116_v33 = vcombine.low %v617_v22, %v621_v23  ;;  %v5244_v35 = vcombine.low %v745_v24, %v749_v26  ;;  %v5493_v37 = vcombine.high %v993_v30, %v997_v32  ;;  %v853_v52 = vld [vmem:[#allocation8 + $0x968] sm:$0xff] }
 0x19f   :  { %3891 = vmatprep.subr.bf16.mxu1 %v5285_v36  ;;  %v5365_v36 = vcombine.high %v865_v27, %v869_v29  ;;  %v977_v58 = vld [vmem:[#allocation8 + $0xd48] sm:$0xff] }
 0x1a0   :  { %v841_v9 = vld [vmem:[#allocation8 + $0x908] sm:$0xff] }
 0x1a1   :  { %3851 = vmatpush2.bf16.msra.mxu0 %v5156_v47  ;;  %v985_v47 = vld [vmem:[#allocation8 + $0xd88] sm:$0xff] }
 0x1a2   :  { %3892 = vmatpush2.bf16.msra.mxu1 %v5284_v48  ;;  %3852 = vmatprep.subr.bf16.mxu0 %v5149_v49  ;;  %v989_v48 = vld [vmem:[#allocation8 + $0xda8] sm:$0xff]  ;;  %v5492_v49 = vcombine.low %v993_v30, %v997_v32 }
 0x1a3   :  { %3893 = vmatprep.subr.bf16.mxu1 %v5277_v5  ;;  %v5357_v5 = vcombine.high %v857_v38, %v861_v42  ;;  %v5485_v57 = vcombine.high %v985_v47, %v989_v48  ;;  %v845_v10 = vld [vmem:[#allocation8 + $0x928] sm:$0xff] }
 0x1a4   :  { %v969_v12 = vld [vmem:[#allocation8 + $0xd08] sm:$0xff] }
 0x1a5   :  { %3853 = vmatpush2.bf16.msra.mxu0 %v5148_v59  ;;  %v981_v59 = vld [vmem:[#allocation8 + $0xd68] sm:$0xff] }
 0x1a6   :  { %3894 = vmatpush2.bf16.msra.mxu1 %v5276_v60  ;;  %3854 = vmatprep.subr.bf16.mxu0 %v5141_v62  ;;  %v5356_v60 = vcombine.low %v857_v38, %v861_v42  ;;  %v5484_v62 = vcombine.low %v985_v47, %v989_v48  ;;  %v5477_v3 = vcombine.high %v977_v58, %v981_v59  ;;  %v833_v16 = vld [vmem:[#allocation8 + $0x8c8] sm:$0xff] }
 0x1a7   :  { %3895 = vmatprep.subr.bf16.mxu1 %v5269_v63  ;;  %v5349_v63 = vcombine.high %v849_v51, %v853_v52  ;;  %v837_v31 = vld [vmem:[#allocation8 + $0x8e8] sm:$0xff] }
 0x1a8   :  { %v961_v17 = vld [vmem:[#allocation8 + $0xcc8] sm:$0xff] }
 0x1a9   :  { %3855 = vmatpush2.bf16.msra.mxu0 %v5140_v13  ;;  %v973_v13 = vld [vmem:[#allocation8 + $0xd28] sm:$0xff] }
 0x1aa   :  { %3896 = vmatpush2.bf16.msra.mxu1 %v5268_v14  ;;  %3856 = vmatprep.subr.bf16.mxu0 %v5133_v34  ;;  %v5348_v14 = vcombine.low %v849_v51, %v853_v52  ;;  %v5476_v34 = vcombine.low %v977_v58, %v981_v59  ;;  %v5469_v61 = vcombine.high %v969_v12, %v973_v13  ;;  %v825_v23 = vld [vmem:[#allocation8 + $0x888] sm:$0xff] }
 0x1ab   :  { %3897 = vmatprep.subr.bf16.mxu1 %v5261_v15  ;;  %v5341_v15 = vcombine.high %v841_v9, %v845_v10  ;;  %v829_v24 = vld [vmem:[#allocation8 + $0x8a8] sm:$0xff] }
 0x1ac   :  { %v953_v26 = vld [vmem:[#allocation8 + $0xc88] sm:$0xff] }
 0x1ad   :  { %3857 = vmatpush2.bf16.msra.mxu0 %v5132_v18  ;;  %v965_v18 = vld [vmem:[#allocation8 + $0xce8] sm:$0xff] }
 0x1ae   :  { %3898 = vmatpush2.bf16.msra.mxu1 %v5260_v19  ;;  %3858 = vmatprep.subr.bf16.mxu0 %v5125_v20  ;;  %v5340_v19 = vcombine.low %v841_v9, %v845_v10  ;;  %v5468_v20 = vcombine.low %v969_v12, %v973_v13  ;;  %v5461_v22 = vcombine.high %v961_v17, %v965_v18  ;;  %v817_v29 = vld [vmem:[#allocation8 + $0x848] sm:$0xff] }
 0x1af   :  { %3899 = vmatprep.subr.bf16.mxu1 %v5253_v21  ;;  %v5333_v21 = vcombine.high %v833_v16, %v837_v31  ;;  %v821_v30 = vld [vmem:[#allocation8 + $0x868] sm:$0xff] }
 0x1b0   :  { %v945_v32 = vld [vmem:[#allocation8 + $0xc48] sm:$0xff] }
 0x1b1   :  { %3859 = vmatpush2.bf16.msra.mxu0 %v5124_v40  ;;  %v957_v40 = vld [vmem:[#allocation8 + $0xca8] sm:$0xff] }
 0x1b2   :  { %3900 = vmatpush2.bf16.msra.mxu1 %v5252_v41  ;;  %3860 = vmatprep.subr.bf16.mxu0 %v5117_v44  ;;  %v5332_v41 = vcombine.low %v833_v16, %v837_v31  ;;  %v5460_v44 = vcombine.low %v961_v17, %v965_v18  ;;  %v5453_v27 = vcombine.high %v953_v26, %v957_v40  ;;  %v809_v42 = vld [vmem:[#allocation8 + $0x808] sm:$0xff] }
 0x1b3   :  { %3901 = vmatprep.subr.bf16.mxu1 %v5245_v45  ;;  %v5325_v45 = vcombine.high %v825_v23, %v829_v24  ;;  %v937_v47 = vld [vmem:[#allocation8 + $0xc08] sm:$0xff] }
 0x1b4   :  { %v941_v48 = vld [vmem:[#allocation8 + $0xc28] sm:$0xff] }
 0x1b5   :  { %3861 = vmatpush2.bf16.msra.mxu0 %v5116_v33  ;;  %v949_v33 = vld [vmem:[#allocation8 + $0xc68] sm:$0xff]  ;;  %v5437_v52 = vcombine.high %v937_v47, %v941_v48 }
 0x1b6   :  { %3902 = vmatpush2.bf16.msra.mxu1 %v5244_v35  ;;  %3912 = vmatprep.subr.bf16.mxu0 %v5365_v36  ;;  %v5324_v35 = vcombine.low %v825_v23, %v829_v24  ;;  %v5452_v36 = vcombine.low %v953_v26, %v957_v40  ;;  %v5445_v38 = vcombine.high %v945_v32, %v949_v33  ;;  %v933_v58 = vld [vmem:[#allocation8 + $0xbe8] sm:$0xff] }
 0x1b7   :  { %3953 = vmatprep.subr.bf16.mxu1 %v5493_v37  ;;  %v5317_v37 = vcombine.high %v817_v29, %v821_v30  ;;  %v1057_v59 = vld [vmem:[#allocation8 + $0xfc8] sm:$0xff] }
 0x1b8   :  { %3863 = vmatmul.mubr.bf16.vlgmr.msra.gmra.mxu0 %v6153_v7  ;;  %v921_v10 = vld [vmem:[#allocation8 + $0xb88] sm:$0xff] }
 0x1b9   :  { %3904 = vmatmul.mubr.bf16.vlgmr.msra.gmra.mxu1 %v6149_v4  ;;  %3913 = vmatpush1.bf16.msra.mxu0 %v5364_v46  ;;  %v813_v46 = vld [vmem:[#allocation8 + $0x828] sm:$0xff] }
 0x1ba   :  { %3944 = vmatprep.mubr.bf16.mxu0 %v6167_v39  ;;  %3954 = vmatpush1.bf16.msra.mxu1 %v5492_v49  ;;  %v5316_v49 = vcombine.low %v817_v29, %v821_v30  ;;  %v5309_v51 = vcombine.high %v809_v42, %v813_v46  ;;  %v925_v12 = vld [vmem:[#allocation8 + $0xba8] sm:$0xff] }
 0x1bb   :  { %3985 = vmatprep.mubr.bf16.mxu1 %v6169_v43  ;;  %3914 = vmatprep.subr.bf16.mxu0 %v5357_v5  ;;  %v5444_v5 = vcombine.low %v945_v32, %v949_v33  ;;  %v1049_v13 = vld [vmem:[#allocation8 + $0xf88] sm:$0xff] }
 0x1bc   :  { %3955 = vmatprep.subr.bf16.mxu1 %v5485_v57  ;;  %v929_v57 = vld [vmem:[#allocation8 + $0xbc8] sm:$0xff] }
 0x1bd   :  { %3915 = vmatpush1.bf16.msra.mxu0 %v5356_v60  ;;  %v1061_v60 = vld [vmem:[#allocation8 + $0xfe8] sm:$0xff] }
 0x1be   :  { %3956 = vmatpush1.bf16.msra.mxu1 %v5484_v62  ;;  %3916 = vmatprep.subr.bf16.mxu0 %v5349_v63  ;;  %v5308_v62 = vcombine.low %v809_v42, %v813_v46  ;;  %v5436_v63 = vcombine.low %v937_v47, %v941_v48  ;;  %v5557_v9 = vcombine.high %v1057_v59, %v1061_v60  ;;  %v913_v31 = vld [vmem:[#allocation8 + $0xb48] sm:$0xff] }
 0x1bf   :  { %3957 = vmatprep.subr.bf16.mxu1 %v5477_v3  ;;  %v5429_v3 = vcombine.high %v929_v57, %v933_v58  ;;  %v917_v17 = vld [vmem:[#allocation8 + $0xb68] sm:$0xff] }
 0x1c0   :  { %v1041_v18 = vld [vmem:[#allocation8 + $0xf48] sm:$0xff] }
 0x1c1   :  { %3917 = vmatpush1.bf16.msra.mxu0 %v5348_v14  ;;  %v1053_v14 = vld [vmem:[#allocation8 + $0xfa8] sm:$0xff] }
 0x1c2   :  { %3958 = vmatpush1.bf16.msra.mxu1 %v5476_v34  ;;  %3918 = vmatprep.subr.bf16.mxu0 %v5341_v15  ;;  %v5428_v34 = vcombine.low %v929_v57, %v933_v58  ;;  %v5556_v15 = vcombine.low %v1057_v59, %v1061_v60  ;;  %v5549_v16 = vcombine.high %v1049_v13, %v1053_v14  ;;  %v905_v24 = vld [vmem:[#allocation8 + $0xb08] sm:$0xff] }
 0x1c3   :  { %3959 = vmatprep.subr.bf16.mxu1 %v5469_v61  ;;  %v5421_v61 = vcombine.high %v921_v10, %v925_v12  ;;  %v909_v26 = vld [vmem:[#allocation8 + $0xb28] sm:$0xff] }
 0x1c4   :  { %v1033_v40 = vld [vmem:[#allocation8 + $0xf08] sm:$0xff] }
 0x1c5   :  { %3919 = vmatpush1.bf16.msra.mxu0 %v5340_v19  ;;  %v1045_v19 = vld [vmem:[#allocation8 + $0xf68] sm:$0xff] }
 0x1c6   :  { %3960 = vmatpush1.bf16.msra.mxu1 %v5468_v20  ;;  %3920 = vmatprep.subr.bf16.mxu0 %v5333_v21  ;;  %v5420_v20 = vcombine.low %v921_v10, %v925_v12  ;;  %v5548_v21 = vcombine.low %v1049_v13, %v1053_v14  ;;  %v5541_v23 = vcombine.high %v1041_v18, %v1045_v19  ;;  %v897_v30 = vld [vmem:[#allocation8 + $0xac8] sm:$0xff] }
 0x1c7   :  { %3961 = vmatprep.subr.bf16.mxu1 %v5461_v22  ;;  %v5413_v22 = vcombine.high %v913_v31, %v917_v17  ;;  %v901_v32 = vld [vmem:[#allocation8 + $0xae8] sm:$0xff] }
 0x1c8   :  { %v1025_v33 = vld [vmem:[#allocation8 + $0xec8] sm:$0xff] }
 0x1c9   :  { %3921 = vmatpush1.bf16.msra.mxu0 %v5332_v41  ;;  %v1037_v41 = vld [vmem:[#allocation8 + $0xf28] sm:$0xff] }
 0x1ca   :  { %3962 = vmatpush1.bf16.msra.mxu1 %v5460_v44  ;;  %3922 = vmatprep.subr.bf16.mxu0 %v5325_v45  ;;  %v5412_v44 = vcombine.low %v913_v31, %v917_v17  ;;  %v5540_v45 = vcombine.low %v1041_v18, %v1045_v19  ;;  %v5533_v29 = vcombine.high %v1033_v40, %v1037_v41  ;;  %v889_v46 = vld [vmem:[#allocation8 + $0xa88] sm:$0xff]  ;;  %v610_v17 = vld [vmem:[#allocation8 + $0x1d0] sm:$0xff] }
 0x1cb   :  { %3963 = vmatprep.subr.bf16.mxu1 %v5453_v27  ;;  %v5405_v27 = vcombine.high %v905_v24, %v909_v26  ;;  %v893_v47 = vld [vmem:[#allocation8 + $0xaa8] sm:$0xff]  ;;  %v614_v18 = vld [vmem:[#allocation8 + $0x1f0] sm:$0xff] }
 0x1cc   :  { %v1017_v48 = vld [vmem:[#allocation8 + $0xe88] sm:$0xff]  ;;  %v738_v19 = vld [vmem:[#allocation8 + $0x5d0] sm:$0xff] }
 0x1cd   :  { %3923 = vmatpush1.bf16.msra.mxu0 %v5324_v35  ;;  %v1029_v35 = vld [vmem:[#allocation8 + $0xee8] sm:$0xff] }
 0x1ce   :  { %3964 = vmatpush1.bf16.msra.mxu1 %v5452_v36  ;;  %3924 = vmatprep.subr.bf16.mxu0 %v5317_v37  ;;  %v5404_v36 = vcombine.low %v905_v24, %v909_v26  ;;  %v5532_v37 = vcombine.low %v1033_v40, %v1037_v41  ;;  %v5525_v42 = vcombine.high %v1025_v33, %v1029_v35  ;;  %v881_v58 = vld [vmem:[#allocation8 + $0xa48] sm:$0xff]  ;;  %v6197_v24 = vld [vmem:[#allocation10] sm:$0xff]  ;;  %v602_v40 = vld [vmem:[#allocation8 + $0x190] sm:$0xff] }
 0x1cf   :  { %3965 = vmatprep.subr.bf16.mxu1 %v5445_v38  ;;  %v5397_v38 = vcombine.high %v897_v30, %v901_v32  ;;  %v885_v59 = vld [vmem:[#allocation8 + $0xa68] sm:$0xff]  ;;  %v606_v41 = vld [vmem:[#allocation8 + $0x1b0] sm:$0xff] }
 0x1d0   :  { %v1009_v60 = vld [vmem:[#allocation8 + $0xe48] sm:$0xff] }
 0x1d1   :  { %3925 = vmatpush1.bf16.msra.mxu0 %v5316_v49  ;;  %v1021_v49 = vld [vmem:[#allocation8 + $0xea8] sm:$0xff] }
 0x1d2   :  { %3966 = vmatpush1.bf16.msra.mxu1 %v5444_v5  ;;  %3926 = vmatprep.subr.bf16.mxu0 %v5309_v51  ;;  %v5396_v5 = vcombine.low %v897_v30, %v901_v32  ;;  %v5524_v51 = vcombine.low %v1025_v33, %v1029_v35  ;;  %v5517_v57 = vcombine.high %v1017_v48, %v1021_v49  ;;  %v873_v12 = vld [vmem:[#allocation8 + $0xa08] sm:$0xff]  ;;  %v594_v35 = vld [vmem:[#allocation8 + $0x150] sm:$0xff] }
 0x1d3   :  { %3967 = vmatprep.subr.bf16.mxu1 %v5437_v52  ;;  %v5389_v52 = vcombine.high %v889_v46, %v893_v47  ;;  %v877_v13 = vld [vmem:[#allocation8 + $0xa28] sm:$0xff]  ;;  %v1073_v32 = vrot.slane %v6197_v24, %v494_v0  ;;  %v5103_v33 = vcombine.high %v602_v40, %v606_v41 }
 0x1d4   :  { %v1001_v14 = vld [vmem:[#allocation8 + $0xe08] sm:$0xff] }
 0x1d5   :  { %3927 = vmatpush1.bf16.msra.mxu0 %v5308_v62  ;;  %v1013_v62 = vld [vmem:[#allocation8 + $0xe68] sm:$0xff] }
 0x1d6   :  { %3968 = vmatpush1.bf16.msra.mxu1 %v5436_v63  ;;  %3928 = vmatprep.subr.bf16.mxu0 %v5429_v3  ;;  %v5388_v63 = vcombine.low %v889_v46, %v893_v47  ;;  %v5516_v3 = vcombine.low %v1017_v48, %v1021_v49  ;;  %v5509_v10 = vcombine.high %v1009_v60, %v1013_v62  ;;  %v726_v46 = vld [vmem:[#allocation8 + $0x570] sm:$0xff] }
 0x1d7   :  { %3969 = vmatprep.subr.bf16.mxu1 %v5557_v9  ;;  %v5381_v9 = vcombine.high %v881_v58, %v885_v59  ;;  %v5102_v48 = vcombine.low %v602_v40, %v606_v41  ;;  %v698_v40 = vld [vmem:[#allocation8 + $0x490] sm:$0xff] }
 0x1d8   :  { %v702_v41 = vld [vmem:[#allocation8 + $0x4b0] sm:$0xff] }
 0x1d9   :  { %3929 = vmatpush2.bf16.msra.mxu0 %v5428_v34  ;;  %v1005_v34 = vld [vmem:[#allocation8 + $0xe28] sm:$0xff] }
 0x1da   :  { %3970 = vmatpush2.bf16.msra.mxu1 %v5556_v15  ;;  %3930 = vmatprep.subr.bf16.mxu0 %v5421_v61  ;;  %v5380_v15 = vcombine.low %v881_v58, %v885_v59  ;;  %v5508_v61 = vcombine.low %v1009_v60, %v1013_v62  ;;  %v5501_v31 = vcombine.high %v1001_v14, %v1005_v34  ;;  %v586_v59 = vld [vmem:[#allocation8 + $0x110] sm:$0xff] }
 0x1db   :  { %3971 = vmatprep.subr.bf16.mxu1 %v5549_v16  ;;  %v5373_v16 = vcombine.high %v873_v12, %v877_v13  ;;  %v590_v60 = vld [vmem:[#allocation8 + $0x130] sm:$0xff] }
 0x1dd   :  { %3931 = vmatpush2.bf16.msra.mxu0 %v5420_v20  ;;  %v742_v20 = vld [vmem:[#allocation8 + $0x5f0] sm:$0xff] }
 0x1de   :  { %3972 = vmatpush2.bf16.msra.mxu1 %v5548_v21  ;;  %3932 = vmatprep.subr.bf16.mxu0 %v5413_v22  ;;  %v5372_v21 = vcombine.low %v873_v12, %v877_v13  ;;  %v5500_v22 = vcombine.low %v1001_v14, %v1005_v34  ;;  %v5239_v26 = vcombine.high %v738_v19, %v742_v20 }
 0x1df   :  { %3973 = vmatprep.subr.bf16.mxu1 %v5541_v23  ;;  %v5111_v23 = vcombine.high %v610_v17, %v614_v18  ;;  %v5238_v30 = vcombine.low %v738_v19, %v742_v20  ;;  %v5087_v34 = vcombine.high %v586_v59, %v590_v60  ;;  %v5086_v19 = vcombine.low %v586_v59, %v590_v60  ;;  %v802_v59 = vld [vmem:[#allocation8 + $0x7d0] sm:$0xff] }
 0x1e0   :  { %v806_v60 = vld [vmem:[#allocation8 + $0x7f0] sm:$0xff] }
 0x1e1   :  { %3933 = vmatpush2.bf16.msra.mxu0 %v5412_v44  ;;  %v5110_v44 = vcombine.low %v610_v17, %v614_v18  ;;  %v706_v17 = vld [vmem:[#allocation8 + $0x4d0] sm:$0xff] }
 0x1e2   :  { %3974 = vmatpush2.bf16.msra.mxu1 %v5540_v45  ;;  %3934 = vmatprep.subr.bf16.mxu0 %v5405_v27  ;;  %v1069_v45 = vrot.slane %v6197_v24, %v6096_v53  ;;  %v730_v27 = vld [vmem:[#allocation8 + $0x590] sm:$0xff] }
 0x1e3   :  { %3975 = vmatprep.subr.bf16.mxu1 %v5533_v29  ;;  %v734_v29 = vld [vmem:[#allocation8 + $0x5b0] sm:$0xff] }
 0x1e4   :  { %v5230_v0 = vcombine.low %v730_v27, %v734_v29  ;;  %v710_v18 = vld [vmem:[#allocation8 + $0x4f0] sm:$0xff] }
 0x1e5   :  { %3935 = vmatpush2.bf16.msra.mxu0 %v5404_v36  ;;  %v598_v36 = vld [vmem:[#allocation8 + $0x170] sm:$0xff] }
 0x1e6   :  { %3976 = vmatpush2.bf16.msra.mxu1 %v5532_v37  ;;  %3936 = vmatprep.subr.bf16.mxu0 %v5397_v38  ;;  %v5231_v38 = vcombine.high %v730_v27, %v734_v29  ;;  %v5094_v12 = vcombine.low %v594_v35, %v598_v36  ;;  %v5199_v29 = vcombine.high %v698_v40, %v702_v41 }
 0x1e7   :  { %3977 = vmatprep.subr.bf16.mxu1 %v5525_v42  ;;  %v722_v42 = vld [vmem:[#allocation8 + $0x550] sm:$0xff] }
 0x1e8   :  { %v5223_v58 = vcombine.high %v722_v42, %v726_v46  ;;  %v5222_v14 = vcombine.low %v722_v42, %v726_v46  ;;  %v554_v46 = vld [vmem:[#allocation8 + $0x10] sm:$0xff] }
 0x1e9   :  { %3937 = vmatpush2.bf16.msra.mxu0 %v5396_v5  ;;  %v5095_v5 = vcombine.high %v594_v35, %v598_v36  ;;  %v694_v35 = vld [vmem:[#allocation8 + $0x470] sm:$0xff] }
 0x1ea   :  { %3978 = vmatpush2.bf16.msra.mxu1 %v5524_v51  ;;  %3938 = vmatprep.subr.bf16.mxu0 %v5389_v52 }
 0x1eb   :  { %3979 = vmatprep.subr.bf16.mxu1 %v5517_v57 }
 0x1ed   :  { %3939 = vmatpush2.bf16.msra.mxu0 %v5388_v63  ;;  %v714_v63 = vld [vmem:[#allocation8 + $0x510] sm:$0xff] }
 0x1ee   :  { %3980 = vmatpush2.bf16.msra.mxu1 %v5516_v3  ;;  %3940 = vmatprep.subr.bf16.mxu0 %v5381_v9  ;;  %v718_v3 = vld [vmem:[#allocation8 + $0x530] sm:$0xff] }
 0x1ef   :  { %3981 = vmatprep.subr.bf16.mxu1 %v5509_v10  ;;  %v5214_v20 = vcombine.low %v714_v63, %v718_v3 }
 0x1f1   :  { %3941 = vmatpush2.bf16.msra.mxu0 %v5380_v15 }
 0x1f2   :  { %3982 = vmatpush2.bf16.msra.mxu1 %v5508_v61  ;;  %3942 = vmatprep.subr.bf16.mxu0 %v5373_v16  ;;  %v5215_v61 = vcombine.high %v714_v63, %v718_v3  ;;  %v578_v16 = vld [vmem:[#allocation8 + $0xd0] sm:$0xff] }
 0x1f3   :  { %3983 = vmatprep.subr.bf16.mxu1 %v5501_v31  ;;  %v582_v31 = vld [vmem:[#allocation8 + $0xf0] sm:$0xff] }
 0x1f5   :  { %3943 = vmatpush2.bf16.msra.mxu0 %v5372_v21  ;;  %v5079_v21 = vcombine.high %v578_v16, %v582_v31 }
 0x1f6   :  { %3984 = vmatpush2.bf16.msra.mxu1 %v5500_v22  ;;  %3994 = vmatprep.subr.bf16.mxu0 %v5111_v23  ;;  %v5207_v22 = vcombine.high %v706_v17, %v710_v18  ;;  %v570_v23 = vld [vmem:[#allocation8 + $0x90] sm:$0xff] }
 0x1f7   :  { %4035 = vmatprep.subr.bf16.mxu1 %v5239_v26  ;;  %v574_v26 = vld [vmem:[#allocation8 + $0xb0] sm:$0xff] }
 0x1f8   :  { %3945 = vmatmul.mubr.bf16.vlgmr.msra.gmra.mxu0 %v6187_v11  ;;  %v3700_v37 = vpop.f32.mrf.mxu0  ;;  %v5071_v27 = vcombine.high %v570_v23, %v574_v26  ;;  %v5070_v36 = vcombine.low %v570_v23, %v574_v26 }
 0x1f9   :  { %3986 = vmatmul.mubr.bf16.vlgmr.msra.gmra.mxu1 %v6185_v1  ;;  %v3701_v53 = vadd.f32 %v3700_v37, %v1069_v45  ;;  %v3741_v47 = vpop.f32.mrf.mxu1  ;;  %3995 = vmatpush1.bf16.msra.mxu0 %v5110_v44  ;;  %v5078_v44 = vcombine.low %v578_v16, %v582_v31  ;;  %v5206_v45 = vcombine.low %v706_v17, %v710_v18  ;;  %v658_v17 = vld [vmem:[#allocation8 + $0x350] sm:$0xff] }
 0x1fa   :  { %4026 = vmatprep.mubr.bf16.mxu0 %v6151_v6  ;;  %4036 = vmatpush1.bf16.msra.mxu1 %v5238_v30  ;;  %v3702_v49 = vpop.f32.mrf.mxu0  ;;  %v562_v30 = vld [vmem:[#allocation8 + $0x50] sm:$0xff]  ;;  %v5198_v37 = vcombine.low %v698_v40, %v702_v41 }
 0x1fb   :  { %v6207_v51 = vadd.f32 %v3741_v47, %v3701_v53  ;;  %4067 = vmatprep.mubr.bf16.mxu1 %v6155_v8  ;;  %v3703_v52 = vadd.f32 %v3702_v49, %v1073_v32  ;;  %v3743_v57 = vpop.f32.mrf.mxu1  ;;  %3996 = vmatprep.subr.bf16.mxu0 %v5103_v33  ;;  %v566_v32 = vld [vmem:[#allocation8 + $0x70] sm:$0xff] }
 0x1fc   :  { %4037 = vmatprep.subr.bf16.mxu1 %v5231_v38  ;;  %v3704_v62 = vpop.f32.mrf.mxu0  ;;  %v690_v33 = vld [vmem:[#allocation8 + $0x450] sm:$0xff]  ;;  %v5063_v38 = vcombine.high %v562_v30, %v566_v32  ;;  %v5062_v49 = vcombine.low %v562_v30, %v566_v32 }
 0x1fd   :  { %v6210_v9 = vadd.f32 %v3743_v57, %v3703_v52  ;;  %v3745_v10 = vpop.f32.mrf.mxu1  ;;  %3997 = vmatpush1.bf16.msra.mxu0 %v5102_v48  ;;  %v5191_v42 = vcombine.high %v690_v33, %v694_v35  ;;  %v558_v53 = vld [vmem:[#allocation8 + $0x30] sm:$0xff] }
 0x1fe   :  { %4038 = vmatpush1.bf16.msra.mxu1 %v5230_v0  ;;  %v3705_v13 = vpop.f32.mrf.mxu0  ;;  %3998 = vmatprep.subr.bf16.mxu0 %v5095_v5  ;;  %v682_v47 = vld [vmem:[#allocation8 + $0x410] sm:$0xff]  ;;  %v5190_v0 = vcombine.low %v690_v33, %v694_v35  ;;  %v5055_v5 = vcombine.high %v554_v46, %v558_v53  ;;  %v5054_v62 = vcombine.low %v554_v46, %v558_v53 }
 0x1ff   :  { %v3746_v15 = vpop.f32.mrf.mxu1  ;;  %4039 = vmatprep.subr.bf16.mxu1 %v5223_v58  ;;  %v686_v48 = vld [vmem:[#allocation8 + $0x430] sm:$0xff]  ;;  %v5303_v10 = vcombine.high %v802_v59, %v806_v60 }
 0x200   :  { %v5183_v52 = vcombine.high %v682_v47, %v686_v48  ;;  %v674_v57 = vld [vmem:[#allocation8 + $0x3d0] sm:$0xff]  ;;  %v5182_v63 = vcombine.low %v682_v47, %v686_v48 }
 0x201   :  { %3999 = vmatpush1.bf16.msra.mxu0 %v5094_v12  ;;  %v678_v58 = vld [vmem:[#allocation8 + $0x3f0] sm:$0xff] }
 0x202   :  { %4040 = vmatpush1.bf16.msra.mxu1 %v5222_v14  ;;  %4000 = vmatprep.subr.bf16.mxu0 %v5087_v34  ;;  %v5175_v3 = vcombine.high %v674_v57, %v678_v58  ;;  %v666_v12 = vld [vmem:[#allocation8 + $0x390] sm:$0xff]  ;;  %v5174_v15 = vcombine.low %v674_v57, %v678_v58 }
 0x203   :  { %4041 = vmatprep.subr.bf16.mxu1 %v5215_v61  ;;  %v670_v13 = vld [vmem:[#allocation8 + $0x3b0] sm:$0xff]  ;;  %v5302_v61 = vcombine.low %v802_v59, %v806_v60 }
 0x204   :  { %v794_v14 = vld [vmem:[#allocation8 + $0x790] sm:$0xff]  ;;  %v5167_v16 = vcombine.high %v666_v12, %v670_v13 }
 0x205   :  { %4001 = vmatpush1.bf16.msra.mxu0 %v5086_v19  ;;  %v798_v34 = vld [vmem:[#allocation8 + $0x7b0] sm:$0xff] }
 0x206   :  { %4042 = vmatpush1.bf16.msra.mxu1 %v5214_v20  ;;  %4002 = vmatprep.subr.bf16.mxu0 %v5079_v21  ;;  %v5295_v31 = vcombine.high %v794_v14, %v798_v34  ;;  %v662_v18 = vld [vmem:[#allocation8 + $0x370] sm:$0xff]  ;;  %v5166_v21 = vcombine.low %v666_v12, %v670_v13 }
 0x207   :  { %4043 = vmatprep.subr.bf16.mxu1 %v5207_v22  ;;  %v786_v19 = vld [vmem:[#allocation8 + $0x750] sm:$0xff]  ;;  %v5294_v22 = vcombine.low %v794_v14, %v798_v34  ;;  %v5159_v23 = vcombine.high %v658_v17, %v662_v18 }
 0x208   :  { %v790_v20 = vld [vmem:[#allocation8 + $0x770] sm:$0xff] }
 0x209   :  { %4003 = vmatpush1.bf16.msra.mxu0 %v5078_v44  ;;  %v5287_v26 = vcombine.high %v786_v19, %v790_v20  ;;  %v650_v40 = vld [vmem:[#allocation8 + $0x310] sm:$0xff] }
 0x20a   :  { %4044 = vmatpush1.bf16.msra.mxu1 %v5206_v45  ;;  %4004 = vmatprep.subr.bf16.mxu0 %v5071_v27  ;;  %v654_v41 = vld [vmem:[#allocation8 + $0x330] sm:$0xff]  ;;  %v5158_v27 = vcombine.low %v658_v17, %v662_v18 }
 0x20b   :  { %4045 = vmatprep.subr.bf16.mxu1 %v5199_v29  ;;  %v778_v44 = vld [vmem:[#allocation8 + $0x710] sm:$0xff]  ;;  %v5286_v29 = vcombine.low %v786_v19, %v790_v20  ;;  %v5151_v30 = vcombine.high %v650_v40, %v654_v41 }
 0x20c   :  { %v782_v45 = vld [vmem:[#allocation8 + $0x730] sm:$0xff] }
 0x20d   :  { %4005 = vmatpush1.bf16.msra.mxu0 %v5070_v36  ;;  %v5279_v32 = vcombine.high %v778_v44, %v782_v45  ;;  %v642_v33 = vld [vmem:[#allocation8 + $0x2d0] sm:$0xff] }
 0x20e   :  { %4046 = vmatpush1.bf16.msra.mxu1 %v5198_v37  ;;  %4006 = vmatprep.subr.bf16.mxu0 %v5063_v38  ;;  %v646_v35 = vld [vmem:[#allocation8 + $0x2f0] sm:$0xff]  ;;  %v5150_v38 = vcombine.low %v650_v40, %v654_v41 }
 0x20f   :  { %4047 = vmatprep.subr.bf16.mxu1 %v5191_v42  ;;  %v770_v36 = vld [vmem:[#allocation8 + $0x6d0] sm:$0xff]  ;;  %v5278_v42 = vcombine.low %v778_v44, %v782_v45  ;;  %v5143_v46 = vcombine.high %v642_v33, %v646_v35 }
 0x210   :  { %v774_v37 = vld [vmem:[#allocation8 + $0x6f0] sm:$0xff] }
 0x211   :  { %4007 = vmatpush1.bf16.msra.mxu0 %v5062_v49  ;;  %v5271_v53 = vcombine.high %v770_v36, %v774_v37  ;;  %v634_v47 = vld [vmem:[#allocation8 + $0x290] sm:$0xff] }
 0x212   :  { %4048 = vmatpush1.bf16.msra.mxu1 %v5190_v0  ;;  %4008 = vmatprep.subr.bf16.mxu0 %v5055_v5  ;;  %v638_v48 = vld [vmem:[#allocation8 + $0x2b0] sm:$0xff]  ;;  %v5142_v5 = vcombine.low %v642_v33, %v646_v35 }
 0x213   :  { %4049 = vmatprep.subr.bf16.mxu1 %v5183_v52  ;;  %v762_v49 = vld [vmem:[#allocation8 + $0x690] sm:$0xff]  ;;  %v5270_v52 = vcombine.low %v770_v36, %v774_v37  ;;  %v5135_v57 = vcombine.high %v634_v47, %v638_v48 }
 0x214   :  { %v766_v0 = vld [vmem:[#allocation8 + $0x6b0] sm:$0xff] }
 0x215   :  { %4009 = vmatpush1.bf16.msra.mxu0 %v5054_v62  ;;  %v5263_v58 = vcombine.high %v762_v49, %v766_v0  ;;  %v626_v59 = vld [vmem:[#allocation8 + $0x250] sm:$0xff] }
 0x216   :  { %4050 = vmatpush1.bf16.msra.mxu1 %v5182_v63  ;;  %4010 = vmatprep.subr.bf16.mxu0 %v5175_v3  ;;  %v630_v60 = vld [vmem:[#allocation8 + $0x270] sm:$0xff]  ;;  %v5134_v3 = vcombine.low %v634_v47, %v638_v48 }
 0x217   :  { %4051 = vmatprep.subr.bf16.mxu1 %v5303_v10  ;;  %v754_v62 = vld [vmem:[#allocation8 + $0x650] sm:$0xff]  ;;  %v5262_v10 = vcombine.low %v762_v49, %v766_v0  ;;  %v5127_v12 = vcombine.high %v626_v59, %v630_v60 }
 0x218   :  { %v758_v63 = vld [vmem:[#allocation8 + $0x670] sm:$0xff] }
 0x219   :  { %4011 = vmatpush2.bf16.msra.mxu0 %v5174_v15  ;;  %v5255_v13 = vcombine.high %v754_v62, %v758_v63  ;;  %v618_v14 = vld [vmem:[#allocation8 + $0x210] sm:$0xff] }
 0x21a   :  { %4052 = vmatpush2.bf16.msra.mxu1 %v5302_v61  ;;  %4012 = vmatprep.subr.bf16.mxu0 %v5167_v16  ;;  %v622_v34 = vld [vmem:[#allocation8 + $0x230] sm:$0xff]  ;;  %v5126_v16 = vcombine.low %v626_v59, %v630_v60 }
 0x21b   :  { %4053 = vmatprep.subr.bf16.mxu1 %v5295_v31  ;;  %v746_v15 = vld [vmem:[#allocation8 + $0x610] sm:$0xff]  ;;  %v5254_v31 = vcombine.low %v754_v62, %v758_v63  ;;  %v5119_v17 = vcombine.high %v618_v14, %v622_v34 }
 0x21c   :  { %v750_v61 = vld [vmem:[#allocation8 + $0x630] sm:$0xff] }
 0x21d   :  { %4013 = vmatpush2.bf16.msra.mxu0 %v5166_v21  ;;  %v5247_v18 = vcombine.high %v746_v15, %v750_v61  ;;  %v866_v19 = vld [vmem:[#allocation8 + $0x9d0] sm:$0xff] }
 0x21e   :  { %4054 = vmatpush2.bf16.msra.mxu1 %v5294_v22  ;;  %4014 = vmatprep.subr.bf16.mxu0 %v5159_v23  ;;  %v870_v20 = vld [vmem:[#allocation8 + $0x9f0] sm:$0xff]  ;;  %v5118_v23 = vcombine.low %v618_v14, %v622_v34 }
 0x21f   :  { %4055 = vmatprep.subr.bf16.mxu1 %v5287_v26  ;;  %v994_v21 = vld [vmem:[#allocation8 + $0xdd0] sm:$0xff]  ;;  %v5246_v26 = vcombine.low %v746_v15, %v750_v61  ;;  %v5367_v40 = vcombine.high %v866_v19, %v870_v20 }
 0x220   :  { %v998_v22 = vld [vmem:[#allocation8 + $0xdf0] sm:$0xff] }
 0x221   :  { %4015 = vmatpush2.bf16.msra.mxu0 %v5158_v27  ;;  %v5495_v41 = vcombine.high %v994_v21, %v998_v22  ;;  %v858_v44 = vld [vmem:[#allocation8 + $0x990] sm:$0xff]  ;;  %v5366_v27 = vcombine.low %v866_v19, %v870_v20 }
 0x222   :  { %4056 = vmatpush2.bf16.msra.mxu1 %v5286_v29  ;;  %4016 = vmatprep.subr.bf16.mxu0 %v5151_v30  ;;  %v862_v45 = vld [vmem:[#allocation8 + $0x9b0] sm:$0xff] }
 0x223   :  { %4057 = vmatprep.subr.bf16.mxu1 %v5279_v32  ;;  %v986_v29 = vld [vmem:[#allocation8 + $0xd90] sm:$0xff]  ;;  %v5494_v32 = vcombine.low %v994_v21, %v998_v22  ;;  %v5359_v33 = vcombine.high %v858_v44, %v862_v45  ;;  %v5358_v48 = vcombine.low %v858_v44, %v862_v45 }
 0x224   :  { %v990_v30 = vld [vmem:[#allocation8 + $0xdb0] sm:$0xff] }
 0x225   :  { %4017 = vmatpush2.bf16.msra.mxu0 %v5150_v38  ;;  %v850_v35 = vld [vmem:[#allocation8 + $0x950] sm:$0xff]  ;;  %v5487_v38 = vcombine.high %v986_v29, %v990_v30  ;;  %v5486_v0 = vcombine.low %v986_v29, %v990_v30 }
 0x226   :  { %4058 = vmatpush2.bf16.msra.mxu1 %v5278_v42  ;;  %4018 = vmatprep.subr.bf16.mxu0 %v5143_v46  ;;  %v854_v36 = vld [vmem:[#allocation8 + $0x970] sm:$0xff] }
 0x227   :  { %4059 = vmatprep.subr.bf16.mxu1 %v5271_v53  ;;  %v978_v42 = vld [vmem:[#allocation8 + $0xd50] sm:$0xff] }
 0x228   :  { %v982_v46 = vld [vmem:[#allocation8 + $0xd70] sm:$0xff] }
 0x229   :  { %4019 = vmatpush2.bf16.msra.mxu0 %v5142_v5  ;;  %v5351_v5 = vcombine.high %v850_v35, %v854_v36  ;;  %v842_v59 = vld [vmem:[#allocation8 + $0x910] sm:$0xff]  ;;  %v5478_v34 = vcombine.low %v978_v42, %v982_v46 }
 0x22a   :  { %4060 = vmatpush2.bf16.msra.mxu1 %v5270_v52  ;;  %4020 = vmatprep.subr.bf16.mxu0 %v5135_v57  ;;  %v846_v60 = vld [vmem:[#allocation8 + $0x930] sm:$0xff] }
 0x22b   :  { %4061 = vmatprep.subr.bf16.mxu1 %v5263_v58  ;;  %v970_v63 = vld [vmem:[#allocation8 + $0xd10] sm:$0xff]  ;;  %v5343_v15 = vcombine.high %v842_v59, %v846_v60  ;;  %v5342_v19 = vcombine.low %v842_v59, %v846_v60 }
 0x22c   :  { %v818_v30 = vld [vmem:[#allocation8 + $0x850] sm:$0xff] }
 0x22d   :  { %4021 = vmatpush2.bf16.msra.mxu0 %v5134_v3  ;;  %v974_v3 = vld [vmem:[#allocation8 + $0xd30] sm:$0xff] }
 0x22e   :  { %4062 = vmatpush2.bf16.msra.mxu1 %v5262_v10  ;;  %4022 = vmatprep.subr.bf16.mxu0 %v5127_v12  ;;  %v5471_v61 = vcombine.high %v970_v63, %v974_v3  ;;  %v5470_v20 = vcombine.low %v970_v63, %v974_v3  ;;  %v1058_v59 = vld [vmem:[#allocation8 + $0xfd0] sm:$0xff] }
 0x22f   :  { %4063 = vmatprep.subr.bf16.mxu1 %v5255_v13  ;;  %v5350_v13 = vcombine.low %v850_v35, %v854_v36  ;;  %v950_v35 = vld [vmem:[#allocation8 + $0xc70] sm:$0xff] }
 0x230   :  { %v1062_v60 = vld [vmem:[#allocation8 + $0xff0] sm:$0xff] }
 0x231   :  { %4023 = vmatpush2.bf16.msra.mxu0 %v5126_v16  ;;  %v834_v16 = vld [vmem:[#allocation8 + $0x8d0] sm:$0xff] }
 0x232   :  { %4064 = vmatpush2.bf16.msra.mxu1 %v5254_v31  ;;  %4024 = vmatprep.subr.bf16.mxu0 %v5119_v17  ;;  %v838_v31 = vld [vmem:[#allocation8 + $0x8f0] sm:$0xff] }
 0x233   :  { %4065 = vmatprep.subr.bf16.mxu1 %v5247_v18  ;;  %v962_v17 = vld [vmem:[#allocation8 + $0xcd0] sm:$0xff]  ;;  %v5335_v21 = vcombine.high %v834_v16, %v838_v31  ;;  %v5334_v44 = vcombine.low %v834_v16, %v838_v31 }
 0x234   :  { %v966_v18 = vld [vmem:[#allocation8 + $0xcf0] sm:$0xff] }
 0x235   :  { %4025 = vmatpush2.bf16.msra.mxu0 %v5118_v23  ;;  %v5463_v22 = vcombine.high %v962_v17, %v966_v18  ;;  %v826_v23 = vld [vmem:[#allocation8 + $0x890] sm:$0xff]  ;;  %v5462_v45 = vcombine.low %v962_v17, %v966_v18 }
 0x236   :  { %4066 = vmatpush2.bf16.msra.mxu1 %v5246_v26  ;;  %4076 = vmatprep.subr.bf16.mxu0 %v5367_v40  ;;  %v830_v26 = vld [vmem:[#allocation8 + $0x8b0] sm:$0xff] }
 0x237   :  { %4117 = vmatprep.subr.bf16.mxu1 %v5495_v41  ;;  %v954_v40 = vld [vmem:[#allocation8 + $0xc90] sm:$0xff]  ;;  %v5326_v36 = vcombine.low %v826_v23, %v830_v26 }
 0x238   :  { %v3782_v37 = vpop.f32.mrf.mxu0  ;;  %4027 = vmatmul.mubr.bf16.vlgmr.msra.gmra.mxu0 %v6153_v7  ;;  %v958_v41 = vld [vmem:[#allocation8 + $0xcb0] sm:$0xff] }
 0x239   :  { %v3783_v53 = vadd.f32 %v3782_v37, %v6207_v51  ;;  %v3823_v47 = vpop.f32.mrf.mxu1  ;;  %4068 = vmatmul.mubr.bf16.vlgmr.msra.gmra.mxu1 %v6149_v4  ;;  %4077 = vmatpush1.bf16.msra.mxu0 %v5366_v27  ;;  %v5479_v51 = vcombine.high %v978_v42, %v982_v46  ;;  %v5327_v27 = vcombine.high %v826_v23, %v830_v26  ;;  %v810_v46 = vld [vmem:[#allocation8 + $0x810] sm:$0xff] }
 0x23a   :  { %4108 = vmatprep.mubr.bf16.mxu0 %v6167_v39  ;;  %4118 = vmatpush1.bf16.msra.mxu1 %v5494_v32  ;;  %v3784_v49 = vpop.f32.mrf.mxu0  ;;  %v5455_v29 = vcombine.high %v954_v40, %v958_v41  ;;  %v822_v32 = vld [vmem:[#allocation8 + $0x870] sm:$0xff]  ;;  %v5454_v37 = vcombine.low %v954_v40, %v958_v41 }
 0x23b   :  { %v6216_v52 = vadd.f32 %v3823_v47, %v3783_v53  ;;  %4149 = vmatprep.mubr.bf16.mxu1 %v6169_v43  ;;  %v3785_v57 = vadd.f32 %v3784_v49, %v6210_v9  ;;  %v3825_v58 = vpop.f32.mrf.mxu1  ;;  %4078 = vmatprep.subr.bf16.mxu0 %v5359_v33  ;;  %v946_v33 = vld [vmem:[#allocation8 + $0xc50] sm:$0xff]  ;;  %v5318_v49 = vcombine.low %v818_v30, %v822_v32 }
 0x23c   :  { %v3786_v62 = vpop.f32.mrf.mxu0  ;;  %4119 = vmatprep.subr.bf16.mxu1 %v5487_v38  ;;  %v5319_v38 = vcombine.high %v818_v30, %v822_v32  ;;  %v5447_v42 = vcombine.high %v946_v33, %v950_v35  ;;  %v814_v53 = vld [vmem:[#allocation8 + $0x830] sm:$0xff] }
 0x23d   :  { %v6220_v10 = vadd.f32 %v3825_v58, %v3785_v57  ;;  %v3827_v12 = vpop.f32.mrf.mxu1  ;;  %4079 = vmatpush1.bf16.msra.mxu0 %v5358_v48  ;;  %v938_v47 = vld [vmem:[#allocation8 + $0xc10] sm:$0xff]  ;;  %v5310_v62 = vcombine.low %v810_v46, %v814_v53 }
 0x23e   :  { %4120 = vmatpush1.bf16.msra.mxu1 %v5486_v0  ;;  %v3787_v14 = vpop.f32.mrf.mxu0  ;;  %4080 = vmatprep.subr.bf16.mxu0 %v5351_v5  ;;  %v942_v48 = vld [vmem:[#allocation8 + $0xc30] sm:$0xff]  ;;  %v5446_v0 = vcombine.low %v946_v33, %v950_v35  ;;  %v5311_v5 = vcombine.high %v810_v46, %v814_v53  ;;  %v5559_v12 = vcombine.high %v1058_v59, %v1062_v60 }
 0x23f   :  { %v3828_v9 = vpop.f32.mrf.mxu1  ;;  %4121 = vmatprep.subr.bf16.mxu1 %v5479_v51  ;;  %v5439_v57 = vcombine.high %v938_v47, %v942_v48  ;;  %v930_v58 = vld [vmem:[#allocation8 + $0xbd0] sm:$0xff]  ;;  %v5438_v63 = vcombine.low %v938_v47, %v942_v48  ;;  %5807 = vtanh.f32 %v6220_v10 }
 0x240   :  { %v934_v51 = vld [vmem:[#allocation8 + $0xbf0] sm:$0xff] }
 0x241   :  { %4081 = vmatpush1.bf16.msra.mxu0 %v5350_v13  ;;  %v5431_v3 = vcombine.high %v930_v58, %v934_v51  ;;  %v922_v13 = vld [vmem:[#allocation8 + $0xb90] sm:$0xff]  ;;  %v5430_v9 = vcombine.low %v930_v58, %v934_v51 }
 0x242   :  { %4122 = vmatpush1.bf16.msra.mxu1 %v5478_v34  ;;  %4082 = vmatprep.subr.bf16.mxu0 %v5343_v15  ;;  %v926_v14 = vld [vmem:[#allocation8 + $0xbb0] sm:$0xff] }
 0x243   :  { %4123 = vmatprep.subr.bf16.mxu1 %v5471_v61  ;;  %v1050_v34 = vld [vmem:[#allocation8 + $0xf90] sm:$0xff]  ;;  %v5558_v61 = vcombine.low %v1058_v59, %v1062_v60  ;;  %v5423_v16 = vcombine.high %v922_v13, %v926_v14 }
 0x244   :  { %v1054_v15 = vld [vmem:[#allocation8 + $0xfb0] sm:$0xff] }
 0x245   :  { %4083 = vmatpush1.bf16.msra.mxu0 %v5342_v19  ;;  %v5551_v31 = vcombine.high %v1050_v34, %v1054_v15  ;;  %v914_v17 = vld [vmem:[#allocation8 + $0xb50] sm:$0xff] }
 0x246   :  { %4124 = vmatpush1.bf16.msra.mxu1 %v5470_v20  ;;  %4084 = vmatprep.subr.bf16.mxu0 %v5335_v21  ;;  %v918_v18 = vld [vmem:[#allocation8 + $0xb70] sm:$0xff]  ;;  %v5422_v21 = vcombine.low %v922_v13, %v926_v14 }
 0x247   :  { %4125 = vmatprep.subr.bf16.mxu1 %v5463_v22  ;;  %v1042_v19 = vld [vmem:[#allocation8 + $0xf50] sm:$0xff]  ;;  %v5550_v22 = vcombine.low %v1050_v34, %v1054_v15  ;;  %v5415_v23 = vcombine.high %v914_v17, %v918_v18 }
 0x248   :  { %v1046_v20 = vld [vmem:[#allocation8 + $0xf70] sm:$0xff] }
 0x249   :  { %4085 = vmatpush1.bf16.msra.mxu0 %v5334_v44  ;;  %v5543_v26 = vcombine.high %v1042_v19, %v1046_v20  ;;  %v906_v40 = vld [vmem:[#allocation8 + $0xb10] sm:$0xff] }
 0x24a   :  { %4126 = vmatpush1.bf16.msra.mxu1 %v5462_v45  ;;  %4086 = vmatprep.subr.bf16.mxu0 %v5327_v27  ;;  %v910_v41 = vld [vmem:[#allocation8 + $0xb30] sm:$0xff]  ;;  %v5414_v27 = vcombine.low %v914_v17, %v918_v18 }
 0x24b   :  { %4127 = vmatprep.subr.bf16.mxu1 %v5455_v29  ;;  %v1034_v44 = vld [vmem:[#allocation8 + $0xf10] sm:$0xff]  ;;  %v5542_v29 = vcombine.low %v1042_v19, %v1046_v20  ;;  %v5407_v30 = vcombine.high %v906_v40, %v910_v41  ;;  %v611_v19 = vld [vmem:[#allocation8 + $0x1d8] sm:$0xff] }
 0x24c   :  { %v1038_v45 = vld [vmem:[#allocation8 + $0xf30] sm:$0xff]  ;;  %v615_v20 = vld [vmem:[#allocation8 + $0x1f8] sm:$0xff] }
 0x24d   :  { %4087 = vmatpush1.bf16.msra.mxu0 %v5326_v36  ;;  %v5535_v32 = vcombine.high %v1034_v44, %v1038_v45  ;;  %v898_v33 = vld [vmem:[#allocation8 + $0xad0] sm:$0xff] }
 0x24e   :  { %4128 = vmatpush1.bf16.msra.mxu1 %v5454_v37  ;;  %4088 = vmatprep.subr.bf16.mxu0 %v5319_v38  ;;  %v902_v35 = vld [vmem:[#allocation8 + $0xaf0] sm:$0xff]  ;;  %v5406_v38 = vcombine.low %v906_v40, %v910_v41  ;;  %v5113_v40 = vcombine.high %v611_v19, %v615_v20 }
 0x24f   :  { %4129 = vmatprep.subr.bf16.mxu1 %v5447_v42  ;;  %v1026_v36 = vld [vmem:[#allocation8 + $0xed0] sm:$0xff]  ;;  %v5534_v42 = vcombine.low %v1034_v44, %v1038_v45  ;;  %v5399_v46 = vcombine.high %v898_v33, %v902_v35  ;;  %v603_v44 = vld [vmem:[#allocation8 + $0x198] sm:$0xff] }
 0x250   :  { %v1030_v37 = vld [vmem:[#allocation8 + $0xef0] sm:$0xff]  ;;  %v607_v45 = vld [vmem:[#allocation8 + $0x1b8] sm:$0xff] }
 0x251   :  { %4089 = vmatpush1.bf16.msra.mxu0 %v5318_v49  ;;  %v5527_v53 = vcombine.high %v1026_v36, %v1030_v37  ;;  %v890_v47 = vld [vmem:[#allocation8 + $0xa90] sm:$0xff] }
 0x252   :  { %4130 = vmatpush1.bf16.msra.mxu1 %v5446_v0  ;;  %4090 = vmatprep.subr.bf16.mxu0 %v5311_v5  ;;  %v894_v48 = vld [vmem:[#allocation8 + $0xab0] sm:$0xff]  ;;  %v5398_v5 = vcombine.low %v898_v33, %v902_v35  ;;  %v1081_v35 = vrot.slane %v6197_v24, %v502_v2 }
 0x253   :  { %4131 = vmatprep.subr.bf16.mxu1 %v5439_v57  ;;  %v1018_v49 = vld [vmem:[#allocation8 + $0xe90] sm:$0xff]  ;;  %v5526_v57 = vcombine.low %v1026_v36, %v1030_v37  ;;  %v5391_v58 = vcombine.high %v890_v47, %v894_v48  ;;  %v5105_v36 = vcombine.high %v603_v44, %v607_v45  ;;  %v595_v37 = vld [vmem:[#allocation8 + $0x158] sm:$0xff] }
 0x254   :  { %v1022_v0 = vld [vmem:[#allocation8 + $0xeb0] sm:$0xff] }
 0x255   :  { %4091 = vmatpush1.bf16.msra.mxu0 %v5310_v62  ;;  %v5519_v51 = vcombine.high %v1018_v49, %v1022_v0  ;;  %v882_v59 = vld [vmem:[#allocation8 + $0xa50] sm:$0xff] }
 0x256   :  { %4132 = vmatpush1.bf16.msra.mxu1 %v5438_v63  ;;  %4092 = vmatprep.subr.bf16.mxu0 %v5431_v3  ;;  %v886_v60 = vld [vmem:[#allocation8 + $0xa70] sm:$0xff]  ;;  %v5390_v3 = vcombine.low %v890_v47, %v894_v48 }
 0x257   :  { %4133 = vmatprep.subr.bf16.mxu1 %v5559_v12  ;;  %v1010_v62 = vld [vmem:[#allocation8 + $0xe50] sm:$0xff]  ;;  %v5518_v12 = vcombine.low %v1018_v49, %v1022_v0  ;;  %v5383_v13 = vcombine.high %v882_v59, %v886_v60  ;;  %v5104_v49 = vcombine.low %v603_v44, %v607_v45 }
 0x258   :  { %v1014_v63 = vld [vmem:[#allocation8 + $0xe70] sm:$0xff] }
 0x259   :  { %4093 = vmatpush2.bf16.msra.mxu0 %v5430_v9  ;;  %v5511_v14 = vcombine.high %v1010_v62, %v1014_v63  ;;  %v874_v34 = vld [vmem:[#allocation8 + $0xa10] sm:$0xff] }
 0x25a   :  { %4134 = vmatpush2.bf16.msra.mxu1 %v5558_v61  ;;  %4094 = vmatprep.subr.bf16.mxu0 %v5423_v16  ;;  %v878_v15 = vld [vmem:[#allocation8 + $0xa30] sm:$0xff]  ;;  %v5382_v16 = vcombine.low %v882_v59, %v886_v60  ;;  %v587_v59 = vld [vmem:[#allocation8 + $0x118] sm:$0xff] }
 0x25b   :  { %4135 = vmatprep.subr.bf16.mxu1 %v5551_v31  ;;  %v1002_v9 = vld [vmem:[#allocation8 + $0xe10] sm:$0xff]  ;;  %v5510_v31 = vcombine.low %v1010_v62, %v1014_v63  ;;  %v5375_v17 = vcombine.high %v874_v34, %v878_v15  ;;  %v591_v60 = vld [vmem:[#allocation8 + $0x138] sm:$0xff] }
 0x25c   :  { %v1006_v61 = vld [vmem:[#allocation8 + $0xe30] sm:$0xff]  ;;  %v715_v63 = vld [vmem:[#allocation8 + $0x518] sm:$0xff] }
 0x25d   :  { %4095 = vmatpush2.bf16.msra.mxu0 %v5422_v21  ;;  %v5503_v18 = vcombine.high %v1002_v9, %v1006_v61  ;;  %v739_v21 = vld [vmem:[#allocation8 + $0x5d8] sm:$0xff] }
 0x25e   :  { %4136 = vmatpush2.bf16.msra.mxu1 %v5550_v22  ;;  %4096 = vmatprep.subr.bf16.mxu0 %v5415_v23  ;;  %v743_v22 = vld [vmem:[#allocation8 + $0x5f8] sm:$0xff]  ;;  %v5374_v23 = vcombine.low %v874_v34, %v878_v15 }
 0x25f   :  { %4137 = vmatprep.subr.bf16.mxu1 %v5543_v26  ;;  %v5502_v26 = vcombine.low %v1002_v9, %v1006_v61  ;;  %v5241_v41 = vcombine.high %v739_v21, %v743_v22  ;;  %v5240_v33 = vcombine.low %v739_v21, %v743_v22  ;;  %v579_v61 = vld [vmem:[#allocation8 + $0xd8] sm:$0xff] }
 0x260   :  { %v571_v22 = vld [vmem:[#allocation8 + $0x98] sm:$0xff] }
 0x261   :  { %4097 = vmatpush2.bf16.msra.mxu0 %v5414_v27  ;;  %v1077_v27 = vrot.slane %v6197_v24, %v6102_v55  ;;  %v727_v55 = vld [vmem:[#allocation8 + $0x578] sm:$0xff] }
 0x262   :  { %4138 = vmatpush2.bf16.msra.mxu1 %v5542_v29  ;;  %4098 = vmatprep.subr.bf16.mxu0 %v5407_v30  ;;  %v5112_v29 = vcombine.low %v611_v19, %v615_v20  ;;  %v731_v30 = vld [vmem:[#allocation8 + $0x598] sm:$0xff] }
 0x263   :  { %4139 = vmatprep.subr.bf16.mxu1 %v5535_v32  ;;  %v735_v32 = vld [vmem:[#allocation8 + $0x5b8] sm:$0xff] }
 0x264   :  { %v5232_v2 = vcombine.low %v731_v30, %v735_v32 }
 0x265   :  { %4099 = vmatpush2.bf16.msra.mxu0 %v5406_v38  ;;  %v599_v38 = vld [vmem:[#allocation8 + $0x178] sm:$0xff] }
 0x266   :  { %4140 = vmatpush2.bf16.msra.mxu1 %v5534_v42  ;;  %4100 = vmatprep.subr.bf16.mxu0 %v5399_v46  ;;  %v5233_v46 = vcombine.high %v731_v30, %v735_v32  ;;  %v5097_v24 = vcombine.high %v595_v37, %v599_v38  ;;  %v567_v30 = vld [vmem:[#allocation8 + $0x78] sm:$0xff] }
 0x267   :  { %4141 = vmatprep.subr.bf16.mxu1 %v5527_v53  ;;  %v723_v53 = vld [vmem:[#allocation8 + $0x558] sm:$0xff] }
 0x268   :  { %v5224_v34 = vcombine.low %v723_v53, %v727_v55  ;;  %v691_v32 = vld [vmem:[#allocation8 + $0x458] sm:$0xff] }
 0x269   :  { %4101 = vmatpush2.bf16.msra.mxu0 %v5398_v5 }
 0x26a   :  { %4142 = vmatpush2.bf16.msra.mxu1 %v5526_v57  ;;  %4102 = vmatprep.subr.bf16.mxu0 %v5391_v58 }
 0x26b   :  { %4143 = vmatprep.subr.bf16.mxu1 %v5519_v51  ;;  %v5225_v51 = vcombine.high %v723_v53, %v727_v55  ;;  %v683_v53 = vld [vmem:[#allocation8 + $0x418] sm:$0xff] }
 0x26c   :  { %v687_v55 = vld [vmem:[#allocation8 + $0x438] sm:$0xff] }
 0x26d   :  { %4103 = vmatpush2.bf16.msra.mxu0 %v5390_v3  ;;  %v719_v3 = vld [vmem:[#allocation8 + $0x538] sm:$0xff] }
 0x26e   :  { %4144 = vmatpush2.bf16.msra.mxu1 %v5518_v12  ;;  %4104 = vmatprep.subr.bf16.mxu0 %v5383_v13  ;;  %v5096_v13 = vcombine.low %v595_v37, %v599_v38  ;;  %v5217_v9 = vcombine.high %v715_v63, %v719_v3  ;;  %v5216_v19 = vcombine.low %v715_v63, %v719_v3  ;;  %v667_v63 = vld [vmem:[#allocation8 + $0x398] sm:$0xff] }
 0x26f   :  { %4145 = vmatprep.subr.bf16.mxu1 %v5511_v14  ;;  %v671_v3 = vld [vmem:[#allocation8 + $0x3b8] sm:$0xff] }
 0x271   :  { %4105 = vmatpush2.bf16.msra.mxu0 %v5382_v16  ;;  %v583_v16 = vld [vmem:[#allocation8 + $0xf8] sm:$0xff] }
 0x272   :  { %4146 = vmatpush2.bf16.msra.mxu1 %v5510_v31  ;;  %4106 = vmatprep.subr.bf16.mxu0 %v5375_v17  ;;  %v707_v31 = vld [vmem:[#allocation8 + $0x4d8] sm:$0xff]  ;;  %v5081_v20 = vcombine.high %v579_v61, %v583_v16 }
 0x273   :  { %4147 = vmatprep.subr.bf16.mxu1 %v5503_v18  ;;  %v711_v17 = vld [vmem:[#allocation8 + $0x4f8] sm:$0xff]  ;;  %v5088_v18 = vcombine.low %v587_v59, %v591_v60 }
 0x274   :  { %v5209_v21 = vcombine.high %v707_v31, %v711_v17  ;;  %v5208_v44 = vcombine.low %v707_v31, %v711_v17  ;;  %v791_v31 = vld [vmem:[#allocation8 + $0x778] sm:$0xff]  ;;  %v5168_v17 = vcombine.low %v667_v63, %v671_v3 }
 0x275   :  { %4107 = vmatpush2.bf16.msra.mxu0 %v5374_v23  ;;  %v575_v23 = vld [vmem:[#allocation8 + $0xb8] sm:$0xff] }
 0x276   :  { %4148 = vmatpush2.bf16.msra.mxu1 %v5502_v26  ;;  %4158 = vmatprep.subr.bf16.mxu0 %v5113_v40  ;;  %v699_v26 = vld [vmem:[#allocation8 + $0x498] sm:$0xff]  ;;  %v5073_v45 = vcombine.high %v571_v22, %v575_v23 }
 0x277   :  { %4199 = vmatprep.subr.bf16.mxu1 %v5241_v41  ;;  %v703_v40 = vld [vmem:[#allocation8 + $0x4b8] sm:$0xff]  ;;  %v5080_v41 = vcombine.low %v579_v61, %v583_v16 }
 0x278   :  { %v3864_v42 = vpop.f32.mrf.mxu0  ;;  %4109 = vmatmul.mubr.bf16.vlgmr.msra.gmra.mxu0 %v6187_v11  ;;  %v663_v61 = vld [vmem:[#allocation8 + $0x378] sm:$0xff] }
 0x279   :  { %v3865_v47 = vadd.f32 %v3864_v42, %v1077_v27  ;;  %v3905_v48 = vpop.f32.mrf.mxu1  ;;  %4150 = vmatmul.mubr.bf16.vlgmr.msra.gmra.mxu1 %v6185_v1  ;;  %4159 = vmatpush1.bf16.msra.mxu0 %v5112_v29  ;;  %v5201_v27 = vcombine.high %v699_v26, %v703_v40  ;;  %v563_v29 = vld [vmem:[#allocation8 + $0x58] sm:$0xff] }
 0x27a   :  { %4190 = vmatprep.mubr.bf16.mxu0 %v6151_v6  ;;  %4200 = vmatpush1.bf16.msra.mxu1 %v5240_v33  ;;  %v3866_v0 = vpop.f32.mrf.mxu0  ;;  %v695_v33 = vld [vmem:[#allocation8 + $0x478] sm:$0xff]  ;;  %v5065_v37 = vcombine.high %v563_v29, %v567_v30 }
 0x27b   :  { %v6230_v5 = vadd.f32 %v3905_v48, %v3865_v47  ;;  %4231 = vmatprep.mubr.bf16.mxu1 %v6155_v8  ;;  %v3867_v57 = vadd.f32 %v3866_v0, %v1081_v35  ;;  %v3907_v58 = vpop.f32.mrf.mxu1  ;;  %4160 = vmatprep.subr.bf16.mxu0 %v5105_v36  ;;  %v5089_v8 = vcombine.high %v587_v59, %v591_v60  ;;  %v555_v42 = vld [vmem:[#allocation8 + $0x18] sm:$0xff] }
 0x27c   :  { %v3868_v62 = vpop.f32.mrf.mxu0  ;;  %4201 = vmatprep.subr.bf16.mxu1 %v5233_v46  ;;  %v5072_v35 = vcombine.low %v571_v22, %v575_v23  ;;  %v5200_v36 = vcombine.low %v699_v26, %v703_v40  ;;  %v5193_v38 = vcombine.high %v691_v32, %v695_v33  ;;  %v559_v46 = vld [vmem:[#allocation8 + $0x38] sm:$0xff]  ;;  %v5064_v47 = vcombine.low %v563_v29, %v567_v30 }
 0x27d   :  { %v6233_v12 = vadd.f32 %v3907_v58, %v3867_v57  ;;  %v3909_v6 = vpop.f32.mrf.mxu1  ;;  %4161 = vmatpush1.bf16.msra.mxu0 %v5104_v49  ;;  %v5192_v48 = vcombine.low %v691_v32, %v695_v33  ;;  %v5057_v49 = vcombine.high %v555_v42, %v559_v46  ;;  %v5185_v0 = vcombine.high %v683_v53, %v687_v55  ;;  %v803_v57 = vld [vmem:[#allocation8 + $0x7d8] sm:$0xff] }
 0x27e   :  { %4202 = vmatpush1.bf16.msra.mxu1 %v5232_v2  ;;  %v3869_v14 = vpop.f32.mrf.mxu0  ;;  %4162 = vmatprep.subr.bf16.mxu0 %v5097_v24  ;;  %v675_v2 = vld [vmem:[#allocation8 + $0x3d8] sm:$0xff]  ;;  %v5184_v59 = vcombine.low %v683_v53, %v687_v55 }
 0x27f   :  { %v3910_v15 = vpop.f32.mrf.mxu1  ;;  %4203 = vmatprep.subr.bf16.mxu1 %v5225_v51  ;;  %v679_v24 = vld [vmem:[#allocation8 + $0x3f8] sm:$0xff]  ;;  %v5056_v51 = vcombine.low %v555_v42, %v559_v46 }
 0x280   :  { %v807_v58 = vld [vmem:[#allocation8 + $0x7f8] sm:$0xff]  ;;  %v5177_v60 = vcombine.high %v675_v2, %v679_v24  ;;  %v5176_v14 = vcombine.low %v675_v2, %v679_v24 }
 0x281   :  { %4163 = vmatpush1.bf16.msra.mxu0 %v5096_v13  ;;  %v5305_v62 = vcombine.high %v803_v57, %v807_v58  ;;  %v795_v6 = vld [vmem:[#allocation8 + $0x798] sm:$0xff] }
 0x282   :  { %4204 = vmatpush1.bf16.msra.mxu1 %v5224_v34  ;;  %4164 = vmatprep.subr.bf16.mxu0 %v5089_v8  ;;  %v799_v13 = vld [vmem:[#allocation8 + $0x7b8] sm:$0xff]  ;;  %v5304_v34 = vcombine.low %v803_v57, %v807_v58  ;;  %v5169_v8 = vcombine.high %v667_v63, %v671_v3 }
 0x283   :  { %4205 = vmatprep.subr.bf16.mxu1 %v5217_v9  ;;  %v5297_v15 = vcombine.high %v795_v6, %v799_v13  ;;  %v659_v9 = vld [vmem:[#allocation8 + $0x358] sm:$0xff] }
 0x284   :  { %v787_v16 = vld [vmem:[#allocation8 + $0x758] sm:$0xff]  ;;  %v5160_v40 = vcombine.low %v659_v9, %v663_v61 }
 0x285   :  { %4165 = vmatpush1.bf16.msra.mxu0 %v5088_v18  ;;  %v5296_v18 = vcombine.low %v795_v6, %v799_v13  ;;  %v655_v22 = vld [vmem:[#allocation8 + $0x338] sm:$0xff] }
 0x286   :  { %4206 = vmatpush1.bf16.msra.mxu1 %v5216_v19  ;;  %4166 = vmatprep.subr.bf16.mxu0 %v5081_v20  ;;  %v5161_v19 = vcombine.high %v659_v9, %v663_v61  ;;  %v5289_v20 = vcombine.high %v787_v16, %v791_v31  ;;  %v779_v23 = vld [vmem:[#allocation8 + $0x718] sm:$0xff] }
 0x287   :  { %4207 = vmatprep.subr.bf16.mxu1 %v5209_v21  ;;  %v651_v21 = vld [vmem:[#allocation8 + $0x318] sm:$0xff] }
 0x288   :  { %v783_v26 = vld [vmem:[#allocation8 + $0x738] sm:$0xff]  ;;  %v5152_v33 = vcombine.low %v651_v21, %v655_v22 }
 0x289   :  { %4167 = vmatpush1.bf16.msra.mxu0 %v5080_v41  ;;  %v5288_v41 = vcombine.low %v787_v16, %v791_v31  ;;  %v647_v29 = vld [vmem:[#allocation8 + $0x2f8] sm:$0xff] }
 0x28a   :  { %4208 = vmatpush1.bf16.msra.mxu1 %v5208_v44  ;;  %4168 = vmatprep.subr.bf16.mxu0 %v5073_v45  ;;  %v5153_v44 = vcombine.high %v651_v21, %v655_v22  ;;  %v5281_v45 = vcombine.high %v779_v23, %v783_v26  ;;  %v771_v30 = vld [vmem:[#allocation8 + $0x6d8] sm:$0xff] }
 0x28b   :  { %4209 = vmatprep.subr.bf16.mxu1 %v5201_v27  ;;  %v643_v27 = vld [vmem:[#allocation8 + $0x2d8] sm:$0xff] }
 0x28c   :  { %v775_v32 = vld [vmem:[#allocation8 + $0x6f8] sm:$0xff]  ;;  %v5144_v55 = vcombine.low %v643_v27, %v647_v29 }
 0x28d   :  { %4169 = vmatpush1.bf16.msra.mxu0 %v5072_v35  ;;  %v5280_v35 = vcombine.low %v779_v23, %v783_v26  ;;  %v639_v42 = vld [vmem:[#allocation8 + $0x2b8] sm:$0xff] }
 0x28e   :  { %4210 = vmatpush1.bf16.msra.mxu1 %v5200_v36  ;;  %4170 = vmatprep.subr.bf16.mxu0 %v5065_v37  ;;  %v5145_v36 = vcombine.high %v643_v27, %v647_v29  ;;  %v5273_v37 = vcombine.high %v771_v30, %v775_v32  ;;  %v763_v46 = vld [vmem:[#allocation8 + $0x698] sm:$0xff] }
 0x28f   :  { %4211 = vmatprep.subr.bf16.mxu1 %v5193_v38  ;;  %v635_v38 = vld [vmem:[#allocation8 + $0x298] sm:$0xff] }
 0x290   :  { %v767_v53 = vld [vmem:[#allocation8 + $0x6b8] sm:$0xff]  ;;  %v5136_v58 = vcombine.low %v635_v38, %v639_v42 }
 0x291   :  { %4171 = vmatpush1.bf16.msra.mxu0 %v5064_v47  ;;  %v5272_v47 = vcombine.low %v771_v30, %v775_v32  ;;  %v631_v2 = vld [vmem:[#allocation8 + $0x278] sm:$0xff] }
 0x292   :  { %4212 = vmatpush1.bf16.msra.mxu1 %v5192_v48  ;;  %4172 = vmatprep.subr.bf16.mxu0 %v5057_v49  ;;  %v5137_v48 = vcombine.high %v635_v38, %v639_v42  ;;  %v5265_v49 = vcombine.high %v763_v46, %v767_v53  ;;  %v755_v24 = vld [vmem:[#allocation8 + $0x658] sm:$0xff] }
 0x293   :  { %4213 = vmatprep.subr.bf16.mxu1 %v5185_v0  ;;  %v627_v0 = vld [vmem:[#allocation8 + $0x258] sm:$0xff] }
 0x294   :  { %v759_v57 = vld [vmem:[#allocation8 + $0x678] sm:$0xff]  ;;  %v5128_v13 = vcombine.low %v627_v0, %v631_v2 }
 0x295   :  { %4173 = vmatpush1.bf16.msra.mxu0 %v5056_v51  ;;  %v5264_v51 = vcombine.low %v763_v46, %v767_v53  ;;  %v623_v63 = vld [vmem:[#allocation8 + $0x238] sm:$0xff] }
 0x296   :  { %4214 = vmatpush1.bf16.msra.mxu1 %v5184_v59  ;;  %4174 = vmatprep.subr.bf16.mxu0 %v5177_v60  ;;  %v5129_v59 = vcombine.high %v627_v0, %v631_v2  ;;  %v5257_v60 = vcombine.high %v755_v24, %v759_v57  ;;  %v747_v3 = vld [vmem:[#allocation8 + $0x618] sm:$0xff] }
 0x297   :  { %4215 = vmatprep.subr.bf16.mxu1 %v5305_v62  ;;  %v619_v62 = vld [vmem:[#allocation8 + $0x218] sm:$0xff] }
 0x298   :  { %v751_v6 = vld [vmem:[#allocation8 + $0x638] sm:$0xff]  ;;  %v5120_v31 = vcombine.low %v619_v62, %v623_v63 }
 0x299   :  { %4175 = vmatpush2.bf16.msra.mxu0 %v5176_v14  ;;  %v5256_v14 = vcombine.low %v755_v24, %v759_v57  ;;  %v871_v9 = vld [vmem:[#allocation8 + $0x9f8] sm:$0xff] }
 0x29a   :  { %4216 = vmatpush2.bf16.msra.mxu1 %v5304_v34  ;;  %4176 = vmatprep.subr.bf16.mxu0 %v5169_v8  ;;  %v5121_v34 = vcombine.high %v619_v62, %v623_v63  ;;  %v5249_v8 = vcombine.high %v747_v3, %v751_v6  ;;  %v995_v61 = vld [vmem:[#allocation8 + $0xdd8] sm:$0xff] }
 0x29b   :  { %4217 = vmatprep.subr.bf16.mxu1 %v5297_v15  ;;  %v867_v15 = vld [vmem:[#allocation8 + $0x9d8] sm:$0xff] }
 0x29c   :  { %v999_v16 = vld [vmem:[#allocation8 + $0xdf8] sm:$0xff]  ;;  %v5368_v22 = vcombine.low %v867_v15, %v871_v9 }
 0x29d   :  { %4177 = vmatpush2.bf16.msra.mxu0 %v5168_v17  ;;  %v5248_v17 = vcombine.low %v747_v3, %v751_v6  ;;  %v863_v21 = vld [vmem:[#allocation8 + $0x9b8] sm:$0xff] }
 0x29e   :  { %4218 = vmatpush2.bf16.msra.mxu1 %v5296_v18  ;;  %4178 = vmatprep.subr.bf16.mxu0 %v5161_v19  ;;  %v5369_v18 = vcombine.high %v867_v15, %v871_v9  ;;  %v5497_v19 = vcombine.high %v995_v61, %v999_v16  ;;  %v987_v23 = vld [vmem:[#allocation8 + $0xd98] sm:$0xff] }
 0x29f   :  { %4219 = vmatprep.subr.bf16.mxu1 %v5289_v20  ;;  %v859_v20 = vld [vmem:[#allocation8 + $0x998] sm:$0xff] }
 0x2a0   :  { %v991_v26 = vld [vmem:[#allocation8 + $0xdb8] sm:$0xff] }
 0x2a1   :  { %4179 = vmatpush2.bf16.msra.mxu0 %v5160_v40  ;;  %v5496_v40 = vcombine.low %v995_v61, %v999_v16  ;;  %v5489_v29 = vcombine.high %v987_v23, %v991_v26  ;;  %v979_v30 = vld [vmem:[#allocation8 + $0xd58] sm:$0xff]  ;;  %v5488_v38 = vcombine.low %v987_v23, %v991_v26 }
 0x2a2   :  { %4220 = vmatpush2.bf16.msra.mxu1 %v5288_v41  ;;  %4180 = vmatprep.subr.bf16.mxu0 %v5153_v44  ;;  %v5361_v41 = vcombine.high %v859_v20, %v863_v21  ;;  %v851_v44 = vld [vmem:[#allocation8 + $0x958] sm:$0xff] }
 0x2a3   :  { %4221 = vmatprep.subr.bf16.mxu1 %v5281_v45  ;;  %v855_v45 = vld [vmem:[#allocation8 + $0x978] sm:$0xff] }
 0x2a4   :  { %v983_v32 = vld [vmem:[#allocation8 + $0xd78] sm:$0xff]  ;;  %v5353_v42 = vcombine.high %v851_v44, %v855_v45 }
 0x2a5   :  { %4181 = vmatpush2.bf16.msra.mxu0 %v5152_v33  ;;  %v843_v53 = vld [vmem:[#allocation8 + $0x918] sm:$0xff]  ;;  %v5480_v2 = vcombine.low %v979_v30, %v983_v32 }
 0x2a6   :  { %4222 = vmatpush2.bf16.msra.mxu1 %v5280_v35  ;;  %4182 = vmatprep.subr.bf16.mxu0 %v5145_v36  ;;  %v5360_v36 = vcombine.low %v859_v20, %v863_v21  ;;  %v811_v26 = vld [vmem:[#allocation8 + $0x818] sm:$0xff] }
 0x2a7   :  { %4223 = vmatprep.subr.bf16.mxu1 %v5273_v37 }
 0x2a9   :  { %4183 = vmatpush2.bf16.msra.mxu0 %v5144_v55  ;;  %v847_v55 = vld [vmem:[#allocation8 + $0x938] sm:$0xff] }
 0x2aa   :  { %4224 = vmatpush2.bf16.msra.mxu1 %v5272_v47  ;;  %4184 = vmatprep.subr.bf16.mxu0 %v5137_v48  ;;  %v971_v47 = vld [vmem:[#allocation8 + $0xd18] sm:$0xff]  ;;  %v5345_v24 = vcombine.high %v843_v53, %v847_v55  ;;  %v5344_v62 = vcombine.low %v843_v53, %v847_v55 }
 0x2ab   :  { %4225 = vmatprep.subr.bf16.mxu1 %v5265_v49  ;;  %v975_v48 = vld [vmem:[#allocation8 + $0xd38] sm:$0xff]  ;;  %v5352_v49 = vcombine.low %v851_v44, %v855_v45 }
 0x2ac   :  { %v5472_v63 = vcombine.low %v971_v47, %v975_v48  ;;  %v943_v44 = vld [vmem:[#allocation8 + $0xc38] sm:$0xff] }
 0x2ad   :  { %4185 = vmatpush2.bf16.msra.mxu0 %v5136_v58  ;;  %v835_v58 = vld [vmem:[#allocation8 + $0x8d8] sm:$0xff] }
 0x2ae   :  { %4226 = vmatpush2.bf16.msra.mxu1 %v5264_v51  ;;  %4186 = vmatprep.subr.bf16.mxu0 %v5129_v59  ;;  %v839_v51 = vld [vmem:[#allocation8 + $0x8f8] sm:$0xff] }
 0x2af   :  { %4227 = vmatprep.subr.bf16.mxu1 %v5257_v60  ;;  %v963_v59 = vld [vmem:[#allocation8 + $0xcd8] sm:$0xff]  ;;  %v5337_v3 = vcombine.high %v835_v58, %v839_v51  ;;  %v5336_v15 = vcombine.low %v835_v58, %v839_v51 }
 0x2b0   :  { %v967_v60 = vld [vmem:[#allocation8 + $0xcf8] sm:$0xff] }
 0x2b1   :  { %4187 = vmatpush2.bf16.msra.mxu0 %v5128_v13  ;;  %v5465_v6 = vcombine.high %v963_v59, %v967_v60  ;;  %v827_v13 = vld [vmem:[#allocation8 + $0x898] sm:$0xff]  ;;  %v5464_v9 = vcombine.low %v963_v59, %v967_v60 }
 0x2b2   :  { %4228 = vmatpush2.bf16.msra.mxu1 %v5256_v14  ;;  %4188 = vmatprep.subr.bf16.mxu0 %v5121_v34  ;;  %v831_v14 = vld [vmem:[#allocation8 + $0x8b8] sm:$0xff] }
 0x2b3   :  { %4229 = vmatprep.subr.bf16.mxu1 %v5249_v8  ;;  %v955_v34 = vld [vmem:[#allocation8 + $0xc98] sm:$0xff]  ;;  %v5329_v61 = vcombine.high %v827_v13, %v831_v14  ;;  %v5328_v20 = vcombine.low %v827_v13, %v831_v14 }
 0x2b4   :  { %v959_v8 = vld [vmem:[#allocation8 + $0xcb8] sm:$0xff] }
 0x2b5   :  { %4189 = vmatpush2.bf16.msra.mxu0 %v5120_v31  ;;  %v5457_v16 = vcombine.high %v955_v34, %v959_v8  ;;  %v819_v31 = vld [vmem:[#allocation8 + $0x858] sm:$0xff]  ;;  %v5456_v21 = vcombine.low %v955_v34, %v959_v8 }
 0x2b6   :  { %4230 = vmatpush2.bf16.msra.mxu1 %v5248_v17  ;;  %4240 = vmatprep.subr.bf16.mxu0 %v5369_v18  ;;  %v823_v17 = vld [vmem:[#allocation8 + $0x878] sm:$0xff] }
 0x2b7   :  { %4281 = vmatprep.subr.bf16.mxu1 %v5497_v19  ;;  %v947_v18 = vld [vmem:[#allocation8 + $0xc58] sm:$0xff]  ;;  %v5320_v45 = vcombine.low %v819_v31, %v823_v17 }
 0x2b8   :  { %v3946_v27 = vpop.f32.mrf.mxu0  ;;  %4191 = vmatmul.mubr.bf16.vlgmr.msra.gmra.mxu0 %v6153_v7  ;;  %v951_v19 = vld [vmem:[#allocation8 + $0xc78] sm:$0xff] }
 0x2b9   :  { %v3947_v33 = vadd.f32 %v3946_v27, %v6230_v5  ;;  %v3987_v35 = vpop.f32.mrf.mxu1  ;;  %4232 = vmatmul.mubr.bf16.vlgmr.msra.gmra.mxu1 %v6149_v4  ;;  %4241 = vmatpush1.bf16.msra.mxu0 %v5368_v22  ;;  %v5481_v5 = vcombine.high %v979_v30, %v983_v32  ;;  %v5321_v22 = vcombine.high %v819_v31, %v823_v17  ;;  %v931_v32 = vld [vmem:[#allocation8 + $0xbd8] sm:$0xff] }
 0x2ba   :  { %4272 = vmatprep.mubr.bf16.mxu0 %v6167_v39  ;;  %4282 = vmatpush1.bf16.msra.mxu1 %v5496_v40  ;;  %v6239_v37 = vpop.f32.mrf.mxu0  ;;  %v5449_v23 = vcombine.high %v947_v18, %v951_v19  ;;  %v815_v40 = vld [vmem:[#allocation8 + $0x838] sm:$0xff]  ;;  %v5448_v27 = vcombine.low %v947_v18, %v951_v19 }
 0x2bb   :  { %v6241_v46 = vadd.f32 %v3987_v35, %v3947_v33  ;;  %4313 = vmatprep.mubr.bf16.mxu1 %v6169_v43  ;;  %v6244_v7 = vpop.f32.mrf.mxu1  ;;  %4242 = vmatprep.subr.bf16.mxu0 %v5361_v41  ;;  %v5473_v43 = vcombine.high %v971_v47, %v975_v48  ;;  %v939_v41 = vld [vmem:[#allocation8 + $0xc18] sm:$0xff]  ;;  %v3949_v17 = vadd.f32 %v6239_v37, %v6233_v12 }
 0x2bc   :  { %v3950_v4 = vpop.f32.mrf.mxu0  ;;  %4283 = vmatprep.subr.bf16.mxu1 %v5489_v29  ;;  %v5313_v29 = vcombine.high %v811_v26, %v815_v40  ;;  %v5441_v30 = vcombine.high %v939_v41, %v943_v44  ;;  %v935_v33 = vld [vmem:[#allocation8 + $0xbf8] sm:$0xff] }
 0x2bd   :  { %v3991_v39 = vpop.f32.mrf.mxu1  ;;  %4243 = vmatpush1.bf16.msra.mxu0 %v5360_v36  ;;  %v1059_v35 = vld [vmem:[#allocation8 + $0xfd8] sm:$0xff] }
 0x2be   :  { %4284 = vmatpush1.bf16.msra.mxu1 %v5488_v38  ;;  %v3951_v0 = vpop.f32.mrf.mxu0  ;;  %4244 = vmatprep.subr.bf16.mxu0 %v5353_v42  ;;  %v1063_v36 = vld [vmem:[#allocation8 + $0xff8] sm:$0xff]  ;;  %v5312_v38 = vcombine.low %v811_v26, %v815_v40  ;;  %v5440_v42 = vcombine.low %v939_v41, %v943_v44  ;;  %v5432_v39 = vcombine.low %v931_v32, %v935_v33 }
 0x2bf   :  { %v3992_v57 = vpop.f32.mrf.mxu1  ;;  %4285 = vmatprep.subr.bf16.mxu1 %v5481_v5  ;;  %v5433_v5 = vcombine.high %v931_v32, %v935_v33  ;;  %v5561_v53 = vcombine.high %v1059_v35, %v1063_v36  ;;  %v923_v55 = vld [vmem:[#allocation8 + $0xb98] sm:$0xff]  ;;  %v3990_v41 = vadd.f32 %v6244_v7, %v3949_v17  ;;  %v5740_v17 = vld [vmem:[#allocation11 + $0xe0] sm:$0xff]  }
 0x2c0   :  { %v927_v4 = vld [vmem:[#allocation8 + $0xbb8] sm:$0xff] }
 0x2c1   :  { %4245 = vmatpush1.bf16.msra.mxu0 %v5352_v49  ;;  %v1051_v47 = vld [vmem:[#allocation8 + $0xf98] sm:$0xff]  ;;  %v5560_v49 = vcombine.low %v1059_v35, %v1063_v36  ;;  %v5425_v0 = vcombine.high %v923_v55, %v927_v4  ;;  %v5424_v51 = vcombine.low %v923_v55, %v927_v4  ;;  %5809 = vtanh.f32 %v3990_v41 }
 0x2c2   :  { %4286 = vmatpush1.bf16.msra.mxu1 %v5480_v2  ;;  %4246 = vmatprep.subr.bf16.mxu0 %v5345_v24  ;;  %v1055_v48 = vld [vmem:[#allocation8 + $0xfb8] sm:$0xff]  ;;  %5811 = vtanh.f32 %v6216_v52  ;;  %v5754_v52 = vld [vmem:[#allocation11 + $0x88] sm:$0xff]  }
 0x2c3   :  { %4287 = vmatprep.subr.bf16.mxu1 %v5473_v43  ;;  %v5553_v2 = vcombine.high %v1051_v47, %v1055_v48  ;;  %v915_v24 = vld [vmem:[#allocation8 + $0xb58] sm:$0xff]  ;;  %v5552_v59 = vcombine.low %v1051_v47, %v1055_v48  ;;  %5813 = vtanh.f32 %v6241_v46  ;;  %v5757_v46 = vld [vmem:[#allocation11] sm:$0xff]  }
 0x2c4   :  { %v919_v57 = vld [vmem:[#allocation8 + $0xb78] sm:$0xff] }
 0x2c5   :  { %4247 = vmatpush1.bf16.msra.mxu0 %v5344_v62  ;;  %v1043_v43 = vld [vmem:[#allocation8 + $0xf58] sm:$0xff]  ;;  %v5417_v60 = vcombine.high %v915_v24, %v919_v57  ;;  %v5416_v14 = vcombine.low %v915_v24, %v919_v57  ;;  %v5729_v24 = vld [vmem:[#allocation11 + $0x38] sm:$0xff]  }
 0x2c6   :  { %4288 = vmatpush1.bf16.msra.mxu1 %v5472_v63  ;;  %4248 = vmatprep.subr.bf16.mxu0 %v5337_v3  ;;  %v1047_v58 = vld [vmem:[#allocation8 + $0xf78] sm:$0xff] }
 0x2c7   :  { %4289 = vmatprep.subr.bf16.mxu1 %v5465_v6  ;;  %v5545_v62 = vcombine.high %v1043_v43, %v1047_v58  ;;  %v907_v63 = vld [vmem:[#allocation8 + $0xb18] sm:$0xff]  ;;  %v5544_v34 = vcombine.low %v1043_v43, %v1047_v58  ;;  %v5730_v43 = vld [vmem:[#allocation11 + $0xb8] sm:$0xff]  }
 0x2c8   :  { %v911_v3 = vld [vmem:[#allocation8 + $0xb38] sm:$0xff] }
 0x2c9   :  { %4249 = vmatpush1.bf16.msra.mxu0 %v5336_v15  ;;  %v1035_v6 = vld [vmem:[#allocation8 + $0xf18] sm:$0xff]  ;;  %v5409_v8 = vcombine.high %v907_v63, %v911_v3  ;;  %v5408_v18 = vcombine.low %v907_v63, %v911_v3 }
 0x2ca   :  { %4290 = vmatpush1.bf16.msra.mxu1 %v5464_v9  ;;  %4250 = vmatprep.subr.bf16.mxu0 %v5329_v61  ;;  %v1039_v13 = vld [vmem:[#allocation8 + $0xf38] sm:$0xff] }
 0x2cb   :  { %4291 = vmatprep.subr.bf16.mxu1 %v5457_v16  ;;  %v5537_v15 = vcombine.high %v1035_v6, %v1039_v13  ;;  %v899_v9 = vld [vmem:[#allocation8 + $0xad8] sm:$0xff]  ;;  %v5536_v19 = vcombine.low %v1035_v6, %v1039_v13 }
 0x2cc   :  { %v903_v61 = vld [vmem:[#allocation8 + $0xaf8] sm:$0xff] }
 0x2cd   :  { %4251 = vmatpush1.bf16.msra.mxu0 %v5328_v20  ;;  %v1027_v16 = vld [vmem:[#allocation8 + $0xed8] sm:$0xff]  ;;  %v5401_v20 = vcombine.high %v899_v9, %v903_v61  ;;  %v5400_v44 = vcombine.low %v899_v9, %v903_v61  ;;  %v5737_v9 = vld [vmem:[#allocation11 + $0x28] sm:$0xff]  }
 0x2ce   :  { %4292 = vmatpush1.bf16.msra.mxu1 %v5456_v21  ;;  %4252 = vmatprep.subr.bf16.mxu0 %v5321_v22  ;;  %v1031_v31 = vld [vmem:[#allocation8 + $0xef8] sm:$0xff]  ;;  %v5738_v61 = vld [vmem:[#allocation11 + $0xa8] sm:$0xff]  }
 0x2cf   :  { %4293 = vmatprep.subr.bf16.mxu1 %v5449_v23  ;;  %v5529_v21 = vcombine.high %v1027_v16, %v1031_v31  ;;  %v891_v22 = vld [vmem:[#allocation8 + $0xa98] sm:$0xff] }
 0x2d0   :  { %v895_v23 = vld [vmem:[#allocation8 + $0xab8] sm:$0xff] }
 0x2d1   :  { %4253 = vmatpush1.bf16.msra.mxu0 %v5320_v45  ;;  %v1019_v26 = vld [vmem:[#allocation8 + $0xe98] sm:$0xff]  ;;  %v5528_v45 = vcombine.low %v1027_v16, %v1031_v31  ;;  %v5393_v12 = vcombine.high %v891_v22, %v895_v23  ;;  %v5392_v33 = vcombine.low %v891_v22, %v895_v23  ;;  %v5739_v16 = vld [vmem:[#allocation11 + $0x60] sm:$0xff]   ;;  %v5745_v22 = vld [vmem:[#allocation11 + $0x18] sm:$0xff]  }
 0x2d2   :  { %4294 = vmatpush1.bf16.msra.mxu1 %v5448_v27  ;;  %4254 = vmatprep.subr.bf16.mxu0 %v5313_v29  ;;  %v1023_v40 = vld [vmem:[#allocation8 + $0xeb8] sm:$0xff]  ;;  %v5746_v23 = vld [vmem:[#allocation11 + $0x98] sm:$0xff]  }
 0x2d3   :  { %4295 = vmatprep.subr.bf16.mxu1 %v5441_v30  ;;  %v5521_v37 = vcombine.high %v1019_v26, %v1023_v40  ;;  %v883_v27 = vld [vmem:[#allocation8 + $0xa58] sm:$0xff]  ;;  %v5520_v7 = vcombine.low %v1019_v26, %v1023_v40 }
 0x2d4   :  { %v887_v29 = vld [vmem:[#allocation8 + $0xa78] sm:$0xff] }
 0x2d5   :  { %4255 = vmatpush1.bf16.msra.mxu0 %v5312_v38  ;;  %v1011_v30 = vld [vmem:[#allocation8 + $0xe58] sm:$0xff]  ;;  %v5385_v35 = vcombine.high %v883_v27, %v887_v29  ;;  %v5384_v55 = vcombine.low %v883_v27, %v887_v29  ;;  %v5755_v27 = vld [vmem:[#allocation11 + $0x40] sm:$0xff]  }
 0x2d6   :  { %4296 = vmatpush1.bf16.msra.mxu1 %v5440_v42  ;;  %4256 = vmatprep.subr.bf16.mxu0 %v5433_v5  ;;  %v1015_v32 = vld [vmem:[#allocation8 + $0xe78] sm:$0xff]  ;;  %v5756_v29 = vld [vmem:[#allocation11 + $0xc0] sm:$0xff]  }
 0x2d7   :  { %4297 = vmatprep.subr.bf16.mxu1 %v5561_v53  ;;  %v5513_v36 = vcombine.high %v1011_v30, %v1015_v32  ;;  %v875_v38 = vld [vmem:[#allocation8 + $0xa18] sm:$0xff]  ;;  %v5512_v10 = vcombine.low %v1011_v30, %v1015_v32  ;;  %v5758_v30 = vld [vmem:[#allocation11 + $0x80] sm:$0xff]   ;;  %v5759_v32 = vld [vmem:[#allocation11 + $0x178] sm:$0xff]  }
 0x2d8   :  { %v879_v42 = vld [vmem:[#allocation8 + $0xa38] sm:$0xff] }
 0x2d9   :  { %4257 = vmatpush2.bf16.msra.mxu0 %v5432_v39  ;;  %v1003_v5 = vld [vmem:[#allocation8 + $0xe18] sm:$0xff]  ;;  %v5377_v4 = vcombine.high %v875_v38, %v879_v42  ;;  %v5376_v48 = vcombine.low %v875_v38, %v879_v42 }
 0x2da   :  { %4298 = vmatpush2.bf16.msra.mxu1 %v5560_v49  ;;  %4258 = vmatprep.subr.bf16.mxu0 %v5425_v0  ;;  %v1007_v53 = vld [vmem:[#allocation8 + $0xe38] sm:$0xff]  ;;  %v5727_v49 = vld [vmem:[#allocation11 + $0x78] sm:$0xff]  }
 0x2db   :  { %4299 = vmatprep.subr.bf16.mxu1 %v5553_v2  ;;  %v5505_v47 = vcombine.high %v1003_v5, %v1007_v53  ;;  %v5504_v39 = vcombine.low %v1003_v5, %v1007_v53  ;;  %v5728_v0 = vld [vmem:[#allocation11 + $0xf8] sm:$0xff]   ;;  %v5808_v2 = vpop.eup %5807  ;;  %v5731_v58 = vld [vmem:[#allocation11 + $0x70] sm:$0xff]  }
 0x2dc   :  { %v5810_v57 = vpop.eup %5809  ;;  %v5733_v3 = vld [vmem:[#allocation11 + $0x30] sm:$0xff]   ;;  %v5776_v5 = vld [vmem:[#allocation11 + $0x1b8] sm:$0xff]  }
 0x2dd   :  { %4259 = vmatpush2.bf16.msra.mxu0 %v5424_v51  ;;  %v4333_v63 = vpack.c.bf16 %v5810_v57, %v5810_v57  ;;  %v5734_v13 = vld [vmem:[#allocation11 + $0xb0] sm:$0xff]  }
 0x2de   :  { %4300 = vmatpush2.bf16.msra.mxu1 %v5552_v59  ;;  %4260 = vmatprep.subr.bf16.mxu0 %v5417_v60  ;;  %v4331_v59 = vpack.c.bf16 %v5808_v2, %v5808_v2  ;;  %v5732_v60 = vld [vmem:[#allocation11 + $0xf0] sm:$0xff]   ;;  %v5768_v2 = vld [vmem:[#allocation11 + $0x118] sm:$0xff]  }
 0x2df   :  { %4301 = vmatprep.subr.bf16.mxu1 %v5545_v62  ;;  %v5747_v26 = vld [vmem:[#allocation11 + $0x50] sm:$0xff]  }
 0x2e0   :  { %v5748_v40 = vld [vmem:[#allocation11 + $0xd0] sm:$0xff]  }
 0x2e1   :  { %4261 = vmatpush2.bf16.msra.mxu0 %v5416_v14  ;;  %v5735_v14 = vld [vmem:[#allocation11 + $0x68] sm:$0xff]   ;;  %v5749_v41 = vld [vmem:[#allocation11 + $0x10] sm:$0xff]  }
 0x2e2   :  { %4302 = vmatpush2.bf16.msra.mxu1 %v5544_v34  ;;  %4262 = vmatprep.subr.bf16.mxu0 %v5409_v8  ;;  %v5761_v42 = vld [vmem:[#allocation11 + $0x170] sm:$0xff]  }
 0x2e3   :  { %4303 = vmatprep.subr.bf16.mxu1 %v5537_v15  ;;  %v5770_v57 = vld [vmem:[#allocation11 + $0x110] sm:$0xff]  }
 0x2e5   :  { %4263 = vmatpush2.bf16.msra.mxu0 %v5408_v18  ;;  %v5741_v18 = vld [vmem:[#allocation11 + $0x20] sm:$0xff]  }
 0x2e6   :  { %4304 = vmatpush2.bf16.msra.mxu1 %v5536_v19  ;;  %4264 = vmatprep.subr.bf16.mxu0 %v5401_v20  ;;  %v5742_v19 = vld [vmem:[#allocation11 + $0xa0] sm:$0xff]   ;;  %v5743_v20 = vld [vmem:[#allocation11 + $0x58] sm:$0xff]  }
 0x2e7   :  { %4305 = vmatprep.subr.bf16.mxu1 %v5529_v21  ;;  %v5744_v21 = vld [vmem:[#allocation11 + $0xd8] sm:$0xff]  }
 0x2e9   :  { %4265 = vmatpush2.bf16.msra.mxu0 %v5400_v44  ;;  %v5750_v44 = vld [vmem:[#allocation11 + $0x90] sm:$0xff]  }
 0x2ea   :  { %4306 = vmatpush2.bf16.msra.mxu1 %v5528_v45  ;;  %4266 = vmatprep.subr.bf16.mxu0 %v5393_v12  ;;  %v5751_v45 = vld [vmem:[#allocation11 + $0x48] sm:$0xff]  }
 0x2eb   :  { %4307 = vmatprep.subr.bf16.mxu1 %v5521_v37  ;;  %v5752_v12 = vld [vmem:[#allocation11 + $0xc8] sm:$0xff]  }
 0x2ec   :  { %v5753_v37 = vld [vmem:[#allocation11 + $0x8] sm:$0xff]  }
 0x2ed   :  { %4267 = vmatpush2.bf16.msra.mxu0 %v5392_v33  ;;  %v5812_v33 = vpop.eup %5811 }
 0x2ee   :  { %4308 = vmatpush2.bf16.msra.mxu1 %v5520_v7  ;;  %4268 = vmatprep.subr.bf16.mxu0 %v5385_v35  ;;  %v5775_v7 = vld [vmem:[#allocation11 + $0x1f8] sm:$0xff]   ;;  %v5814_v35 = vpop.eup %5813  ;;  %v4330_v38 = vpack.c.bf16 %v5812_v33, %v5812_v33 }
 0x2ef   :  { %4309 = vmatprep.subr.bf16.mxu1 %v5513_v36  ;;  %v5760_v36 = vld [vmem:[#allocation11 + $0x138] sm:$0xff]   ;;  %v4332_v53 = vpack.c.bf16 %v5814_v35, %v5814_v35 }
 0x2f1   :  { %4269 = vmatpush2.bf16.msra.mxu0 %v5384_v55  ;;  %v5777_v55 = vld [vmem:[#allocation11 + $0x1f0] sm:$0xff]  }
 0x2f2   :  { %4310 = vmatpush2.bf16.msra.mxu1 %v5512_v10  ;;  %4270 = vmatprep.subr.bf16.mxu0 %v5377_v4  ;;  %v5762_v10 = vld [vmem:[#allocation11 + $0x130] sm:$0xff]   ;;  %v5763_v4 = vld [vmem:[#allocation11 + $0x168] sm:$0xff]  }
 0x2f3   :  { %4311 = vmatprep.subr.bf16.mxu1 %v5505_v47  ;;  %v5778_v47 = vld [vmem:[#allocation11 + $0x1b0] sm:$0xff]  }
 0x2f5   :  { %4271 = vmatpush2.bf16.msra.mxu0 %v5376_v48  ;;  %v5764_v48 = vld [vmem:[#allocation11 + $0x128] sm:$0xff]  }
 0x2f6   :  { %4312 = vmatpush2.bf16.msra.mxu1 %v5504_v39  ;;  %5627 = vmatprep.subr.bf16.mxu0 %v5727_v49  ;;  %v5765_v39 = vld [vmem:[#allocation11 + $0x160] sm:$0xff]  }
 0x2f7   :  { %5649 = vmatprep.subr.bf16.mxu1 %v5728_v0  ;;  %v5766_v49 = vld [vmem:[#allocation11 + $0x120] sm:$0xff]   ;;  %v5767_v0 = vld [vmem:[#allocation11 + $0x158] sm:$0xff]  }
 0x2f8   :  { %v6250_v51 = vpop.f32.mrf.mxu0  ;;  %4273 = vmatmul.mubr.bf16.vlgmr.msra.gmra.mxu0 %v6187_v11  ;;  %v5736_v11 = vld [vmem:[#allocation11 + $0xe8] sm:$0xff]  }
 0x2f9   :  { %v6253_v62 = vpop.f32.mrf.mxu1  ;;  %4314 = vmatmul.mubr.bf16.vlgmr.msra.gmra.mxu1 %v6185_v1  ;;  %5628 = vmatpush3.bf16.msra.mxu0 %v5729_v24  ;;  %v5769_v24 = vld [vmem:[#allocation11 + $0x150] sm:$0xff]  }
 0x2fa   :  { %4889 = vmatprep.mubr.bf16.mxu0 %v4331_v59  ;;  %5650 = vmatpush3.bf16.msra.mxu1 %v5730_v43  ;;  %v6256_v6 = vpop.f32.mrf.mxu0  ;;  %v5771_v43 = vld [vmem:[#allocation11 + $0x148] sm:$0xff]   ;;  %v5773_v59 = vld [vmem:[#allocation11 + $0x140] sm:$0xff]  }
 0x2fb   :  { %4929 = vmatprep.mubr.bf16.mxu1 %v4333_v63  ;;  %v6258_v34 = vpop.f32.mrf.mxu1  ;;  %5629 = vmatprep.subr.bf16.mxu0 %v5731_v58  ;;  %v5772_v58 = vld [vmem:[#allocation11 + $0x108] sm:$0xff]  }
 0x2fc   :  { %v4032_v8 = vpop.f32.mrf.mxu0  ;;  %5651 = vmatprep.subr.bf16.mxu1 %v5732_v60  ;;  %v6262_v60 = vld [vmem:[#allocation10] sm:$0xff] }
 0x2fd   :  { %v4073_v15 = vpop.f32.mrf.mxu1  ;;  %5630 = vmatpush3.bf16.msra.mxu0 %v5733_v3  ;;  %v1085_v63 = vrot.slane %v6262_v60, %v6099_v54  ;;  %v1089_v3 = vrot.slane %v6262_v60, %v510_v25 }
 0x2fe   :  { %5652 = vmatpush3.bf16.msra.mxu1 %v5734_v13  ;;  %v4033_v1 = vpop.f32.mrf.mxu0  ;;  %5631 = vmatprep.subr.bf16.mxu0 %v5735_v14  ;;  %v5774_v13 = vld [vmem:[#allocation11 + $0x100] sm:$0xff]  }
 0x2ff   :  { %v4074_v31 = vpop.f32.mrf.mxu1  ;;  %5653 = vmatprep.subr.bf16.mxu1 %v5736_v11  ;;  %v4029_v14 = vadd.f32 %v6250_v51, %v1085_v63  ;;  %v4031_v11 = vadd.f32 %v6256_v6, %v1089_v3  ;;  %v5781_v51 = vld [vmem:[#allocation11 + $0x1e0] sm:$0xff]  }
 0x301   :  { %5632 = vmatpush3.bf16.msra.mxu0 %v5737_v9  ;;  %v4070_v8 = vadd.f32 %v6253_v62, %v4029_v14  ;;  %v5779_v9 = vld [vmem:[#allocation11 + $0x1e8] sm:$0xff]   ;;  %v4072_v1 = vadd.f32 %v6258_v34, %v4031_v11  ;;  %v5783_v34 = vld [vmem:[#allocation11 + $0x1d8] sm:$0xff]   ;;  %v5562_v14 = vld [vmem:[#allocation13] ss:$0 sm:$0xff] }
 0x302   :  { %5654 = vmatpush3.bf16.msra.mxu1 %v5738_v61  ;;  %5633 = vmatprep.subr.bf16.mxu0 %v5739_v16  ;;  %v5780_v16 = vld [vmem:[#allocation11 + $0x1a8] sm:$0xff]  }
 0x303   :  { %5655 = vmatprep.subr.bf16.mxu1 %v5740_v17 }
 0x305   :  { %5634 = vmatpush3.bf16.msra.mxu0 %v5741_v18 }
 0x306   :  { %5656 = vmatpush3.bf16.msra.mxu1 %v5742_v19  ;;  %5635 = vmatprep.subr.bf16.mxu0 %v5743_v20 }
 0x307   :  { %5657 = vmatprep.subr.bf16.mxu1 %v5744_v21  ;;  %v5782_v21 = vld [vmem:[#allocation11 + $0x1a0] sm:$0xff]  }
 0x309   :  { %5636 = vmatpush3.bf16.msra.mxu0 %v5745_v22 }
 0x30a   :  { %5658 = vmatpush3.bf16.msra.mxu1 %v5746_v23  ;;  %5637 = vmatprep.subr.bf16.mxu0 %v5747_v26  ;;  %v5784_v23 = vld [vmem:[#allocation11 + $0x198] sm:$0xff]   ;;  %v5785_v26 = vld [vmem:[#allocation11 + $0x1d0] sm:$0xff]  }
 0x30b   :  { %5659 = vmatprep.subr.bf16.mxu1 %v5748_v40  ;;  %v5786_v40 = vld [vmem:[#allocation11 + $0x190] sm:$0xff]  }
 0x30d   :  { %5638 = vmatpush3.bf16.msra.mxu0 %v5749_v41  ;;  %v5787_v41 = vld [vmem:[#allocation11 + $0x1c8] sm:$0xff]  }
 0x30e   :  { %5660 = vmatpush3.bf16.msra.mxu1 %v5750_v44  ;;  %5639 = vmatprep.subr.bf16.mxu0 %v5751_v45  ;;  %v5788_v44 = vld [vmem:[#allocation11 + $0x188] sm:$0xff]  }
 0x30f   :  { %5661 = vmatprep.subr.bf16.mxu1 %v5752_v12  ;;  %v5789_v12 = vld [vmem:[#allocation11 + $0x1c0] sm:$0xff]  }
 0x311   :  { %5640 = vmatpush3.bf16.msra.mxu0 %v5753_v37  ;;  %v5790_v37 = vld [vmem:[#allocation11 + $0x180] sm:$0xff]  }
 0x312   :  { %5662 = vmatpush3.bf16.msra.mxu1 %v5754_v52  ;;  %5641 = vmatprep.subr.bf16.mxu0 %v5755_v27 }
 0x313   :  { %5663 = vmatprep.subr.bf16.mxu1 %v5756_v29 }
 0x315   :  { %5642 = vmatpush3.bf16.msra.mxu0 %v5757_v46 }
 0x316   :  { %5664 = vmatpush3.bf16.msra.mxu1 %v5758_v30  ;;  %5671 = vmatprep.subr.bf16.mxu0 %v5759_v32 }
 0x317   :  { %5693 = vmatprep.subr.bf16.mxu1 %v5775_v7 }
 0x318   :  { %4890 = vmatmul.mubr.bf16.vlgmr.msra.gmra.mxu0 %v4330_v38 }
 0x319   :  { %4930 = vmatmul.mubr.bf16.vlgmr.msra.gmra.mxu1 %v4332_v53  ;;  %5672 = vmatpush3.bf16.msra.mxu0 %v5760_v36 }
 0x31a   :  { %5673 = vmatprep.subr.bf16.mxu0 %v5761_v42  ;;  %5694 = vmatpush3.bf16.msra.mxu1 %v5776_v5  ;;  %v1093_v42 = vrot.slane %v6262_v60, %v6105_v56  ;;  %v1097_v5 = vrot.slane %v6262_v60, %v518_v28 }
 0x31b   :  { %5695 = vmatprep.subr.bf16.mxu1 %v5777_v55 }
 0x31d   :  { %5674 = vmatpush3.bf16.msra.mxu0 %v5762_v10 }
 0x31e   :  { %5675 = vmatprep.subr.bf16.mxu0 %v5763_v4  ;;  %5696 = vmatpush3.bf16.msra.mxu1 %v5778_v47 }
 0x31f   :  { %5697 = vmatprep.subr.bf16.mxu1 %v5779_v9 }
 0x321   :  { %5676 = vmatpush3.bf16.msra.mxu0 %v5764_v48 }
 0x322   :  { %5677 = vmatprep.subr.bf16.mxu0 %v5765_v39  ;;  %5698 = vmatpush3.bf16.msra.mxu1 %v5780_v16 }
 0x323   :  { %5699 = vmatprep.subr.bf16.mxu1 %v5781_v51 }
 0x325   :  { %5678 = vmatpush3.bf16.msra.mxu0 %v5766_v49 }
 0x326   :  { %5679 = vmatprep.subr.bf16.mxu0 %v5767_v0  ;;  %5700 = vmatpush3.bf16.msra.mxu1 %v5782_v21 }
 0x327   :  { %5701 = vmatprep.subr.bf16.mxu1 %v5783_v34 }
 0x329   :  { %5680 = vmatpush3.bf16.msra.mxu0 %v5768_v2 }
 0x32a   :  { %5681 = vmatprep.subr.bf16.mxu0 %v5769_v24  ;;  %5702 = vmatpush3.bf16.msra.mxu1 %v5784_v23 }
 0x32b   :  { %5703 = vmatprep.subr.bf16.mxu1 %v5785_v26 }
 0x32d   :  { %5682 = vmatpush3.bf16.msra.mxu0 %v5770_v57 }
 0x32e   :  { %5683 = vmatprep.subr.bf16.mxu0 %v5771_v43  ;;  %5704 = vmatpush3.bf16.msra.mxu1 %v5786_v40 }
 0x32f   :  { %5705 = vmatprep.subr.bf16.mxu1 %v5787_v41 }
 0x331   :  { %5684 = vmatpush3.bf16.msra.mxu0 %v5772_v58 }
 0x332   :  { %5685 = vmatprep.subr.bf16.mxu0 %v5773_v59  ;;  %5706 = vmatpush3.bf16.msra.mxu1 %v5788_v44 }
 0x333   :  { %5707 = vmatprep.subr.bf16.mxu1 %v5789_v12 }
 0x335   :  { %5686 = vmatpush3.bf16.msra.mxu0 %v5774_v13 }
 0x336   :  { %5708 = vmatpush3.bf16.msra.mxu1 %v5790_v37 }
 0x338   :  { %v4110_v15 = vpop.f32.mrf.mxu0 }
 0x339   :  { %v4111_v61 = vadd.f32 %v4110_v15, %v4070_v8  ;;  %v4151_v54 = vpop.f32.mrf.mxu1 }
 0x33a   :  { %v4112_v31 = vpop.f32.mrf.mxu0 }
 0x33b   :  { %v4152_v25 = vadd.f32 %v4151_v54, %v4111_v61  ;;  %v4113_v17 = vadd.f32 %v4112_v31, %v4072_v1  ;;  %v4153_v18 = vpop.f32.mrf.mxu1 }
 0x33c   :  { %v4114_v19 = vpop.f32.mrf.mxu0 }
 0x33d   :  { %v4154_v20 = vadd.f32 %v4153_v18, %v4113_v17  ;;  %v4155_v6 = vpop.f32.mrf.mxu1  ;;  %5815 = vtanh.f32 %v4152_v25 }
 0x33e   :  { %v4115_v62 = vpop.f32.mrf.mxu0 }
 0x33f   :  { %5817 = vtanh.f32 %v4154_v20  ;;  %v4156_v22 = vpop.f32.mrf.mxu1 }
 0x34a   :  { %v5816_v45 = vpop.eup %5815 }
 0x34b   :  { %v4334_v29 = vpack.c.bf16 %v5816_v45, %v5816_v45 }
 0x34c   :  { %v5818_v52 = vpop.eup %5817 }
 0x34d   :  { %v4335_v27 = vpack.c.bf16 %v5818_v52, %v5818_v52 }
 0x34f   :  { %4969 = vmatprep.mubr.bf16.mxu0 %v4335_v27 }
 0x350   :  { %4970 = vmatmul.mubr.bf16.vlgmr.msra.gmra.mxu0 %v4334_v29 }
 0x378   :  { %v4192_v46 = vpop.f32.mrf.mxu0 }
 0x379   :  { %v4233_v30 = vpop.f32.mrf.mxu1  ;;  %v4193_v53 = vadd.f32 %v4192_v46, %v1093_v42 }
 0x37a   :  { %v4194_v32 = vpop.f32.mrf.mxu0 }
 0x37b   :  { %v4235_v33 = vpop.f32.mrf.mxu1  ;;  %v4195_v55 = vadd.f32 %v4194_v32, %v1097_v5  ;;  %v4234_v10 = vadd.f32 %v4233_v30, %v4193_v53 }
 0x37c   :  { %v4196_v7 = vpop.f32.mrf.mxu0 }
 0x37d   :  { %v4237_v35 = vpop.f32.mrf.mxu1  ;;  %v4236_v47 = vadd.f32 %v4235_v33, %v4195_v55 }
 0x37e   :  { %v4197_v36 = vpop.f32.mrf.mxu0 }
 0x37f   :  { %v4238_v38 = vpop.f32.mrf.mxu1 }
 0x3b8   :  { %v4274_v4 = vpop.f32.mrf.mxu0 }
 0x3b9   :  { %v4275_v48 = vadd.f32 %v4274_v4, %v4234_v10  ;;  %v4315_v39 = vpop.f32.mrf.mxu1 }
 0x3ba   :  { %v4276_v49 = vpop.f32.mrf.mxu0 }
 0x3bb   :  { %v4316_v0 = vadd.f32 %v4315_v39, %v4275_v48  ;;  %v4277_v2 = vadd.f32 %v4276_v49, %v4236_v47  ;;  %v4317_v24 = vpop.f32.mrf.mxu1 }
 0x3bc   :  { %v4278_v57 = vpop.f32.mrf.mxu0 }
 0x3bd   :  { %v4318_v43 = vadd.f32 %v4317_v24, %v4277_v2  ;;  %v4319_v58 = vpop.f32.mrf.mxu1  ;;  %5819 = vtanh.f32 %v4316_v0 }
 0x3be   :  { %v4279_v56 = vpop.f32.mrf.mxu0 }
 0x3bf   :  { %5821 = vtanh.f32 %v4318_v43  ;;  %v4320_v50 = vpop.f32.mrf.mxu1 }
 0x3ca   :  { %v5820_v59 = vpop.eup %5819 }
 0x3cb   :  { %v4336_v63 = vpack.c.bf16 %v5820_v59, %v5820_v59 }
 0x3cc   :  { %v5822_v28 = vpop.eup %5821 }
 0x3cd   :  { %v4337_v60 = vpack.c.bf16 %v5822_v28, %v5822_v28 }
 0x3cf   :  { %5009 = vmatprep.mubr.bf16.mxu1 %v4337_v60 }
 0x3d0   :  { %5010 = vmatmul.mubr.bf16.vlgmr.msra.gmra.mxu1 %v4336_v63 }
 0x3d8   :  { %v5643_v3 = vpop.f32.mrf.mxu0 }
 0x3d9   :  { %v5665_v13 = vpop.f32.mrf.mxu1 }
 0x3da   :  { %v5644_v11 = vpop.f32.mrf.mxu0 }
 0x3db   :  { %v5645_v8 = vadd.f32 %v5644_v11, %v5643_v3  ;;  %v5666_v15 = vpop.f32.mrf.mxu1 }
 0x3dc   :  { %v5667_v9 = vadd.f32 %v5666_v15, %v5665_v13  ;;  %v5646_v1 = vpop.f32.mrf.mxu0 }
 0x3dd   :  { %v4892_v61 = vadd.f32 %v5645_v8, %v5562_v14  ;;  %v5668_v54 = vpop.f32.mrf.mxu1 }
 0x3de   :  { %v5647_v16 = vpop.f32.mrf.mxu0 }
 0x3df   :  { %v4932_v31 = vadd.f32 %v5667_v9, %v4892_v61  ;;  %v5669_v25 = vpop.f32.mrf.mxu1 }
 0x410   :  { %v5687_v17 = vpop.f32.mrf.mxu0 }
 0x412   :  { %v5688_v18 = vpop.f32.mrf.mxu0 }
 0x413   :  { %v5689_v19 = vadd.f32 %v5688_v18, %v5687_v17 }
 0x414   :  { %v5690_v51 = vpop.f32.mrf.mxu0 }
 0x415   :  { %v4972_v20 = vadd.f32 %v5689_v19, %v4932_v31 }
 0x416   :  { %v5691_v6 = vpop.f32.mrf.mxu0 }
 0x490   :  { %v5709_v21 = vpop.f32.mrf.mxu1 }
 0x492   :  { %v5710_v62 = vpop.f32.mrf.mxu1 }
 0x493   :  { %v5711_v22 = vadd.f32 %v5710_v62, %v5709_v21 }
 0x494   :  { %v5712_v34 = vpop.f32.mrf.mxu1 }
 0x495   :  { %v5012_v23 = vadd.f32 %v5711_v22, %v4972_v20 }
 0x496   :  { %v5713_v26 = vpop.f32.mrf.mxu1 }
 0x497   :  { %5017 = vst [vmem:[%s6290_s9] sm:$0xff] %v5012_v23 }
 0x498   :  { %5022 = vsyncpa [#allocation4], 1 }
 0x499   :  { %5023 = vsyncpa [#allocation6], 1 }
 0x49a   :  { %5024 = vsyncpa [#allocation9], 1 }
 0x49b   :  { %5025 = vsyncpa [#allocation12], 1 }

</bundles_post_ra>
